<compile_context>
chip_gen: v7x
topology: tpu7x:2x2x1
jax: 0.10.0
libtpu: 0.0.40
codegen_flags: <defaults>
</compile_context>

<pallas_src>
import jax
import jax.numpy as jnp
from jax.experimental import pallas as pl
from jax.experimental.pallas import tpu as pltpu


# ----------------------------- helpers ------------------------------------ #

def _round_up(x, m):
    return ((x + m - 1) // m) * m


_V7X_VMEM_BYTES = 64 << 20   # smallest per-TensorCore VMEM across v5e/v6e/v7x
_VMEM_HEADROOM = 0.75        # leave 25% for compiler scratch / spill
_MAX_TILE_B = 1024           # 512-1024 rows reach ~85-86% of HBM roofline


def _physical_vmem_bytes():
    """Best-effort per-core VMEM capacity; conservative fallback (v7x)."""
    try:
        return int(pltpu.get_tpu_info().vmem_capacity_bytes)
    except Exception:
        return _V7X_VMEM_BYTES


def _derive_tiling(B, input_p, latent_p, weight_bytes, physical_vmem,
                   requested_tile_b=None):
    """Pick tile_b from the VMEM budget: resident weights (single-buffered) +
    double-buffered streamed tiles (x, eps in; recon, mean, logvar out)."""
    budget = int(physical_vmem * _VMEM_HEADROOM)
    # f32 streamed bytes per batch row, x2 for double buffering.
    row_bytes = 2 * 4 * (2 * input_p + 3 * latent_p)
    avail = max(budget - weight_bytes, 8 * row_bytes)
    cap = max(8, (avail // row_bytes) // 8 * 8)
    cap = min(cap, _MAX_TILE_B)

    if requested_tile_b is not None:
        tile_b = requested_tile_b
    else:
        tile_b = min(cap, _round_up(B, 8))
        # Keep >= 2 grid steps so both v7x TensorCores get work.
        if _round_up(B, tile_b) // tile_b < 2 and tile_b > 8:
            tile_b = max(8, (tile_b // 2) // 8 * 8)

    assert tile_b % 8 == 0, tile_b
    B_p = _round_up(B, tile_b)
    return tile_b, B_p


# ------------------------------ kernel ------------------------------------ #

def _vae_kernel(x_ref, eps_ref,
                w1_ref, b1_ref,
                w2m_ref, b2m_ref, w2v_ref, b2v_ref,
                w3_ref, b3_ref, w4_ref, b4_ref,
                recon_ref, mean_ref, logvar_ref):
    md = w1_ref.dtype                                # matmul operand dtype
    x = x_ref[...]                                   # [TB, input_p]  f32
    eps = eps_ref[...]                               # [TB, latent_p] f32

    # ---- encoder: Linear -> ReLU ----
    h = jnp.dot(x.astype(md), w1_ref[...],
                preferred_element_type=jnp.float32) + b1_ref[...]
    h = jnp.maximum(h, 0.0)                          # ReLU (f32 VPU)

    # ---- encoder head, split into mean / logvar (no mid-vreg slice) ----
    hm = h.astype(md)
    z_mean = jnp.dot(hm, w2m_ref[...],
                     preferred_element_type=jnp.float32) + b2m_ref[...]
    z_log_var = jnp.dot(hm, w2v_ref[...],
                        preferred_element_type=jnp.float32) + b2v_ref[...]

    # ---- reparameterize: z = mean + exp(0.5 * logvar) * eps (f32 EUP/VPU) ----
    z = z_mean + jnp.exp(0.5 * z_log_var) * eps

    # ---- decoder: Linear -> ReLU -> Linear -> Sigmoid ----
    hd = jnp.dot(z.astype(md), w3_ref[...],
                 preferred_element_type=jnp.float32) + b3_ref[...]
    hd = jnp.maximum(hd, 0.0)
    logits = jnp.dot(hd.astype(md), w4_ref[...],
                     preferred_element_type=jnp.float32) + b4_ref[...]
    recon = jax.nn.sigmoid(logits)                   # EUP transcendental path

    recon_ref[...] = recon.astype(recon_ref.dtype)
    mean_ref[...] = z_mean.astype(mean_ref.dtype)
    logvar_ref[...] = z_log_var.astype(logvar_ref.dtype)


# ------------------------------ wrapper ------------------------------------ #

def vae_forward(x, eps, kernel_params, *, latent_dim, tile_b=None,
                out_dtype=jnp.float32):
    """Fused VAE forward.  Returns (reconstruction, z_mean, z_log_var) with
    original (un-padded) shapes.

    kernel_params = output of `pad_params_for_kernel`: weights laid out
    [in_p, out_p] (zero-padded), biases [1, out_p] (zero-padded)."""
    B, input_dim = x.shape
    (w1, b1, w2m, b2m, w2v, b2v, w3, b3, w4, b4) = kernel_params
    input_p, hidden_p = w1.shape
    latent_p = w3.shape[0]
    assert input_dim <= input_p and latent_dim <= latent_p
    assert eps.shape == (B, latent_dim)

    weight_bytes = sum(int(a.size) * a.dtype.itemsize for a in kernel_params)
    physical_vmem = _physical_vmem_bytes()
    tile_b, B_p = _derive_tiling(B, input_p, latent_p, weight_bytes,
                                 physical_vmem, tile_b)
    grid = (B_p // tile_b,)

    # Wrapper-side layout plumbing (done per call, cheap): zero-pad batch and
    # feature dims so every MXU pass and output store is full-lane.
    x_p = jnp.zeros((B_p, input_p), jnp.float32)
    x_p = x_p.at[:B, :input_dim].set(x.astype(jnp.float32))
    eps_p = jnp.zeros((B_p, latent_p), jnp.float32)
    eps_p = eps_p.at[:B, :latent_dim].set(eps.astype(jnp.float32))

    def row_spec(d):                                  # streamed per batch tile
        return pl.BlockSpec((tile_b, d), lambda i: (i, 0))

    out_specs = (row_spec(input_p), row_spec(latent_p), row_spec(latent_p))
    out_shapes = (
        jax.ShapeDtypeStruct((B_p, input_p), out_dtype),    # reconstruction
        jax.ShapeDtypeStruct((B_p, latent_p), jnp.float32),  # z_mean
        jax.ShapeDtypeStruct((B_p, latent_p), jnp.float32),  # z_log_var
    )

    # Advisory cost estimate for XLA's scheduler.
    flops = 2 * B_p * (input_p * hidden_p
                       + hidden_p * 2 * latent_p
                       + latent_p * hidden_p
                       + hidden_p * input_p)
    transcendentals = B_p * (latent_p + input_p)     # exp (reparam) + sigmoid
    act_bytes = (4 * (int(x_p.size) + int(eps_p.size))
                 + B_p * input_p * jnp.dtype(out_dtype).itemsize
                 + 2 * B_p * latent_p * 4)
    cost = pl.CostEstimate(flops=flops, transcendentals=transcendentals,
                           bytes_accessed=weight_bytes + act_bytes)

    def build(weight_buffers):
        if weight_buffers == 1:
            # Constant index_map -> fetched once -> single buffer (halves the
            # resident-weight VMEM footprint, biggest relative win on v7x).
            def resident(arr):
                return pl.BlockSpec(arr.shape, lambda i: (0, 0),
                                    pipeline_mode=pl.Buffered(1))
        else:
            def resident(arr):
                return pl.BlockSpec(arr.shape, lambda i: (0, 0))

        in_specs = ([row_spec(input_p), row_spec(latent_p)]
                    + [resident(a) for a in kernel_params])

        # Explicit scoped-VMEM limit: resident weights x buffer count plus the
        # double-buffered streamed activation tiles, with slack.
        stream_bytes = 2 * tile_b * (
            4 * (input_p + latent_p)                           # x, eps in
            + jnp.dtype(out_dtype).itemsize * input_p          # recon out
            + 4 * 2 * latent_p)                                # mean, logvar out
        vmem_limit = int(1.25 * (weight_buffers * weight_bytes + stream_bytes)) \
            + (4 << 20)
        vmem_limit = min(max(vmem_limit, 24 << 20), physical_vmem)

        return pl.pallas_call(
            _vae_kernel,
            out_shape=out_shapes,
            grid=grid,
            in_specs=in_specs,
            out_specs=out_specs,
            compiler_params=pltpu.CompilerParams(
                dimension_semantics=("parallel",),     # megacore on v7x
                vmem_limit_bytes=vmem_limit),
            cost_estimate=cost,
        )

    args = (x_p, eps_p) + tuple(kernel_params)
    try:
        recon_p, mean_p, logvar_p = build(weight_buffers=1)(*args)
    except Exception:
        # Fallback if this JAX build rejects single-buffered BlockSpecs;
        # identical semantics, just default double-buffered weights.
        recon_p, mean_p, logvar_p = build(weight_buffers=2)(*args)

    return (recon_p[:B, :input_dim].astype(jnp.float32),
            mean_p[:B, :latent_dim],
            logvar_p[:B, :latent_dim])


# --------------------------- parameter plumbing ---------------------------- #

def init_params(key, input_dim, hidden_dim, latent_dim, dtype=jnp.float32):
    """Deterministic synthetic parameters (PyTorch-Linear-like uniform init),
    stored as [in_features, out_features] plus [1, out_features] bias rows.
    Mirrors the PyTorch module layout (single [hidden, 2*latent] encoder head).
    Pass dtype=jnp.bfloat16 for production-size models on v6e/v7x."""
    def linear(k, fan_in, fan_out):
        kw, kb = jax.random.split(k)
        bound = 1.0 / jnp.sqrt(fan_in)
        w = jax.random.uniform(kw, (fan_in, fan_out), jnp.float32, -bound, bound)
        b = jax.random.uniform(kb, (1, fan_out), jnp.float32, -bound, bound)
        return w.astype(dtype), b.astype(jnp.float32)

    k1, k2, k3, k4 = jax.random.split(key, 4)
    w1, b1 = linear(k1, input_dim, hidden_dim)        # encoder layer 1
    w2, b2 = linear(k2, hidden_dim, latent_dim * 2)   # encoder layer 2
    w3, b3 = linear(k3, latent_dim, hidden_dim)       # decoder layer 1
    w4, b4 = linear(k4, hidden_dim, input_dim)        # decoder layer 2
    return (w1, b1, w2, b2, w3, b3, w4, b4)


def pad_params_for_kernel(params, input_dim, hidden_dim, latent_dim,
                          *, lane_pad=128, mxu_pad=256):
    """One-time wrapper-side plumbing:
       * split the [hidden, 2*latent] encoder head into mean/logvar halves,
       * zero-pad latent_dim to `lane_pad` (unmasked full-lane stores, full
         MXU N/K for the head and z@w3 matmuls),
       * zero-pad hidden/input dims to `mxu_pad` multiples (full MXU passes;
         use 128 on v5e, 256 on v6e/v7x).
    Padded weight/bias entries are zero, so padded output lanes stay exactly
    zero and the forward is numerically identical after slicing."""
    w1, b1, w2, b2, w3, b3, w4, b4 = params
    input_p = _round_up(input_dim, mxu_pad)
    hidden_p = _round_up(hidden_dim, mxu_pad)
    latent_p = _round_up(latent_dim, lane_pad)

    def pad(a, rows, cols):
        out = jnp.zeros((rows, cols), a.dtype)
        return out.at[:a.shape[0], :a.shape[1]].set(a)

    w2m, w2v = w2[:, :latent_dim], w2[:, latent_dim:]
    b2m, b2v = b2[:, :latent_dim], b2[:, latent_dim:]
    return (pad(w1, input_p, hidden_p), pad(b1, 1, hidden_p),
            pad(w2m, hidden_p, latent_p), pad(b2m, 1, latent_p),
            pad(w2v, hidden_p, latent_p), pad(b2v, 1, latent_p),
            pad(w3, latent_p, hidden_p), pad(b3, 1, hidden_p),
            pad(w4, hidden_p, input_p), pad(b4, 1, input_p))


def vae_reference(x, eps, params, *, latent_dim):
    """Pure-JAX reference matching the PyTorch module exactly."""
    w1, b1, w2, b2, w3, b3, w4, b4 = params
    h = jnp.maximum(x @ w1 + b1, 0.0)
    henc = h @ w2 + b2
    z_mean, z_log_var = henc[:, :latent_dim], henc[:, latent_dim:]
    z = z_mean + jnp.exp(0.5 * z_log_var) * eps
    hd = jnp.maximum(z @ w3 + b3, 0.0)
    recon = jax.nn.sigmoid(hd @ w4 + b4)
    return recon, z_mean, z_log_var


# ------------------------------- demo / test -------------------------------- #

if __name__ == "__main__":
    input_dim, hidden_dim, latent_dim = 32, 16, 8
    batch = 16

    key = jax.random.PRNGKey(0)
    kx, keps, kp = jax.random.split(key, 3)

    x = jax.random.uniform(kx, (batch, input_dim), jnp.float32)
    eps = jax.random.normal(keps, (batch, latent_dim), jnp.float32)
    # f32 weights here so the small-shape correctness check is tight;
    # pass dtype=jnp.bfloat16 to init_params for production sizes on v6e/v7x.
    params = init_params(kp, input_dim, hidden_dim, latent_dim)
    kernel_params = pad_params_for_kernel(params, input_dim, hidden_dim,
                                          latent_dim)

    recon, z_mean, z_log_var = vae_forward(
        x, eps, kernel_params, latent_dim=latent_dim)   # tile_b auto-derived
    jax.block_until_ready((recon, z_mean, z_log_var))

    # sanity check against pure-JAX reference (un-padded)
    r_ref, m_ref, lv_ref = vae_reference(x, eps, params, latent_dim=latent_dim)
    assert recon.shape == (batch, input_dim)
    assert z_mean.shape == (batch, latent_dim)
    assert jnp.allclose(recon, r_ref, atol=1e-5, rtol=1e-5)
    assert jnp.allclose(z_mean, m_ref, atol=1e-5, rtol=1e-5)
    assert jnp.allclose(z_log_var, lv_ref, atol=1e-5, rtol=1e-5)

    print("KERNEL_OK")
</pallas_src>

<mosaic_0001>
module attributes {stable_mosaic.version = 11 : i64} {
  func.func @_vae_kernel(%arg0: i32, %arg1: memref<8x256xf32, #tpu.memory_space<vmem>>, %arg2: memref<8x128xf32, #tpu.memory_space<vmem>>, %arg3: memref<256x256xf32, #tpu.memory_space<vmem>>, %arg4: memref<1x256xf32, #tpu.memory_space<vmem>>, %arg5: memref<256x128xf32, #tpu.memory_space<vmem>>, %arg6: memref<1x128xf32, #tpu.memory_space<vmem>>, %arg7: memref<256x128xf32, #tpu.memory_space<vmem>>, %arg8: memref<1x128xf32, #tpu.memory_space<vmem>>, %arg9: memref<128x256xf32, #tpu.memory_space<vmem>>, %arg10: memref<1x256xf32, #tpu.memory_space<vmem>>, %arg11: memref<256x256xf32, #tpu.memory_space<vmem>>, %arg12: memref<1x256xf32, #tpu.memory_space<vmem>>, %arg13: memref<8x256xf32, #tpu.memory_space<vmem>>, %arg14: memref<8x128xf32, #tpu.memory_space<vmem>>, %arg15: memref<8x128xf32, #tpu.memory_space<vmem>>) attributes {dimension_semantics = [#tpu.dimension_semantics<parallel>], iteration_bounds = array<i64: 2>, scalar_prefetch = 0 : i64, scratch_operands = 0 : i64, tpu.core_type = #tpu.core_type<tc>, window_params = [{transform_indices = @transform_0, window_bounds = array<i64: 8, 256>}, {transform_indices = @transform_1, window_bounds = array<i64: 8, 128>}, {pipeline_mode = #tpu.pipeline_mode<synchronous>, transform_indices = @transform_2, window_bounds = array<i64: 256, 256>}, {pipeline_mode = #tpu.pipeline_mode<synchronous>, transform_indices = @transform_3, window_bounds = array<i64: 1, 256>}, {pipeline_mode = #tpu.pipeline_mode<synchronous>, transform_indices = @transform_4, window_bounds = array<i64: 256, 128>}, {pipeline_mode = #tpu.pipeline_mode<synchronous>, transform_indices = @transform_5, window_bounds = array<i64: 1, 128>}, {pipeline_mode = #tpu.pipeline_mode<synchronous>, transform_indices = @transform_6, window_bounds = array<i64: 256, 128>}, {pipeline_mode = #tpu.pipeline_mode<synchronous>, transform_indices = @transform_7, window_bounds = array<i64: 1, 128>}, {pipeline_mode = #tpu.pipeline_mode<synchronous>, transform_indices = @transform_8, window_bounds = array<i64: 128, 256>}, {pipeline_mode = #tpu.pipeline_mode<synchronous>, transform_indices = @transform_9, window_bounds = array<i64: 1, 256>}, {pipeline_mode = #tpu.pipeline_mode<synchronous>, transform_indices = @transform_10, window_bounds = array<i64: 256, 256>}, {pipeline_mode = #tpu.pipeline_mode<synchronous>, transform_indices = @transform_11, window_bounds = array<i64: 1, 256>}, {transform_indices = @transform_12, window_bounds = array<i64: 8, 256>}, {transform_indices = @transform_13, window_bounds = array<i64: 8, 128>}, {transform_indices = @transform_14, window_bounds = array<i64: 8, 128>}]} {
    %c0 = arith.constant 0 : index
    %c0_0 = arith.constant 0 : index
    %0 = vector.load %arg1[%c0, %c0_0] : memref<8x256xf32, #tpu.memory_space<vmem>>, vector<8x256xf32>
    %c0_1 = arith.constant 0 : index
    %c0_2 = arith.constant 0 : index
    %1 = vector.load %arg2[%c0_1, %c0_2] : memref<8x128xf32, #tpu.memory_space<vmem>>, vector<8x128xf32>
    %c0_3 = arith.constant 0 : index
    %c0_4 = arith.constant 0 : index
    %2 = vector.load %arg3[%c0_3, %c0_4] : memref<256x256xf32, #tpu.memory_space<vmem>>, vector<256x256xf32>
    %cst = arith.constant dense<0.000000e+00> : vector<8x256xf32>
    %3 = tpu.matmul %0, %2, %cst {dimension_numbers = #tpu.dot_dimension_numbers<[1], [0], [0], [1], [0, 0, 1, 1], [], []>} : vector<8x256xf32>, vector<256x256xf32>, vector<8x256xf32> -> vector<8x256xf32>
    %c0_5 = arith.constant 0 : index
    %c0_6 = arith.constant 0 : index
    %4 = vector.load %arg4[%c0_5, %c0_6] : memref<1x256xf32, #tpu.memory_space<vmem>>, vector<1x256xf32>
    %5 = vector.broadcast %4 : vector<1x256xf32> to vector<8x256xf32>
    %6 = arith.addf %3, %5 : vector<8x256xf32>
    %cst_7 = arith.constant 0.000000e+00 : f32
    %7 = vector.broadcast %cst_7 : f32 to vector<8x256xf32>
    %8 = arith.maximumf %6, %7 : vector<8x256xf32>
    %c0_8 = arith.constant 0 : index
    %c0_9 = arith.constant 0 : index
    %9 = vector.load %arg5[%c0_8, %c0_9] : memref<256x128xf32, #tpu.memory_space<vmem>>, vector<256x128xf32>
    %cst_10 = arith.constant dense<0.000000e+00> : vector<8x128xf32>
    %10 = tpu.matmul %8, %9, %cst_10 {dimension_numbers = #tpu.dot_dimension_numbers<[1], [0], [0], [1], [0, 0, 1, 1], [], []>} : vector<8x256xf32>, vector<256x128xf32>, vector<8x128xf32> -> vector<8x128xf32>
    %c0_11 = arith.constant 0 : index
    %c0_12 = arith.constant 0 : index
    %11 = vector.load %arg6[%c0_11, %c0_12] : memref<1x128xf32, #tpu.memory_space<vmem>>, vector<1x128xf32>
    %12 = vector.broadcast %11 : vector<1x128xf32> to vector<8x128xf32>
    %13 = arith.addf %10, %12 : vector<8x128xf32>
    %c0_13 = arith.constant 0 : index
    %c0_14 = arith.constant 0 : index
    %14 = vector.load %arg7[%c0_13, %c0_14] : memref<256x128xf32, #tpu.memory_space<vmem>>, vector<256x128xf32>
    %cst_15 = arith.constant dense<0.000000e+00> : vector<8x128xf32>
    %15 = tpu.matmul %8, %14, %cst_15 {dimension_numbers = #tpu.dot_dimension_numbers<[1], [0], [0], [1], [0, 0, 1, 1], [], []>} : vector<8x256xf32>, vector<256x128xf32>, vector<8x128xf32> -> vector<8x128xf32>
    %c0_16 = arith.constant 0 : index
    %c0_17 = arith.constant 0 : index
    %16 = vector.load %arg8[%c0_16, %c0_17] : memref<1x128xf32, #tpu.memory_space<vmem>>, vector<1x128xf32>
    %17 = vector.broadcast %16 : vector<1x128xf32> to vector<8x128xf32>
    %18 = arith.addf %15, %17 : vector<8x128xf32>
    %cst_18 = arith.constant 5.000000e-01 : f32
    %19 = vector.broadcast %cst_18 : f32 to vector<8x128xf32>
    %20 = arith.mulf %19, %18 : vector<8x128xf32>
    %21 = math.exp %20 : vector<8x128xf32>
    %22 = arith.mulf %21, %1 : vector<8x128xf32>
    %23 = arith.addf %13, %22 : vector<8x128xf32>
    %c0_19 = arith.constant 0 : index
    %c0_20 = arith.constant 0 : index
    %24 = vector.load %arg9[%c0_19, %c0_20] : memref<128x256xf32, #tpu.memory_space<vmem>>, vector<128x256xf32>
    %cst_21 = arith.constant dense<0.000000e+00> : vector<8x256xf32>
    %25 = tpu.matmul %23, %24, %cst_21 {dimension_numbers = #tpu.dot_dimension_numbers<[1], [0], [0], [1], [0, 0, 1, 1], [], []>} : vector<8x128xf32>, vector<128x256xf32>, vector<8x256xf32> -> vector<8x256xf32>
    %c0_22 = arith.constant 0 : index
    %c0_23 = arith.constant 0 : index
    %26 = vector.load %arg10[%c0_22, %c0_23] : memref<1x256xf32, #tpu.memory_space<vmem>>, vector<1x256xf32>
    %27 = vector.broadcast %26 : vector<1x256xf32> to vector<8x256xf32>
    %28 = arith.addf %25, %27 : vector<8x256xf32>
    %cst_24 = arith.constant 0.000000e+00 : f32
    %29 = vector.broadcast %cst_24 : f32 to vector<8x256xf32>
    %30 = arith.maximumf %28, %29 : vector<8x256xf32>
    %c0_25 = arith.constant 0 : index
    %c0_26 = arith.constant 0 : index
    %31 = vector.load %arg11[%c0_25, %c0_26] : memref<256x256xf32, #tpu.memory_space<vmem>>, vector<256x256xf32>
    %cst_27 = arith.constant dense<0.000000e+00> : vector<8x256xf32>
    %32 = tpu.matmul %30, %31, %cst_27 {dimension_numbers = #tpu.dot_dimension_numbers<[1], [0], [0], [1], [0, 0, 1, 1], [], []>} : vector<8x256xf32>, vector<256x256xf32>, vector<8x256xf32> -> vector<8x256xf32>
    %c0_28 = arith.constant 0 : index
    %c0_29 = arith.constant 0 : index
    %33 = vector.load %arg12[%c0_28, %c0_29] : memref<1x256xf32, #tpu.memory_space<vmem>>, vector<1x256xf32>
    %34 = vector.broadcast %33 : vector<1x256xf32> to vector<8x256xf32>
    %35 = arith.addf %32, %34 : vector<8x256xf32>
    %36 = arith.negf %35 : vector<8x256xf32>
    %37 = math.exp %36 : vector<8x256xf32>
    %cst_30 = arith.constant 1.000000e+00 : f32
    %38 = vector.broadcast %cst_30 : f32 to vector<8x256xf32>
    %39 = arith.addf %38, %37 : vector<8x256xf32>
    %40 = arith.divf %38, %39 : vector<8x256xf32>
    %c0_31 = arith.constant 0 : index
    %c0_32 = arith.constant 0 : index
    %41 = vector.load %arg13[%c0_31, %c0_32] : memref<8x256xf32, #tpu.memory_space<vmem>>, vector<8x256xf32>
    tpu.vector_store %arg13[%c0_31, %c0_32], %40 {strides = array<i32>} : memref<8x256xf32, #tpu.memory_space<vmem>>, vector<8x256xf32>,
    %c0_33 = arith.constant 0 : index
    %c0_34 = arith.constant 0 : index
    %42 = vector.load %arg14[%c0_33, %c0_34] : memref<8x128xf32, #tpu.memory_space<vmem>>, vector<8x128xf32>
    tpu.vector_store %arg14[%c0_33, %c0_34], %13 {strides = array<i32>} : memref<8x128xf32, #tpu.memory_space<vmem>>, vector<8x128xf32>,
    %c0_35 = arith.constant 0 : index
    %c0_36 = arith.constant 0 : index
    %43 = vector.load %arg15[%c0_35, %c0_36] : memref<8x128xf32, #tpu.memory_space<vmem>>, vector<8x128xf32>
    tpu.vector_store %arg15[%c0_35, %c0_36], %18 {strides = array<i32>} : memref<8x128xf32, #tpu.memory_space<vmem>>, vector<8x128xf32>,
    return
  }
  func.func @transform_0(%arg0: i32) -> (i32, i32) {
    %c0_i32 = arith.constant 0 : i32
    %c0_i32_0 = arith.constant 0 : i32
    return %arg0, %c0_i32 : i32, i32
  }
  func.func @transform_1(%arg0: i32) -> (i32, i32) {
    %c0_i32 = arith.constant 0 : i32
    %c0_i32_0 = arith.constant 0 : i32
    return %arg0, %c0_i32 : i32, i32
  }
  func.func @transform_2(%arg0: i32) -> (i32, i32) {
    %c0_i32 = arith.constant 0 : i32
    %c0_i32_0 = arith.constant 0 : i32
    %c0_i32_1 = arith.constant 0 : i32
    return %c0_i32, %c0_i32_0 : i32, i32
  }
  func.func @transform_3(%arg0: i32) -> (i32, i32) {
    %c0_i32 = arith.constant 0 : i32
    %c0_i32_0 = arith.constant 0 : i32
    %c0_i32_1 = arith.constant 0 : i32
    return %c0_i32, %c0_i32_0 : i32, i32
  }
  func.func @transform_4(%arg0: i32) -> (i32, i32) {
    %c0_i32 = arith.constant 0 : i32
    %c0_i32_0 = arith.constant 0 : i32
    %c0_i32_1 = arith.constant 0 : i32
    return %c0_i32, %c0_i32_0 : i32, i32
  }
  func.func @transform_5(%arg0: i32) -> (i32, i32) {
    %c0_i32 = arith.constant 0 : i32
    %c0_i32_0 = arith.constant 0 : i32
    %c0_i32_1 = arith.constant 0 : i32
    return %c0_i32, %c0_i32_0 : i32, i32
  }
  func.func @transform_6(%arg0: i32) -> (i32, i32) {
    %c0_i32 = arith.constant 0 : i32
    %c0_i32_0 = arith.constant 0 : i32
    %c0_i32_1 = arith.constant 0 : i32
    return %c0_i32, %c0_i32_0 : i32, i32
  }
  func.func @transform_7(%arg0: i32) -> (i32, i32) {
    %c0_i32 = arith.constant 0 : i32
    %c0_i32_0 = arith.constant 0 : i32
    %c0_i32_1 = arith.constant 0 : i32
    return %c0_i32, %c0_i32_0 : i32, i32
  }
  func.func @transform_8(%arg0: i32) -> (i32, i32) {
    %c0_i32 = arith.constant 0 : i32
    %c0_i32_0 = arith.constant 0 : i32
    %c0_i32_1 = arith.constant 0 : i32
    return %c0_i32, %c0_i32_0 : i32, i32
  }
  func.func @transform_9(%arg0: i32) -> (i32, i32) {
    %c0_i32 = arith.constant 0 : i32
    %c0_i32_0 = arith.constant 0 : i32
    %c0_i32_1 = arith.constant 0 : i32
    return %c0_i32, %c0_i32_0 : i32, i32
  }
  func.func @transform_10(%arg0: i32) -> (i32, i32) {
    %c0_i32 = arith.constant 0 : i32
    %c0_i32_0 = arith.constant 0 : i32
    %c0_i32_1 = arith.constant 0 : i32
    return %c0_i32, %c0_i32_0 : i32, i32
  }
  func.func @transform_11(%arg0: i32) -> (i32, i32) {
    %c0_i32 = arith.constant 0 : i32
    %c0_i32_0 = arith.constant 0 : i32
    %c0_i32_1 = arith.constant 0 : i32
    return %c0_i32, %c0_i32_0 : i32, i32
  }
  func.func @transform_12(%arg0: i32) -> (i32, i32) {
    %c0_i32 = arith.constant 0 : i32
    %c0_i32_0 = arith.constant 0 : i32
    return %arg0, %c0_i32 : i32, i32
  }
  func.func @transform_13(%arg0: i32) -> (i32, i32) {
    %c0_i32 = arith.constant 0 : i32
    %c0_i32_0 = arith.constant 0 : i32
    return %arg0, %c0_i32 : i32, i32
  }
  func.func @transform_14(%arg0: i32) -> (i32, i32) {
    %c0_i32 = arith.constant 0 : i32
    %c0_i32_0 = arith.constant 0 : i32
    return %arg0, %c0_i32 : i32, i32
  }
}

module attributes {stable_mosaic.version = 11 : i64} {
  func.func @_vae_kernel(%arg0: i32, %arg1: memref<8x256xf32, #tpu.memory_space<vmem>>, %arg2: memref<8x128xf32, #tpu.memory_space<vmem>>, %arg3: memref<256x256xf32, #tpu.memory_space<vmem>>, %arg4: memref<1x256xf32, #tpu.memory_space<vmem>>, %arg5: memref<256x128xf32, #tpu.memory_space<vmem>>, %arg6: memref<1x128xf32, #tpu.memory_space<vmem>>, %arg7: memref<256x128xf32, #tpu.memory_space<vmem>>, %arg8: memref<1x128xf32, #tpu.memory_space<vmem>>, %arg9: memref<128x256xf32, #tpu.memory_space<vmem>>, %arg10: memref<1x256xf32, #tpu.memory_space<vmem>>, %arg11: memref<256x256xf32, #tpu.memory_space<vmem>>, %arg12: memref<1x256xf32, #tpu.memory_space<vmem>>, %arg13: memref<8x256xf32, #tpu.memory_space<vmem>>, %arg14: memref<8x128xf32, #tpu.memory_space<vmem>>, %arg15: memref<8x128xf32, #tpu.memory_space<vmem>>) attributes {dimension_semantics = [#tpu.dimension_semantics<parallel>], iteration_bounds = array<i64: 2>, scalar_prefetch = 0 : i64, scratch_operands = 0 : i64, tpu.core_type = #tpu.core_type<tc>, window_params = [{transform_indices = @transform_0, window_bounds = array<i64: 8, 256>}, {transform_indices = @transform_1, window_bounds = array<i64: 8, 128>}, {pipeline_mode = #tpu.pipeline_mode<synchronous>, transform_indices = @transform_2, window_bounds = array<i64: 256, 256>}, {pipeline_mode = #tpu.pipeline_mode<synchronous>, transform_indices = @transform_3, window_bounds = array<i64: 1, 256>}, {pipeline_mode = #tpu.pipeline_mode<synchronous>, transform_indices = @transform_4, window_bounds = array<i64: 256, 128>}, {pipeline_mode = #tpu.pipeline_mode<synchronous>, transform_indices = @transform_5, window_bounds = array<i64: 1, 128>}, {pipeline_mode = #tpu.pipeline_mode<synchronous>, transform_indices = @transform_6, window_bounds = array<i64: 256, 128>}, {pipeline_mode = #tpu.pipeline_mode<synchronous>, transform_indices = @transform_7, window_bounds = array<i64: 1, 128>}, {pipeline_mode = #tpu.pipeline_mode<synchronous>, transform_indices = @transform_8, window_bounds = array<i64: 128, 256>}, {pipeline_mode = #tpu.pipeline_mode<synchronous>, transform_indices = @transform_9, window_bounds = array<i64: 1, 256>}, {pipeline_mode = #tpu.pipeline_mode<synchronous>, transform_indices = @transform_10, window_bounds = array<i64: 256, 256>}, {pipeline_mode = #tpu.pipeline_mode<synchronous>, transform_indices = @transform_11, window_bounds = array<i64: 1, 256>}, {transform_indices = @transform_12, window_bounds = array<i64: 8, 256>}, {transform_indices = @transform_13, window_bounds = array<i64: 8, 128>}, {transform_indices = @transform_14, window_bounds = array<i64: 8, 128>}]} {
    %c0 = arith.constant 0 : index
    %c0_0 = arith.constant 0 : index
    %0 = vector.load %arg1[%c0, %c0_0] : memref<8x256xf32, #tpu.memory_space<vmem>>, vector<8x256xf32>
    %c0_1 = arith.constant 0 : index
    %c0_2 = arith.constant 0 : index
    %1 = vector.load %arg2[%c0_1, %c0_2] : memref<8x128xf32, #tpu.memory_space<vmem>>, vector<8x128xf32>
    %c0_3 = arith.constant 0 : index
    %c0_4 = arith.constant 0 : index
    %2 = vector.load %arg3[%c0_3, %c0_4] : memref<256x256xf32, #tpu.memory_space<vmem>>, vector<256x256xf32>
    %cst = arith.constant dense<0.000000e+00> : vector<8x256xf32>
    %3 = tpu.matmul %0, %2, %cst {dimension_numbers = #tpu.dot_dimension_numbers<[1], [0], [0], [1], [0, 0, 1, 1], [], []>} : vector<8x256xf32>, vector<256x256xf32>, vector<8x256xf32> -> vector<8x256xf32>
    %c0_5 = arith.constant 0 : index
    %c0_6 = arith.constant 0 : index
    %4 = vector.load %arg4[%c0_5, %c0_6] : memref<1x256xf32, #tpu.memory_space<vmem>>, vector<1x256xf32>
    %5 = vector.broadcast %4 : vector<1x256xf32> to vector<8x256xf32>
    %6 = arith.addf %3, %5 : vector<8x256xf32>
    %cst_7 = arith.constant 0.000000e+00 : f32
    %7 = vector.broadcast %cst_7 : f32 to vector<8x256xf32>
    %8 = arith.maximumf %6, %7 : vector<8x256xf32>
    %c0_8 = arith.constant 0 : index
    %c0_9 = arith.constant 0 : index
    %9 = vector.load %arg5[%c0_8, %c0_9] : memref<256x128xf32, #tpu.memory_space<vmem>>, vector<256x128xf32>
    %cst_10 = arith.constant dense<0.000000e+00> : vector<8x128xf32>
    %10 = tpu.matmul %8, %9, %cst_10 {dimension_numbers = #tpu.dot_dimension_numbers<[1], [0], [0], [1], [0, 0, 1, 1], [], []>} : vector<8x256xf32>, vector<256x128xf32>, vector<8x128xf32> -> vector<8x128xf32>
    %c0_11 = arith.constant 0 : index
    %c0_12 = arith.constant 0 : index
    %11 = vector.load %arg6[%c0_11, %c0_12] : memref<1x128xf32, #tpu.memory_space<vmem>>, vector<1x128xf32>
    %12 = vector.broadcast %11 : vector<1x128xf32> to vector<8x128xf32>
    %13 = arith.addf %10, %12 : vector<8x128xf32>
    %c0_13 = arith.constant 0 : index
    %c0_14 = arith.constant 0 : index
    %14 = vector.load %arg7[%c0_13, %c0_14] : memref<256x128xf32, #tpu.memory_space<vmem>>, vector<256x128xf32>
    %cst_15 = arith.constant dense<0.000000e+00> : vector<8x128xf32>
    %15 = tpu.matmul %8, %14, %cst_15 {dimension_numbers = #tpu.dot_dimension_numbers<[1], [0], [0], [1], [0, 0, 1, 1], [], []>} : vector<8x256xf32>, vector<256x128xf32>, vector<8x128xf32> -> vector<8x128xf32>
    %c0_16 = arith.constant 0 : index
    %c0_17 = arith.constant 0 : index
    %16 = vector.load %arg8[%c0_16, %c0_17] : memref<1x128xf32, #tpu.memory_space<vmem>>, vector<1x128xf32>
    %17 = vector.broadcast %16 : vector<1x128xf32> to vector<8x128xf32>
    %18 = arith.addf %15, %17 : vector<8x128xf32>
    %cst_18 = arith.constant 5.000000e-01 : f32
    %19 = vector.broadcast %cst_18 : f32 to vector<8x128xf32>
    %20 = arith.mulf %19, %18 : vector<8x128xf32>
    %21 = math.exp %20 : vector<8x128xf32>
    %22 = arith.mulf %21, %1 : vector<8x128xf32>
    %23 = arith.addf %13, %22 : vector<8x128xf32>
    %c0_19 = arith.constant 0 : index
    %c0_20 = arith.constant 0 : index
    %24 = vector.load %arg9[%c0_19, %c0_20] : memref<128x256xf32, #tpu.memory_space<vmem>>, vector<128x256xf32>
    %cst_21 = arith.constant dense<0.000000e+00> : vector<8x256xf32>
    %25 = tpu.matmul %23, %24, %cst_21 {dimension_numbers = #tpu.dot_dimension_numbers<[1], [0], [0], [1], [0, 0, 1, 1], [], []>} : vector<8x128xf32>, vector<128x256xf32>, vector<8x256xf32> -> vector<8x256xf32>
    %c0_22 = arith.constant 0 : index
    %c0_23 = arith.constant 0 : index
    %26 = vector.load %arg10[%c0_22, %c0_23] : memref<1x256xf32, #tpu.memory_space<vmem>>, vector<1x256xf32>
    %27 = vector.broadcast %26 : vector<1x256xf32> to vector<8x256xf32>
    %28 = arith.addf %25, %27 : vector<8x256xf32>
    %cst_24 = arith.constant 0.000000e+00 : f32
    %29 = vector.broadcast %cst_24 : f32 to vector<8x256xf32>
    %30 = arith.maximumf %28, %29 : vector<8x256xf32>
    %c0_25 = arith.constant 0 : index
    %c0_26 = arith.constant 0 : index
    %31 = vector.load %arg11[%c0_25, %c0_26] : memref<256x256xf32, #tpu.memory_space<vmem>>, vector<256x256xf32>
    %cst_27 = arith.constant dense<0.000000e+00> : vector<8x256xf32>
    %32 = tpu.matmul %30, %31, %cst_27 {dimension_numbers = #tpu.dot_dimension_numbers<[1], [0], [0], [1], [0, 0, 1, 1], [], []>} : vector<8x256xf32>, vector<256x256xf32>, vector<8x256xf32> -> vector<8x256xf32>
    %c0_28 = arith.constant 0 : index
    %c0_29 = arith.constant 0 : index
    %33 = vector.load %arg12[%c0_28, %c0_29] : memref<1x256xf32, #tpu.memory_space<vmem>>, vector<1x256xf32>
    %34 = vector.broadcast %33 : vector<1x256xf32> to vector<8x256xf32>
    %35 = arith.addf %32, %34 : vector<8x256xf32>
    %36 = arith.negf %35 : vector<8x256xf32>
    %37 = math.exp %36 : vector<8x256xf32>
    %cst_30 = arith.constant 1.000000e+00 : f32
    %38 = vector.broadcast %cst_30 : f32 to vector<8x256xf32>
    %39 = arith.addf %38, %37 : vector<8x256xf32>
    %40 = arith.divf %38, %39 : vector<8x256xf32>
    %c0_31 = arith.constant 0 : index
    %c0_32 = arith.constant 0 : index
    %41 = vector.load %arg13[%c0_31, %c0_32] : memref<8x256xf32, #tpu.memory_space<vmem>>, vector<8x256xf32>
    tpu.vector_store %arg13[%c0_31, %c0_32], %40 {strides = array<i32>} : memref<8x256xf32, #tpu.memory_space<vmem>>, vector<8x256xf32>,
    %c0_33 = arith.constant 0 : index
    %c0_34 = arith.constant 0 : index
    %42 = vector.load %arg14[%c0_33, %c0_34] : memref<8x128xf32, #tpu.memory_space<vmem>>, vector<8x128xf32>
    tpu.vector_store %arg14[%c0_33, %c0_34], %13 {strides = array<i32>} : memref<8x128xf32, #tpu.memory_space<vmem>>, vector<8x128xf32>,
    %c0_35 = arith.constant 0 : index
    %c0_36 = arith.constant 0 : index
    %43 = vector.load %arg15[%c0_35, %c0_36] : memref<8x128xf32, #tpu.memory_space<vmem>>, vector<8x128xf32>
    tpu.vector_store %arg15[%c0_35, %c0_36], %18 {strides = array<i32>} : memref<8x128xf32, #tpu.memory_space<vmem>>, vector<8x128xf32>,
    return
  }
  func.func @transform_0(%arg0: i32) -> (i32, i32) {
    %c0_i32 = arith.constant 0 : i32
    %c0_i32_0 = arith.constant 0 : i32
    return %arg0, %c0_i32 : i32, i32
  }
  func.func @transform_1(%arg0: i32) -> (i32, i32) {
    %c0_i32 = arith.constant 0 : i32
    %c0_i32_0 = arith.constant 0 : i32
    return %arg0, %c0_i32 : i32, i32
  }
  func.func @transform_2(%arg0: i32) -> (i32, i32) {
    %c0_i32 = arith.constant 0 : i32
    %c0_i32_0 = arith.constant 0 : i32
    %c0_i32_1 = arith.constant 0 : i32
    return %c0_i32, %c0_i32_0 : i32, i32
  }
  func.func @transform_3(%arg0: i32) -> (i32, i32) {
    %c0_i32 = arith.constant 0 : i32
    %c0_i32_0 = arith.constant 0 : i32
    %c0_i32_1 = arith.constant 0 : i32
    return %c0_i32, %c0_i32_0 : i32, i32
  }
  func.func @transform_4(%arg0: i32) -> (i32, i32) {
    %c0_i32 = arith.constant 0 : i32
    %c0_i32_0 = arith.constant 0 : i32
    %c0_i32_1 = arith.constant 0 : i32
    return %c0_i32, %c0_i32_0 : i32, i32
  }
  func.func @transform_5(%arg0: i32) -> (i32, i32) {
    %c0_i32 = arith.constant 0 : i32
    %c0_i32_0 = arith.constant 0 : i32
    %c0_i32_1 = arith.constant 0 : i32
    return %c0_i32, %c0_i32_0 : i32, i32
  }
  func.func @transform_6(%arg0: i32) -> (i32, i32) {
    %c0_i32 = arith.constant 0 : i32
    %c0_i32_0 = arith.constant 0 : i32
    %c0_i32_1 = arith.constant 0 : i32
    return %c0_i32, %c0_i32_0 : i32, i32
  }
  func.func @transform_7(%arg0: i32) -> (i32, i32) {
    %c0_i32 = arith.constant 0 : i32
    %c0_i32_0 = arith.constant 0 : i32
    %c0_i32_1 = arith.constant 0 : i32
    return %c0_i32, %c0_i32_0 : i32, i32
  }
  func.func @transform_8(%arg0: i32) -> (i32, i32) {
    %c0_i32 = arith.constant 0 : i32
    %c0_i32_0 = arith.constant 0 : i32
    %c0_i32_1 = arith.constant 0 : i32
    return %c0_i32, %c0_i32_0 : i32, i32
  }
  func.func @transform_9(%arg0: i32) -> (i32, i32) {
    %c0_i32 = arith.constant 0 : i32
    %c0_i32_0 = arith.constant 0 : i32
    %c0_i32_1 = arith.constant 0 : i32
    return %c0_i32, %c0_i32_0 : i32, i32
  }
  func.func @transform_10(%arg0: i32) -> (i32, i32) {
    %c0_i32 = arith.constant 0 : i32
    %c0_i32_0 = arith.constant 0 : i32
    %c0_i32_1 = arith.constant 0 : i32
    return %c0_i32, %c0_i32_0 : i32, i32
  }
  func.func @transform_11(%arg0: i32) -> (i32, i32) {
    %c0_i32 = arith.constant 0 : i32
    %c0_i32_0 = arith.constant 0 : i32
    %c0_i32_1 = arith.constant 0 : i32
    return %c0_i32, %c0_i32_0 : i32, i32
  }
  func.func @transform_12(%arg0: i32) -> (i32, i32) {
    %c0_i32 = arith.constant 0 : i32
    %c0_i32_0 = arith.constant 0 : i32
    return %arg0, %c0_i32 : i32, i32
  }
  func.func @transform_13(%arg0: i32) -> (i32, i32) {
    %c0_i32 = arith.constant 0 : i32
    %c0_i32_0 = arith.constant 0 : i32
    return %arg0, %c0_i32 : i32, i32
  }
  func.func @transform_14(%arg0: i32) -> (i32, i32) {
    %c0_i32 = arith.constant 0 : i32
    %c0_i32_0 = arith.constant 0 : i32
    return %arg0, %c0_i32 : i32, i32
  }
}

</mosaic_0001>

<bundles_post_ra>
// kernel: tpu_custom_call.1
= control target key start
LH: loop header
LB: loop body
LE: loop exit
PB: predicated region body
PF: predicated region fallthrough
CT: control target
= control target key end

     0   :  { %s2870_s0 = inlined_call_operand.hbm [shape: f32[16,256], index: 0, kind: input, shape index: {}]   ;;  %s2871_s1 = inlined_call_operand.hbm [shape: f32[16,128], index: 1, kind: input, shape index: {}]   ;;  %s2872_s2 = inlined_call_operand.hbm [shape: f32[256,256], index: 2, kind: input, shape index: {}]   ;;  %s2873_s3 = inlined_call_operand.vmem [shape: f32[1,256], index: 3, kind: input, shape index: {}]   ;;  %s2874_s4 = inlined_call_operand.hbm [shape: f32[256,128], index: 4, kind: input, shape index: {}]   ;;  %s2875_s5 = inlined_call_operand.vmem [shape: f32[1,128], index: 5, kind: input, shape index: {}]   ;;  %s2876_s6 = inlined_call_operand.hbm [shape: f32[256,128], index: 6, kind: input, shape index: {}]   ;;  %s2877_s7 = inlined_call_operand.vmem [shape: f32[1,128], index: 7, kind: input, shape index: {}]   ;;  %s2878_s8 = inlined_call_operand.hbm [shape: f32[128,256], index: 8, kind: input, shape index: {}]   ;;  %s2879_s9 = inlined_call_operand.vmem [shape: f32[1,256], index: 9, kind: input, shape index: {}]   ;;  %s2880_s10 = inlined_call_operand.hbm [shape: f32[256,256], index: 10, kind: input, shape index: {}]   ;;  %s2881_s11 = inlined_call_operand.vmem [shape: f32[1,256], index: 11, kind: input, shape index: {}]   ;;  %s2882_s12 = inlined_call_operand.hbm [shape: f32[16,256], index: 12, kind: output, shape index: {0}]   ;;  %s2883_s13 = inlined_call_operand.hbm [shape: f32[16,128], index: 13, kind: output, shape index: {1}]   ;;  %s2884_s14 = inlined_call_operand.hbm [shape: f32[16,128], index: 14, kind: output, shape index: {2}]  }
   0x1   :  { %2898 = sst [smem:[#allocation25_spill]] %s2870_s0 }
   0x2   :  { %2899 = sst [smem:[#allocation26_spill]] %s2872_s2 }
   0x3   :  { %2900 = sst [smem:[#allocation27_spill]] %s2874_s4 }
   0x4   :  { %2901 = sst [smem:[#allocation28_spill]] %s2876_s6 }
   0x5   :  { %2902 = sst [smem:[#allocation29_spill]] %s2877_s7 }
   0x6   :  { %2903 = sst [smem:[#allocation30_spill]] %s2879_s9 }
   0x7   :  { %2904 = sst [smem:[#allocation31_spill]] %s2881_s11 }
   0x8   :  { %2905 = sst [smem:[#allocation32_spill]] %s2882_s12 }
   0x9   :  { %2906 = sst [smem:[#allocation33_spill]] %s2883_s13 }
   0xa   :  { %2907 = sst [smem:[#allocation34_spill]] %s2884_s14 }
   0xb   :  { %20 = vsyncpa [#allocation3], 0 }
   0xc   :  { %22 = vsyncpa [#allocation3 + $0x1], 0 }
   0xd   :  { %23 = vsyncpa [#allocation6], 0 }
   0xe   :  { %25 = vsyncpa [#allocation6 + $0x1], 0 }
   0xf   :  { %26 = vsyncpa [#allocation9], 0 }
  0x10   :  { %27 = vsyncpa [#allocation12], 0 }
  0x11   :  { %28 = vsyncpa [#allocation4], 0 }
  0x12   :  { %30 = vsyncpa [#allocation4 + $0x1], 0 }
  0x13   :  { %31 = vsyncpa [#allocation16], 0 }
  0x14   :  { %33 = vsyncpa [#allocation16 + $0x1], 0  ;;  %s2412_s29 = smov 0   ;;  %s2414_s30 = smov 0  }
  0x15   :  { %s2416_s15 = smov 0   ;;  %s2418_s16 = smov 0  }
  0x16 LB: > { %s2322_s17 = smov [#allocation7]   ;;  %s2433_s19 = sadd.s32 4294967295, %s2320_s16   ;;  %s2320_s16 = sphi %s2418_s16, %s2946_s16   ;;  %s2316_s15 = sphi %s2416_s15, %s2945_s15   ;;  %s2312_s30 = sphi %s2414_s30, %s2944_s30   ;;  %s2308_s29 = sphi %s2412_s29, %s2943_s29  }
  0x17   : > { %s396_s18 = sshll.u32 %s2322_s17, 4  ;;  %p1519_p0 = scmp.ge.s32.totalorder %s2320_s16, 1  ;;  %s2438_s18 = int_to_ptr.vmem [resolvable:$true] %s396_s18 }
  0x18   : > { %p2890_p1 = scmp.eq.s32.totalorder %s2433_s19, 0  ;;  %p384_p2 = scmp.lt.s32.totalorder %s2320_s16, 3 }
  0x19   : > { %s2323_s21 = smov [#allocation8]   ;;  %s2324_s24 = smov [#allocation11]  }
  0x1a   : > { %p2440_p3 = pnand %p1519_p0, %p384_p2  ;;  %s412_s22 = sshll.u32 %s2323_s21, 4  ;;  %s2453_s22 = int_to_ptr.vmem [resolvable:$true] %s412_s22 }
  0x1b   : > { %s2455_s25 = sshll.u32 %s2324_s24, 4  ;;  %s2910_s2 = sld [smem:[#allocation26_spill]]  ;;  %s445_s25 = int_to_ptr.vmem [resolvable:$true] %s2455_s25 }
  0x1c   : > { %s2908_s20 = scalar_select %p2440_p3, 1, 0 }
  0x1d   : > { %p1881_p5 = pneg %p2440_p3 }
  0x1f   : > { %p2449_p6 = pnand %p1881_p5, %p2890_p1 }
  0x21   : > { %s1978_s28 = scalar_lea.hbm %s2910_s2, 8192  ;;  %p2465_p8 = pneg %p2449_p6 }
  0x22   : > { %p1979_p7 = scmp.ne.s32.totalorder %s2910_s2, %s1978_s28  ;;  %p1985_p11 = scmp.lt.u32.totalorder %s1978_s28, %s2910_s2 }
  0x24   : > { %p1981_p9 = pnand %p2465_p8, %p1979_p7 }
  0x26   : > { %p1982_p10 = pneg %p1981_p9 }
  0x28   : > { %p1987_p12 = pnand %p1985_p11, %p1982_p10 }
  0x2a   : > { %1990 = shalt.err (!%p1987_p12)
}
  0x2b   : > { %s1991_s12 = scalar_lea.vmem %s2438_s18, 8192  ;;  %p1999_p5 = scmp.lt.s32.totalorder %s2438_s18, %s2438_s18 }
  0x2c   : > { %p1992_p13 = scmp.ne.s32.totalorder %s2438_s18, %s1991_s12  ;;  %p2000_p4 = scmp.lt.s32.totalorder %s1991_s12, %s1991_s12 }
  0x2e   : > { %p1994_p0 = pnand %p1992_p13, %p2465_p8  ;;  %p2001_p7 = por %p2000_p4, %p1999_p5 }
  0x30   : > { %p1995_p2 = pneg %p1994_p0 }
  0x32   : > { %p2002_p9 = pnand %p2001_p7, %p1995_p2 }
  0x34   : > { %2005 = shalt.err (!%p2002_p9)
}
  0x35   : > { %s2888_s26 = smov 256   ;;  %s2326_s11 = smov 16  }
  0x36   : > { %1884 = dma.hbm_to_vmem [thread:$0]  (!%p2449_p6), %s2910_s2, 8192, %s2438_s18, [#allocation6], %s2888_s26, %s2888_s26, %s2326_s11  }
  0x37   : > { %s2912_s4 = sld [smem:[#allocation27_spill]] }
  0x3d   : > { %s2006_s12 = scalar_lea.hbm %s2912_s4, 4096 }
  0x3e   : > { %p2007_p4 = scmp.ne.s32.totalorder %s2912_s4, %s2006_s12  ;;  %p2013_p12 = scmp.lt.u32.totalorder %s2006_s12, %s2912_s4 }
  0x40   : > { %p2009_p10 = pnand %p2007_p4, %p2465_p8 }
  0x42   : > { %p2010_p11 = pneg %p2009_p10 }
  0x44   : > { %p2015_p13 = pnand %p2013_p12, %p2010_p11 }
  0x46   : > { %2018 = shalt.err (!%p2015_p13)
}
  0x47   : > { %s2019_s18 = scalar_lea.vmem %s2453_s22, 4096  ;;  %p2027_p7 = scmp.lt.s32.totalorder %s2453_s22, %s2453_s22 }
  0x48   : > { %p2020_p0 = scmp.ne.s32.totalorder %s2453_s22, %s2019_s18  ;;  %p2028_p9 = scmp.lt.s32.totalorder %s2019_s18, %s2019_s18 }
  0x4a   : > { %p2022_p2 = pnand %p2020_p0, %p2465_p8  ;;  %p2029_p4 = por %p2028_p9, %p2027_p7 }
  0x4c   : > { %p2023_p5 = pneg %p2022_p2 }
  0x4e   : > { %p2030_p10 = pnand %p2029_p4, %p2023_p5 }
  0x50   : > { %2033 = shalt.err (!%p2030_p10)
}
  0x51   : > { %s2892_s13 = smov 128   ;;  %s2893_s7 = smov 8  }
  0x52   : > { %1887 = dma.hbm_to_vmem [thread:$0]  (!%p2449_p6), %s2912_s4, 4096, %s2453_s22, [#allocation9], %s2892_s13, %s2892_s13, %s2893_s7  }
  0x53   : > { %s2034_s17 = scalar_lea.hbm %s2878_s8, 4096 }
  0x54   : > { %p2035_p11 = scmp.ne.s32.totalorder %s2878_s8, %s2034_s17  ;;  %p2041_p0 = scmp.lt.u32.totalorder %s2034_s17, %s2878_s8 }
  0x56   : > { %p2037_p12 = pnand %p2035_p11, %p2465_p8 }
  0x58   : > { %p2038_p13 = pneg %p2037_p12 }
  0x5a   : > { %p2043_p2 = pnand %p2041_p0, %p2038_p13 }
  0x5c   : > { %2046 = shalt.err (!%p2043_p2)
}
  0x5d   : > { %s2047_s9 = scalar_lea.vmem %s445_s25, 4096  ;;  %p2055_p4 = scmp.lt.s32.totalorder %s445_s25, %s445_s25 }
  0x5e   : > { %p2048_p5 = scmp.ne.s32.totalorder %s445_s25, %s2047_s9  ;;  %p2056_p10 = scmp.lt.s32.totalorder %s2047_s9, %s2047_s9 }
  0x60   : > { %p2050_p7 = pnand %p2048_p5, %p2465_p8  ;;  %p2057_p1 = por %p2056_p10, %p2055_p4 }
  0x62   : > { %p2051_p9 = pneg %p2050_p7 }
  0x64   : > { %p2058_p3 = pnand %p2057_p1, %p2051_p9 }
  0x66   : > { %2061 = shalt.err (!%p2058_p3)
}
  0x67   : > { %s2913_s22 = smov 256   ;;  %s2329_s27 = smov [#allocation10]  }
  0x68   : > { %1893 = dma.hbm_to_vmem [thread:$0]  (!%p2449_p6), %s2878_s8, 4096, %s445_s25, [#allocation12], %s2913_s22, %s2913_s22, %s2326_s11  }
  0x69   : > { %s428_s28 = sshll.u32 %s2329_s27, 4  ;;  %s2330_s17 = smov [#allocation13]   ;;  %s429_s28 = int_to_ptr.vmem [resolvable:$true] %s428_s28 }
  0x6a   : > { %s460_s24 = sshll.u32 %s2330_s17, 4  ;;  %s2914_s6 = sld [smem:[#allocation28_spill]]  ;;  %s461_s24 = int_to_ptr.vmem [resolvable:$true] %s460_s24 }
  0x70   : > { %s2062_s9 = scalar_lea.hbm %s2914_s6, 4096 }
  0x71   : > { %p2063_p1 = scmp.ne.s32.totalorder %s2914_s6, %s2062_s9  ;;  %p2069_p12 = scmp.lt.u32.totalorder %s2062_s9, %s2914_s6 }
  0x73   : > { %p2065_p3 = pnand %p2063_p1, %p2465_p8 }
  0x75   : > { %p2066_p11 = pneg %p2065_p3 }
  0x77   : > { %p2071_p13 = pnand %p2069_p12, %p2066_p11 }
  0x79   : > { %2074 = shalt.err (!%p2071_p13)
}
  0x7a   : > { %s2075_s25 = scalar_lea.vmem %s429_s28, 4096  ;;  %p2083_p7 = scmp.lt.s32.totalorder %s429_s28, %s429_s28 }
  0x7b   : > { %p2076_p0 = scmp.ne.s32.totalorder %s429_s28, %s2075_s25  ;;  %p2084_p9 = scmp.lt.s32.totalorder %s2075_s25, %s2075_s25 }
  0x7d   : > { %p2078_p2 = pnand %p2076_p0, %p2465_p8  ;;  %p2085_p4 = por %p2084_p9, %p2083_p7 }
  0x7f   : > { %p2079_p5 = pneg %p2078_p2 }
  0x81   : > { %p2086_p10 = pnand %p2085_p4, %p2079_p5 }
  0x83   : > { %2089 = shalt.err (!%p2086_p10)
}
  0x84   : > { %s2915_s13 = smov 8   ;;  %s2916_s7 = smov 128  }
  0x85   : > { %1890 = dma.hbm_to_vmem [thread:$0]  (!%p2449_p6), %s2914_s6, 4096, %s429_s28, [#allocation9], %s2916_s7, %s2916_s7, %s2915_s13  }
  0x86   : > { %s2090_s12 = scalar_lea.hbm %s2880_s10, 8192 }
  0x87   : > { %p2091_p1 = scmp.ne.s32.totalorder %s2880_s10, %s2090_s12  ;;  %p2097_p12 = scmp.lt.u32.totalorder %s2090_s12, %s2880_s10 }
  0x89   : > { %p2093_p3 = pnand %p2091_p1, %p2465_p8 }
  0x8b   : > { %p2094_p11 = pneg %p2093_p3 }
  0x8d   : > { %p2099_p13 = pnand %p2097_p12, %p2094_p11 }
  0x8f   : > { %2102 = shalt.err (!%p2099_p13)
}
  0x90   : > { %s2103_s2 = scalar_lea.vmem %s461_s24, 8192  ;;  %p2111_p7 = scmp.lt.s32.totalorder %s461_s24, %s461_s24 }
  0x91   : > { %p2104_p0 = scmp.ne.s32.totalorder %s461_s24, %s2103_s2  ;;  %p2112_p9 = scmp.lt.s32.totalorder %s2103_s2, %s2103_s2 }
  0x93   : > { %p2106_p2 = pnand %p2104_p0, %p2465_p8  ;;  %p2113_p4 = por %p2112_p9, %p2111_p7 }
  0x95   : > { %p2107_p5 = pneg %p2106_p2 }
  0x97   : > { %p2114_p10 = pnand %p2113_p4, %p2107_p5 }
  0x99   : > { %2117 = shalt.err (!%p2114_p10)
}
  0x9a   : > { %1896 = dma.hbm_to_vmem [thread:$0]  (!%p2449_p6), %s2880_s10, 8192, %s461_s24, [#allocation12], %s2913_s22, %s2913_s22, %s2326_s11  }
  0x9b   : > { %s2894_s23 = sadd.s32 4294967294, %s2320_s16   ;;  %s2581_s21 = sadd.s32 1, %s2320_s16  }
  0x9c   : > { %s46_s7 = sadd.s32 1, %s2316_s15  ;;  %s43_s14 = ssub.s32 %s2320_s16, %s2581_s21 }
  0x9d   : > { %p53_p8 = scmp.ne.s32.totalorder %s2316_s15, %s2312_s30  ;;  %p44_p1 = scmp.eq.s32.totalorder %s43_s14, 0 }
  0x9e   : > { %p54_p3 = scmp.eq.s32.totalorder %s2320_s16, 0  ;;  %p59_p11 = scmp.ne.s32.totalorder %s2312_s30, %s2308_s29 }
  0x9f   : > { %p319_p12 = scmp.eq.s32.totalorder %s2433_s19, 1  ;;  %p2917_p0 = scmp.eq.s32.totalorder %s2433_s19, 0 }
  0xa0   : > { %s2593_s27 = scalar_select %p44_p1, %s2316_s15, %s46_s7  }
  0xa1   : > { %p55_p13 = por %p54_p3, %p53_p8  ;;  %p2597_p2 = por %p2917_p0, %p59_p11 }
  0xa2   : > { %p2601_p6 = por %p319_p12, %p53_p8  ;;  %p325_p5 = scmp.eq.s32.totalorder %s2894_s23, 1 }
  0xa3   : > { %s2918_s11 = scalar_select %p2597_p2, 1, 0 }
  0xa4   : > { %s2919_s22 = scalar_select %p2601_p6, 1, 0 }
  0xa5   : > { %p1919_p7 = scmp.lt.s32.totalorder %s2320_s16, 2  ;;  %s2609_s24 = sand.u32 1, %s2316_s15  }
  0xa6   : > { %p2611_p9 = por %p325_p5, %p59_p11  ;;  %s1526_s12 = sshll.u32 %s2609_s24, 4 }
  0xa7   : > { %s1555_s18 = sshll.u32 %s2320_s16, 8  ;;  %s2921_s0 = sld [smem:[#allocation25_spill]] }
  0xa8   : > { %s2920_s17 = scalar_select %p2611_p9, 1, 0 }
  0xa9   : > { %s481_s2 = scalar_lea.vmem [#allocation2], %s1526_s12  ;;  %p2622_p4 = pnand %p1919_p7, %p55_p13 }
  0xaa   : > { %s489_s28 = sshll.u32 %s481_s2, 4  ;;  %s478_s14 = scalar_lea.sflag [#allocation3], %s2609_s24  ;;  %s2626_s28 = int_to_ptr.vmem [resolvable:$true] %s489_s28 }
  0xab   : > { %p2120_p8 = pneg %p2622_p4 }
  0xad   : > { %s2620_s25 = scalar_lea.hbm %s2921_s0, %s1555_s18  ;;  %s2123_s9 = scalar_lea.hbm %s2921_s0, 512 }
  0xae   : > { %s2118_s23 = scalar_lea.hbm %s2620_s25, 256  ;;  %p2124_p11 = scmp.lt.u32.totalorder %s2620_s25, %s2921_s0 }
  0xaf   : > { %p2119_p10 = scmp.ne.s32.totalorder %s2620_s25, %s2118_s23  ;;  %p2125_p12 = scmp.lt.u32.totalorder %s2123_s9, %s2118_s23 }
  0xb0   : > { %p2127_p0 = scmp.lt.u32.totalorder %s2118_s23, %s2620_s25 }
  0xb1   : > { %p2121_p1 = pnand %p2120_p8, %p2119_p10  ;;  %p2126_p13 = por %p2125_p12, %p2124_p11 }
  0xb3   : > { %p2122_p3 = pneg %p2121_p1  ;;  %p2128_p5 = por %p2127_p0, %p2126_p13 }
  0xb5   : > { %p2129_p7 = pnand %p2128_p5, %p2122_p3 }
  0xb7   : > { %2132 = shalt.err (!%p2129_p7)
}
  0xb8   : > { %s2133_s7 = scalar_lea.vmem %s2626_s28, 256  ;;  %s2331_s12 = smov [#allocation2]  }
  0xb9   : > { %p2134_p10 = scmp.ne.s32.totalorder %s2626_s28, %s2133_s7  ;;  %s2138_s18 = sshll.u32 %s2331_s12, 4  ;;  %s2139_s18 = int_to_ptr.vmem [resolvable:$false] %s2138_s18 }
  0xba   : > { %s2140_s26 = scalar_lea.vmem %s2139_s18, 512  ;;  %p2141_p6 = scmp.lt.s32.totalorder %s2626_s28, %s2139_s18 }
  0xbb   : > { %p2136_p1 = pnand %p2134_p10, %p2120_p8  ;;  %p2142_p11 = scmp.lt.s32.totalorder %s2140_s26, %s2133_s7 }
  0xbd   : > { %p2137_p9 = pneg %p2136_p1  ;;  %p2143_p12 = por %p2142_p11, %p2141_p6 }
  0xbf   : > { %p2144_p13 = pnand %p2143_p12, %p2137_p9 }
  0xc1   : > { %2147 = shalt.err (!%p2144_p13)
}
  0xc2   : > { %1900 = dma.hbm_to_vmem [thread:$0]  (!%p2622_p4), %s2620_s25, 256, %s2626_s28, %s478_s14  }
  0xc3   : > { %s1529_s23 = sshll.u32 %s2609_s24, 3  ;;  %s1530_s9 = sshll.u32 %s2320_s16, 7 }
  0xc4   : > { %s2660_s0 = scalar_lea.hbm %s2871_s1, %s1530_s9  ;;  %s500_s7 = scalar_lea.vmem [#allocation5], %s1529_s23 }
  0xc5   : > { %s507_s18 = sshll.u32 %s500_s7, 4  ;;  %s2923_s26 = sand.u32 1, %s2320_s16   ;;  %s508_s18 = int_to_ptr.vmem [resolvable:$true] %s507_s18 }
  0xc6   : > { %s497_s4 = scalar_lea.sflag [#allocation6], %s2923_s26  ;;  %s2148_s6 = scalar_lea.hbm %s2660_s0, 128 }
  0xc7   : > { %p2149_p6 = scmp.ne.s32.totalorder %s2660_s0, %s2148_s6  ;;  %s2153_s28 = scalar_lea.hbm %s2871_s1, 256 }
  0xc8   : > { %p2154_p0 = scmp.lt.u32.totalorder %s2660_s0, %s2871_s1  ;;  %p2155_p5 = scmp.lt.u32.totalorder %s2153_s28, %s2148_s6 }
  0xc9   : > { %p2151_p9 = pnand %p2149_p6, %p2120_p8  ;;  %p2157_p10 = scmp.lt.u32.totalorder %s2148_s6, %s2660_s0 }
  0xca   : > { %p2156_p7 = por %p2155_p5, %p2154_p0 }
  0xcb   : > { %p2152_p3 = pneg %p2151_p9 }
  0xcc   : > { %p2158_p1 = por %p2157_p10, %p2156_p7 }
  0xce   : > { %p2159_p11 = pnand %p2158_p1, %p2152_p3 }
  0xd0   : > { %2162 = shalt.err (!%p2159_p11)
}
  0xd1   : > { %s2163_s23 = scalar_lea.vmem %s508_s18, 128  ;;  %s2332_s2 = smov [#allocation5]  }
  0xd2   : > { %p2164_p12 = scmp.ne.s32.totalorder %s508_s18, %s2163_s23  ;;  %s2168_s12 = sshll.u32 %s2332_s2, 4  ;;  %s2169_s12 = int_to_ptr.vmem [resolvable:$false] %s2168_s12 }
  0xd3   : > { %s2170_s7 = scalar_lea.vmem %s2169_s12, 256  ;;  %p2171_p9 = scmp.lt.s32.totalorder %s508_s18, %s2169_s12 }
  0xd4   : > { %p2166_p13 = pnand %p2164_p12, %p2120_p8  ;;  %p2172_p2 = scmp.lt.s32.totalorder %s2170_s7, %s2163_s23 }
  0xd6   : > { %p2167_p6 = pneg %p2166_p13  ;;  %p2173_p0 = por %p2172_p2, %p2171_p9 }
  0xd8   : > { %p2174_p5 = pnand %p2173_p0, %p2167_p6 }
  0xda   : > { %2177 = shalt.err (!%p2174_p5)
}
  0xdb   : > { %1903 = dma.hbm_to_vmem [thread:$0]  (!%p2622_p4), %s2660_s0, 128, %s508_s18, %s497_s4  }
  0xdc   : > { %p2924_p3 = scmp.ne.s32.totalorder %s2908_s20, 0 }
  0xdd   : > { %s2686_s6 = sand.u32 (!%p2924_p3), 1, %s2312_s30   ;;  %p2925_p2 = scmp.ne.s32.totalorder (!%p2924_p3), %s2918_s11, 0 }
  0xde   : > { %516 = sbr.rel (%p2924_p3) target bundleno = 1268 (0x4f4), region = 68  ;;  %s2897_s26 = sshll.u32 (!%p2924_p3), %s2686_s6, 4 }
  0xdf   : > { %s519_s24 = scalar_lea.sflag (!%p2924_p3), [#allocation3], %s2686_s6  ;;  %s2692_s25 = scalar_lea.vmem (!%p2924_p3), [#allocation2], %s2897_s26 }
  0xe5   : > { %2279 = dma.done.wait (%p2925_p2), %s519_s24, 256  }
  0xe6   : > { %2281 = vsyncadd (%p2925_p2), %s519_s24, 4294967040  ;;  %s527_s0 = sand.u32 1, %s2433_s19   ;;  %s2700_s4 = sshll.u32 %s2686_s6, 3 }
  0xe7   : > { %s528_s20 = scalar_lea.sflag [#allocation6], %s527_s0  ;;  %s531_s13 = scalar_lea.vmem [#allocation5], %s2700_s4 }
  0xe8   : > { %2283 = dma.done.wait (%p2925_p2), %s528_s20, 128  }
  0xe9   : > { %2285 = vsyncadd (%p2925_p2), %s528_s20, 4294967168  ;;  %p2926_p4 = scmp.eq.s32.totalorder %s2433_s19, 0 }
  0xeb   : > { %2287 = dma.done.wait (%p2926_p4), [#allocation6], 8192   ;;  %p2927_p8 = pmov %p2926_p4 }
  0xec   : > { %p2928_p7 = pmov %p2926_p4 }
  0xed   : > { %2289 = vsyncadd (%p2927_p8), [#allocation6], 4294959104 }
  0xee   : > { %2291 = dma.done.wait (%p2928_p7), [#allocation9], 8192   ;;  %p2929_p10 = pmov %p2926_p4 }
  0xef   : > { %p2930_p1 = pmov %p2926_p4 }
  0xf0   : > { %2293 = vsyncadd (%p2929_p10), [#allocation9], 4294959104 }
  0xf1   : > { %2295 = dma.done.wait (%p2930_p1), [#allocation12], 12288   ;;  %p2931_p11 = pmov %p2930_p1 }
  0xf2   : > { %v615_v0 = vld [vmem:[#allocation7 + $0x8] sm:$0xff]  ;;  %v617_v1 = vld [vmem:[#allocation7 + $0x18] sm:$0xff]  ;;  %v614_v2 = vld [vmem:[#allocation7] sm:$0xff]  ;;  %s603_s9 = scalar_lea.vmem [#allocation15], %s2700_s4  ;;  %s2932_s12 = sld [smem:[#allocation29_spill]] }
  0xf3   : > { %2297 = vsyncadd (%p2931_p11), [#allocation12], 4294955008  ;;  %v1627_v3 = vpack.c.bf16 %v617_v1, %v615_v0  ;;  %v616_v4 = vld [vmem:[#allocation7 + $0x10] sm:$0xff]  ;;  %v619_v5 = vld [vmem:[#allocation7 + $0x28] sm:$0xff]  ;;  %s610_s7 = scalar_lea.vmem [#allocation17], %s2700_s4  ;;  %s2933_s20 = sld [smem:[#allocation30_spill]] }
  0xf4   : > { %v621_v6 = vld [vmem:[#allocation7 + $0x38] sm:$0xff]  ;;  %v1629_v7 = vpack.c.bf16 %v616_v4, %v614_v2  ;;  %v618_v9 = vld [vmem:[#allocation7 + $0x20] sm:$0xff]  ;;  %v620_v10 = vld [vmem:[#allocation7 + $0x30] sm:$0xff]  ;;  %s2934_s28 = sld [smem:[#allocation33_spill]]  ;;  %s1304_s23 = sshll.u32 %s603_s9, 4  ;;  %s1305_s23 = int_to_ptr.vmem [resolvable:$true] %s1304_s23 }
  0xf5   : > { %v1631_v8 = vpack.c.bf16 %v621_v6, %v619_v5  ;;  %v623_v11 = vld [vmem:[#allocation7 + $0x48] sm:$0xff]  ;;  %1628 = vmatprep.subr.bf16.mxu0 %v1627_v3  ;;  %v625_v12 = vld [vmem:[#allocation7 + $0x58] sm:$0xff]  ;;  %v1633_v13 = vpack.c.bf16 %v620_v10, %v618_v9  ;;  %v622_v15 = vld [vmem:[#allocation7 + $0x40] sm:$0xff]  ;;  %s2766_s2 = scalar_lea.sflag [#allocation16], %s527_s0  ;;  %p2935_p13 = scmp.ne.s32.totalorder %s2919_s22, 0 }
  0xf6   : > { %1630 = vmatpush1.bf16.msra.mxu0 %v1629_v7  ;;  %v1635_v14 = vpack.c.bf16 %v625_v12, %v623_v11  ;;  %v624_v16 = vld [vmem:[#allocation7 + $0x50] sm:$0xff]  ;;  %v627_v17 = vld [vmem:[#allocation7 + $0x68] sm:$0xff]  ;;  %v629_v18 = vld [vmem:[#allocation7 + $0x78] sm:$0xff]  ;;  %s2334_s24 = smov [#allocation15]  }
  0xf7   : > { %1632 = vmatprep.subr.bf16.mxu0 %v1631_v8  ;;  %v1637_v19 = vpack.c.bf16 %v624_v16, %v622_v15  ;;  %v1639_v20 = vpack.c.bf16 %v629_v18, %v627_v17  ;;  %v626_v21 = vld [vmem:[#allocation7 + $0x60] sm:$0xff]  ;;  %v628_v22 = vld [vmem:[#allocation7 + $0x70] sm:$0xff]  ;;  %v631_v23 = vld [vmem:[#allocation7 + $0x88] sm:$0xff] }
  0xf8   : > { %v633_v24 = vld [vmem:[#allocation7 + $0x98] sm:$0xff]  ;;  %v1641_v25 = vpack.c.bf16 %v628_v22, %v626_v21  ;;  %v630_v27 = vld [vmem:[#allocation7 + $0x80] sm:$0xff]  ;;  %v632_v28 = vld [vmem:[#allocation7 + $0x90] sm:$0xff] }
  0xf9   : > { %v1643_v26 = vpack.c.bf16 %v633_v24, %v631_v23  ;;  %v635_v29 = vld [vmem:[#allocation7 + $0xa8] sm:$0xff]  ;;  %v637_v30 = vld [vmem:[#allocation7 + $0xb8] sm:$0xff]  ;;  %v1645_v31 = vpack.c.bf16 %v632_v28, %v630_v27  ;;  %v634_v33 = vld [vmem:[#allocation7 + $0xa0] sm:$0xff] }
  0xfa   : > { %1634 = vmatpush1.bf16.msra.mxu0 %v1633_v13  ;;  %v1647_v32 = vpack.c.bf16 %v637_v30, %v635_v29  ;;  %v636_v34 = vld [vmem:[#allocation7 + $0xb0] sm:$0xff]  ;;  %v639_v35 = vld [vmem:[#allocation7 + $0xc8] sm:$0xff]  ;;  %v641_v36 = vld [vmem:[#allocation7 + $0xd8] sm:$0xff] }
  0xfb   : > { %1636 = vmatprep.subr.bf16.mxu0 %v1635_v14  ;;  %v1649_v37 = vpack.c.bf16 %v636_v34, %v634_v33  ;;  %v638_v38 = vld [vmem:[#allocation7 + $0xc0] sm:$0xff]  ;;  %v640_v39 = vld [vmem:[#allocation7 + $0xd0] sm:$0xff]  ;;  %v1651_v40 = vpack.c.bf16 %v641_v36, %v639_v35  ;;  %v643_v41 = vld [vmem:[#allocation7 + $0xe8] sm:$0xff] }
  0xfc   : > { %v645_v42 = vld [vmem:[#allocation7 + $0xf8] sm:$0xff]  ;;  %v779_v44 = vld [vmem:[#allocation8 + $0x80] sm:$0xff]  ;;  %v780_v45 = vld [vmem:[#allocation8 + $0x88] sm:$0xff]  ;;  %v1653_v51 = vpack.c.bf16 %v640_v39, %v638_v38 }
  0xfd   : > { %v612_v43 = vld [vmem:[%s2692_s25 + $0x8] sm:$0xff]  ;;  %v763_v46 = vld [vmem:[#allocation8] sm:$0xff]  ;;  %v1691_v47 = vpack.c.bf16 %v780_v45, %v779_v44  ;;  %v781_v49 = vld [vmem:[#allocation8 + $0x90] sm:$0xff]  ;;  %v1655_v57 = vpack.c.bf16 %v645_v42, %v643_v41 }
  0xfe   : > { %1638 = vmatpush1.bf16.msra.mxu0 %v1637_v19  ;;  %754 = vmatprep.mubr.f32.mxu0 %v612_v43  ;;  %v764_v48 = vld [vmem:[#allocation8 + $0x8] sm:$0xff]  ;;  %v782_v50 = vld [vmem:[#allocation8 + $0x98] sm:$0xff]  ;;  %v765_v54 = vld [vmem:[#allocation8 + $0x10] sm:$0xff] }
  0xff   : > { %1640 = vmatprep.subr.bf16.mxu0 %v1639_v20  ;;  %v1693_v52 = vpack.c.bf16 %v764_v48, %v763_v46  ;;  %v1695_v53 = vpack.c.bf16 %v782_v50, %v781_v49  ;;  %v766_v55 = vld [vmem:[#allocation8 + $0x18] sm:$0xff]  ;;  %v783_v56 = vld [vmem:[#allocation8 + $0xa0] sm:$0xff]  ;;  %v644_v59 = vld [vmem:[#allocation7 + $0xf0] sm:$0xff]  ;;  %1692 = vmatprep.subr.bf16.mxu1 %v1691_v47 }
 0x100   : > { %v642_v58 = vld [vmem:[#allocation7 + $0xe0] sm:$0xff]  ;;  %v784_v60 = vld [vmem:[#allocation8 + $0xa8] sm:$0xff]  ;;  %v649_v62 = vld [vmem:[#allocation7 + $0x118] sm:$0xff]  ;;  %v1697_v63 = vpack.c.bf16 %v766_v55, %v765_v54 }
 0x101   : > { %v647_v61 = vld [vmem:[#allocation7 + $0x108] sm:$0xff]  ;;  %1694 = vmatpush3.bf16.msra.mxu1 %v1693_v52  ;;  %v1699_v0 = vpack.c.bf16 %v784_v60, %v783_v56  ;;  %v767_v1 = vld [vmem:[#allocation8 + $0x20] sm:$0xff]  ;;  %v1657_v3 = vpack.c.bf16 %v644_v59, %v642_v58  ;;  %v785_v4 = vld [vmem:[#allocation8 + $0xb0] sm:$0xff] }
 0x102   : > { %1642 = vmatpush1.bf16.msra.mxu0 %v1641_v25  ;;  %1696 = vmatprep.subr.bf16.mxu1 %v1695_v53  ;;  %v768_v2 = vld [vmem:[#allocation8 + $0x28] sm:$0xff]  ;;  %v786_v5 = vld [vmem:[#allocation8 + $0xb8] sm:$0xff]  ;;  %v1659_v6 = vpack.c.bf16 %v649_v62, %v647_v61  ;;  %v646_v7 = vld [vmem:[#allocation7 + $0x100] sm:$0xff] }
 0x103   : > { %1644 = vmatprep.subr.bf16.mxu0 %v1643_v26  ;;  %v648_v8 = vld [vmem:[#allocation7 + $0x110] sm:$0xff]  ;;  %v651_v9 = vld [vmem:[#allocation7 + $0x128] sm:$0xff]  ;;  %v653_v10 = vld [vmem:[#allocation7 + $0x138] sm:$0xff]  ;;  %v1701_v11 = vpack.c.bf16 %v768_v2, %v767_v1  ;;  %v1703_v12 = vpack.c.bf16 %v786_v5, %v785_v4 }
 0x104   : > { %v769_v13 = vld [vmem:[#allocation8 + $0x30] sm:$0xff]  ;;  %v770_v14 = vld [vmem:[#allocation8 + $0x38] sm:$0xff]  ;;  %v1661_v15 = vpack.c.bf16 %v648_v8, %v646_v7  ;;  %v787_v16 = vld [vmem:[#allocation8 + $0xc0] sm:$0xff]  ;;  %v1663_v18 = vpack.c.bf16 %v653_v10, %v651_v9 }
 0x105   : > { %1698 = vmatpush3.bf16.msra.mxu1 %v1697_v63  ;;  %v788_v17 = vld [vmem:[#allocation8 + $0xc8] sm:$0xff]  ;;  %v650_v19 = vld [vmem:[#allocation7 + $0x120] sm:$0xff]  ;;  %v652_v20 = vld [vmem:[#allocation7 + $0x130] sm:$0xff]  ;;  %v1705_v23 = vpack.c.bf16 %v770_v14, %v769_v13 }
 0x106   : > { %1646 = vmatpush1.bf16.msra.mxu0 %v1645_v31  ;;  %1700 = vmatprep.subr.bf16.mxu1 %v1699_v0  ;;  %v655_v21 = vld [vmem:[#allocation7 + $0x148] sm:$0xff]  ;;  %v657_v22 = vld [vmem:[#allocation7 + $0x158] sm:$0xff]  ;;  %v1707_v24 = vpack.c.bf16 %v788_v17, %v787_v16  ;;  %v771_v25 = vld [vmem:[#allocation8 + $0x40] sm:$0xff]  ;;  %v1665_v27 = vpack.c.bf16 %v652_v20, %v650_v19 }
 0x107   : > { %1648 = vmatprep.subr.bf16.mxu0 %v1647_v32  ;;  %v772_v26 = vld [vmem:[#allocation8 + $0x48] sm:$0xff]  ;;  %v789_v28 = vld [vmem:[#allocation8 + $0xd0] sm:$0xff]  ;;  %v790_v29 = vld [vmem:[#allocation8 + $0xd8] sm:$0xff]  ;;  %v1667_v30 = vpack.c.bf16 %v657_v22, %v655_v21  ;;  %v680_v21 = vlaneseq }
 0x108   : > { %v654_v31 = vld [vmem:[#allocation7 + $0x140] sm:$0xff]  ;;  %v656_v32 = vld [vmem:[#allocation7 + $0x150] sm:$0xff]  ;;  %v659_v33 = vld [vmem:[#allocation7 + $0x168] sm:$0xff]  ;;  %v1709_v35 = vpack.c.bf16 %v772_v26, %v771_v25  ;;  %v1711_v36 = vpack.c.bf16 %v790_v29, %v789_v28 }
 0x109   : > { %1702 = vmatpush3.bf16.msra.mxu1 %v1701_v11  ;;  %v661_v34 = vld [vmem:[#allocation7 + $0x178] sm:$0xff]  ;;  %v1669_v39 = vpack.c.bf16 %v656_v32, %v654_v31  ;;  %v792_v41 = vld [vmem:[#allocation8 + $0xe8] sm:$0xff]  ;;  %v658_v43 = vld [vmem:[#allocation7 + $0x160] sm:$0xff]  ;;  %v681_v22 = vshrl.u32 %v680_v21, 7 }
 0x10a   : > { %1650 = vmatpush1.bf16.msra.mxu0 %v1649_v37  ;;  %1704 = vmatprep.subr.bf16.mxu1 %v1703_v12  ;;  %v773_v37 = vld [vmem:[#allocation8 + $0x50] sm:$0xff]  ;;  %v774_v38 = vld [vmem:[#allocation8 + $0x58] sm:$0xff]  ;;  %v1671_v42 = vpack.c.bf16 %v661_v34, %v659_v33  ;;  %v663_v45 = vld [vmem:[#allocation7 + $0x188] sm:$0xff] }
 0x10b   : > { %1652 = vmatprep.subr.bf16.mxu0 %v1651_v40  ;;  %v791_v40 = vld [vmem:[#allocation8 + $0xe0] sm:$0xff]  ;;  %v660_v44 = vld [vmem:[#allocation7 + $0x170] sm:$0xff]  ;;  %v665_v46 = vld [vmem:[#allocation7 + $0x198] sm:$0xff]  ;;  %v1713_v47 = vpack.c.bf16 %v774_v38, %v773_v37  ;;  %v2728_v25 = vsub.s32 1, %v681_v22 }
 0x10c   : > { %v1715_v48 = vpack.c.bf16 %v792_v41, %v791_v40  ;;  %v775_v49 = vld [vmem:[#allocation8 + $0x60] sm:$0xff]  ;;  %v776_v50 = vld [vmem:[#allocation8 + $0x68] sm:$0xff]  ;;  %v1675_v52 = vpack.c.bf16 %v665_v46, %v663_v45  ;;  %v664_v54 = vld [vmem:[#allocation7 + $0x190] sm:$0xff] }
 0x10d   : > { %1706 = vmatpush3.bf16.msra.mxu1 %v1705_v23  ;;  %v662_v53 = vld [vmem:[#allocation7 + $0x180] sm:$0xff]  ;;  %v667_v55 = vld [vmem:[#allocation7 + $0x1a8] sm:$0xff]  ;;  %v669_v56 = vld [vmem:[#allocation7 + $0x1b8] sm:$0xff]  ;;  %v2723_v23 = vsub.s32 0, %v681_v22 }
 0x10e   : > { %1654 = vmatpush1.bf16.msra.mxu0 %v1653_v51  ;;  %1708 = vmatprep.subr.bf16.mxu1 %v1707_v24  ;;  %v1673_v51 = vpack.c.bf16 %v660_v44, %v658_v43  ;;  %v1677_v58 = vpack.c.bf16 %v664_v54, %v662_v53  ;;  %v1679_v59 = vpack.c.bf16 %v669_v56, %v667_v55  ;;  %v666_v60 = vld [vmem:[#allocation7 + $0x1a0] sm:$0xff]  ;;  %v668_v61 = vld [vmem:[#allocation7 + $0x1b0] sm:$0xff]  ;;  %v671_v62 = vld [vmem:[#allocation7 + $0x1c8] sm:$0xff] }
 0x10f   : > { %1656 = vmatprep.subr.bf16.mxu0 %v1655_v57  ;;  %v1717_v57 = vpack.c.bf16 %v776_v50, %v775_v49  ;;  %v673_v63 = vld [vmem:[#allocation7 + $0x1d8] sm:$0xff]  ;;  %v1681_v0 = vpack.c.bf16 %v668_v61, %v666_v60  ;;  %v670_v2 = vld [vmem:[#allocation7 + $0x1c0] sm:$0xff]  ;;  %v675_v4 = vld [vmem:[#allocation7 + $0x1e8] sm:$0xff] }
 0x110   : > { %v1683_v1 = vpack.c.bf16 %v673_v63, %v671_v62  ;;  %v677_v5 = vld [vmem:[#allocation7 + $0x1f8] sm:$0xff]  ;;  %v674_v8 = vld [vmem:[#allocation7 + $0x1e0] sm:$0xff]  ;;  %v676_v9 = vld [vmem:[#allocation7 + $0x1f0] sm:$0xff] }
 0x111   : > { %1710 = vmatpush3.bf16.msra.mxu1 %v1709_v35  ;;  %v1687_v7 = vpack.c.bf16 %v677_v5, %v675_v4  ;;  %v1689_v10 = vpack.c.bf16 %v676_v9, %v674_v8  ;;  %v611_v11 = vld [vmem:[%s2692_s25] sm:$0xff]  ;;  %v794_v13 = vld [vmem:[#allocation8 + $0xf8] sm:$0xff]  ;;  %v889_v19 = vld [vmem:[#allocation10 + $0x88] sm:$0xff]  ;;  %s2182_s25 = sshll.u32 %s2334_s24, 4  ;;  %s2183_s25 = int_to_ptr.vmem [resolvable:$false] %s2182_s25 }
 0x112   : > { %1658 = vmatpush1.bf16.msra.mxu0 %v1657_v3  ;;  %1712 = vmatprep.subr.bf16.mxu1 %v1711_v36  ;;  %v672_v3 = vld [vmem:[#allocation7 + $0x1d0] sm:$0xff]  ;;  %v778_v16 = vld [vmem:[#allocation8 + $0x78] sm:$0xff]  ;;  %v872_v31 = vld [vmem:[#allocation10] sm:$0xff]  ;;  %p2185_p0 = scmp.lt.s32.totalorder %s1305_s23, %s2183_s25 }
 0x113   : > { %1660 = vmatprep.subr.bf16.mxu0 %v1659_v6  ;;  %v1685_v6 = vpack.c.bf16 %v672_v3, %v670_v2  ;;  %v793_v12 = vld [vmem:[#allocation8 + $0xf0] sm:$0xff]  ;;  %v873_v32 = vld [vmem:[#allocation10 + $0x8] sm:$0xff]  ;;  %v891_v35 = vld [vmem:[#allocation10 + $0x98] sm:$0xff] }
 0x114   : > { %v1719_v14 = vpack.c.bf16 %v794_v13, %v793_v12  ;;  %v678_v24 = vld [vmem:[%s2873_s3] sm:$0x3]  ;;  %v1725_v37 = vpack.c.bf16 %v873_v32, %v872_v31  ;;  %v875_v41 = vld [vmem:[#allocation10 + $0x18] sm:$0xff]  ;;  %v893_v43 = vld [vmem:[#allocation10 + $0xa8] sm:$0xff] }
 0x115   : > { %1714 = vmatpush3.bf16.msra.mxu1 %v1713_v47  ;;  %v683_v26 = vrot.slane %v678_v24, %v2723_v23  ;;  %v890_v34 = vld [vmem:[#allocation10 + $0x90] sm:$0xff]  ;;  %v876_v46 = vld [vmem:[#allocation10 + $0x20] sm:$0xff]  ;;  %v877_v47 = vld [vmem:[#allocation10 + $0x28] sm:$0xff] }
 0x116   : > { %1662 = vmatpush1.bf16.msra.mxu0 %v1661_v15  ;;  %1716 = vmatprep.subr.bf16.mxu1 %v1715_v48  ;;  %v777_v15 = vld [vmem:[#allocation8 + $0x70] sm:$0xff]  ;;  %v895_v49 = vld [vmem:[#allocation10 + $0xb8] sm:$0xff]  ;;  %v1733_v50 = vpack.c.bf16 %v877_v47, %v876_v46  ;;  %v896_v54 = vld [vmem:[#allocation10 + $0xc0] sm:$0xff] }
 0x117   : > { %1664 = vmatprep.subr.bf16.mxu0 %v1663_v18  ;;  %v1721_v17 = vpack.c.bf16 %v778_v16, %v777_v15  ;;  %v888_v18 = vld [vmem:[#allocation10 + $0x80] sm:$0xff]  ;;  %v874_v40 = vld [vmem:[#allocation10 + $0x10] sm:$0xff]  ;;  %v879_v53 = vld [vmem:[#allocation10 + $0x38] sm:$0xff] }
 0x118   : > { %v1723_v20 = vpack.c.bf16 %v889_v19, %v888_v18  ;;  %v1729_v44 = vpack.c.bf16 %v875_v41, %v874_v40  ;;  %v894_v48 = vld [vmem:[#allocation10 + $0xb0] sm:$0xff]  ;;  %v897_v55 = vld [vmem:[#allocation10 + $0xc8] sm:$0xff]  ;;  %v899_v61 = vld [vmem:[#allocation10 + $0xd8] sm:$0xff] }
 0x119   : > { %1718 = vmatpush3.bf16.msra.mxu1 %v1717_v57  ;;  %v1739_v57 = vpack.c.bf16 %v897_v55, %v896_v54  ;;  %v898_v60 = vld [vmem:[#allocation10 + $0xd0] sm:$0xff]  ;;  %v900_v2 = vld [vmem:[#allocation10 + $0xe0] sm:$0xff]  ;;  %v901_v3 = vld [vmem:[#allocation10 + $0xe8] sm:$0xff]  ;;  %v2333_v54 = vmov 0.0  }
 0x11a   : > { %1666 = vmatpush1.bf16.msra.mxu0 %v1665_v27  ;;  %1720 = vmatprep.subr.bf16.mxu1 %v1719_v14  ;;  %v687_v27 = vrot.slane %v678_v24, %v2728_v25  ;;  %v1743_v63 = vpack.c.bf16 %v899_v61, %v898_v60  ;;  %v1747_v5 = vpack.c.bf16 %v901_v3, %v900_v2  ;;  %v902_v8 = vld [vmem:[#allocation10 + $0xf0] sm:$0xff]  ;;  %v903_v9 = vld [vmem:[#allocation10 + $0xf8] sm:$0xff]  ;;  %v987_v15 = vld [vmem:[#allocation11 + $0x8] sm:$0xff] }
 0x11b   : > { %1668 = vmatprep.subr.bf16.mxu0 %v1667_v30  ;;  %v886_v12 = vld [vmem:[#allocation10 + $0x70] sm:$0xff]  ;;  %v887_v13 = vld [vmem:[#allocation10 + $0x78] sm:$0xff]  ;;  %v994_v32 = vld [vmem:[#allocation11 + $0x40] sm:$0xff] }
 0x11c   : > { %v1753_v14 = vpack.c.bf16 %v887_v13, %v886_v12  ;;  %v989_v16 = vld [vmem:[#allocation11 + $0x18] sm:$0xff]  ;;  %v988_v19 = vld [vmem:[#allocation11 + $0x10] sm:$0xff]  ;;  %v1003_v41 = vld [vmem:[#allocation11 + $0x88] sm:$0xff] }
 0x11d   : > { %1722 = vmatpush3.bf16.msra.mxu1 %v1721_v17  ;;  %v986_v17 = vld [vmem:[#allocation11] sm:$0xff]  ;;  %v1755_v18 = vpack.c.bf16 %v989_v16, %v987_v15  ;;  %v993_v21 = vld [vmem:[#allocation11 + $0x38] sm:$0xff]  ;;  %v1007_v47 = vld [vmem:[#allocation11 + $0xa8] sm:$0xff] }
 0x11e   : > { %1670 = vmatpush1.bf16.msra.mxu0 %v1669_v39  ;;  %1724 = vmatprep.subr.bf16.mxu1 %v1723_v20  ;;  %v1727_v39 = vpack.c.bf16 %v891_v35, %v890_v34  ;;  %v991_v20 = vld [vmem:[#allocation11 + $0x28] sm:$0xff]  ;;  %v1757_v22 = vpack.c.bf16 %v988_v19, %v986_v17  ;;  %v1017_v60 = vld [vmem:[#allocation11 + $0xf8] sm:$0xff]  ;;  %v1109_v12 = vld [vmem:[#allocation13 + $0x30] sm:$0xff] }
 0x11f   : > { %1672 = vmatprep.subr.bf16.mxu0 %v1671_v42  ;;  %v892_v42 = vld [vmem:[#allocation10 + $0xa0] sm:$0xff]  ;;  %v1759_v24 = vpack.c.bf16 %v993_v21, %v991_v20  ;;  %v999_v35 = vld [vmem:[#allocation11 + $0x68] sm:$0xff]  ;;  %v1106_v3 = vld [vmem:[#allocation13 + $0x18] sm:$0xff] }
 0x120   : > { %v1731_v45 = vpack.c.bf16 %v893_v43, %v892_v42  ;;  %v1005_v42 = vld [vmem:[#allocation11 + $0x98] sm:$0xff]  ;;  %v1104_v2 = vld [vmem:[#allocation13 + $0x8] sm:$0xff]  ;;  %v1111_v17 = vld [vmem:[#allocation13 + $0x40] sm:$0xff] }
 0x121   : > { %v1771_v43 = vpack.c.bf16 %v1005_v42, %v1003_v41  ;;  %v1112_v13 = vld [vmem:[#allocation13 + $0x48] sm:$0xff]  ;;  %v1118_v20 = vld [vmem:[#allocation13 + $0x78] sm:$0xff] }
 0x122   : > { %1674 = vmatpush1.bf16.msra.mxu0 %v1673_v51  ;;  %v1735_v51 = vpack.c.bf16 %v895_v49, %v894_v48  ;;  %v1009_v48 = vld [vmem:[#allocation11 + $0xb8] sm:$0xff]  ;;  %v1006_v49 = vld [vmem:[#allocation11 + $0xa0] sm:$0xff]  ;;  %v1116_v19 = vld [vmem:[#allocation13 + $0x68] sm:$0xff] }
 0x123   : > { %1676 = vmatprep.subr.bf16.mxu0 %v1675_v52  ;;  %v878_v52 = vld [vmem:[#allocation10 + $0x30] sm:$0xff] }
 0x124   : > { %v1737_v56 = vpack.c.bf16 %v879_v53, %v878_v52  ;;  %v1011_v52 = vld [vmem:[#allocation11 + $0xc8] sm:$0xff]  ;;  %v1013_v53 = vld [vmem:[#allocation11 + $0xd8] sm:$0xff] }
 0x126   : > { %1678 = vmatpush1.bf16.msra.mxu0 %v1677_v58  ;;  %v880_v58 = vld [vmem:[#allocation10 + $0x40] sm:$0xff] }
 0x127   : > { %1680 = vmatprep.subr.bf16.mxu0 %v1679_v59  ;;  %v881_v59 = vld [vmem:[#allocation10 + $0x48] sm:$0xff] }
 0x128   : > { %v1741_v62 = vpack.c.bf16 %v881_v59, %v880_v58  ;;  %v1012_v58 = vld [vmem:[#allocation11 + $0xd0] sm:$0xff]  ;;  %v1015_v59 = vld [vmem:[#allocation11 + $0xe8] sm:$0xff] }
 0x12a   : > { %1682 = vmatpush1.bf16.msra.mxu0 %v1681_v0  ;;  %v882_v0 = vld [vmem:[#allocation10 + $0x50] sm:$0xff] }
 0x12b   : > { %1684 = vmatprep.subr.bf16.mxu0 %v1683_v1  ;;  %v883_v1 = vld [vmem:[#allocation10 + $0x58] sm:$0xff] }
 0x12c   : > { %v1745_v4 = vpack.c.bf16 %v883_v1, %v882_v0  ;;  %v1016_v0 = vld [vmem:[#allocation11 + $0xf0] sm:$0xff] }
 0x12e   : > { %1686 = vmatpush1.bf16.msra.mxu0 %v1685_v6  ;;  %v884_v6 = vld [vmem:[#allocation10 + $0x60] sm:$0xff] }
 0x12f   : > { %1688 = vmatprep.subr.bf16.mxu0 %v1687_v7  ;;  %v885_v7 = vld [vmem:[#allocation10 + $0x68] sm:$0xff] }
 0x132   : > { %1690 = vmatpush1.bf16.msra.mxu0 %v1689_v10  ;;  %v1749_v10 = vpack.c.bf16 %v885_v7, %v884_v6  ;;  %v1105_v6 = vld [vmem:[#allocation13 + $0x10] sm:$0xff]  ;;  %v1108_v7 = vld [vmem:[#allocation13 + $0x28] sm:$0xff] }
 0x133   : > { %1756 = vmatprep.subr.bf16.mxu0 %v1755_v18  ;;  %v1113_v18 = vld [vmem:[#allocation13 + $0x50] sm:$0xff] }
 0x134   : > { %v1797_v21 = vpack.c.bf16 %v1113_v18, %v1111_v17  ;;  %v1156_v17 = vld [vmem:[#allocation13 + $0x1a8] sm:$0xff]  ;;  %v1158_v18 = vld [vmem:[#allocation13 + $0x1b8] sm:$0xff] }
 0x135   : > { %755 = vmatmul.mubr.f32.vlgmr.msra.gmra.mrb[0].mxu0 %v611_v11  ;;  %v1751_v11 = vpack.c.bf16 %v903_v9, %v902_v8  ;;  %v1110_v8 = vld [vmem:[#allocation13 + $0x38] sm:$0xff] }
 0x136   : > { %1758 = vmatpush1.bf16.msra.mxu0 %v1757_v22  ;;  %1094 = vmatprep.mubr.f32.mxu0 %v2333_v54  ;;  %v1799_v22 = vpack.c.bf16 %v1118_v20, %v1116_v19  ;;  %v1839_v20 = vpack.c.bf16 %v1158_v18, %v1156_v17 }
 0x137   : > { %1760 = vmatprep.subr.bf16.mxu0 %v1759_v24  ;;  %v1115_v24 = vld [vmem:[#allocation13 + $0x60] sm:$0xff] }
 0x208   : > { %v756_v28 = vpop.f32.mrb[0].mxu0 }
 0x209   : > { %v2732_v29 = vadd.f32 %v756_v28, %v683_v26  ;;  %v758_v30 = vpop.f32.mrb[1].mxu0  ;;  %v990_v26 = vld [vmem:[#allocation11 + $0x20] sm:$0xff] }
 0x20a   : > { %v759_v33 = vadd.f32 %v758_v30, %v687_v27  ;;  %v992_v27 = vld [vmem:[#allocation11 + $0x30] sm:$0xff]  ;;  %v997_v30 = vld [vmem:[#allocation11 + $0x58] sm:$0xff] }
 0x20b   : > { %v761_v38 = vmax.f32 %v2732_v29, 0.0  ;;  %v1761_v28 = vpack.c.bf16 %v992_v27, %v990_v26  ;;  %v995_v29 = vld [vmem:[#allocation11 + $0x48] sm:$0xff]  ;;  %v1117_v26 = vld [vmem:[#allocation13 + $0x70] sm:$0xff] }
 0x20c   : > { %v762_v36 = vmax.f32 %v759_v33, 0.0  ;;  %v1763_v31 = vpack.c.bf16 %v997_v30, %v995_v29  ;;  %v996_v33 = vld [vmem:[#allocation11 + $0x50] sm:$0xff]  ;;  %v1120_v27 = vld [vmem:[#allocation13 + $0x88] sm:$0xff]  ;;  %v1801_v29 = vpack.c.bf16 %v1117_v26, %v1115_v24  ;;  %v1162_v26 = vld [vmem:[#allocation13 + $0x1d8] sm:$0xff] }
 0x20d   : > { %1762 = vmatpush1.bf16.msra.mxu0 %v1761_v28  ;;  %v1765_v34 = vpack.c.bf16 %v996_v33, %v994_v32  ;;  %v1122_v28 = vld [vmem:[#allocation13 + $0x98] sm:$0xff]  ;;  %v1121_v32 = vld [vmem:[#allocation13 + $0x90] sm:$0xff]  ;;  %v1124_v33 = vld [vmem:[#allocation13 + $0xa8] sm:$0xff] }
 0x20e   : > { %866 = vmatprep.mubr.f32.mxu1 %v762_v36  ;;  %1764 = vmatprep.subr.bf16.mxu0 %v1763_v31  ;;  %v1803_v30 = vpack.c.bf16 %v1122_v28, %v1120_v27  ;;  %v1119_v31 = vld [vmem:[#allocation13 + $0x80] sm:$0xff]  ;;  %v1160_v24 = vld [vmem:[#allocation13 + $0x1c8] sm:$0xff] }
 0x20f   : > { %867 = vmatmul.mubr.f32.vlgmr.msra.gmra.mrb[0].mxu1 %v761_v38  ;;  %v1843_v28 = vpack.c.bf16 %v1162_v26, %v1160_v24 }
 0x210   : > { %1726 = vmatpush3.bf16.msra.mxu1 %v1725_v37  ;;  %975 = vmatprep.mubr.f32.mxu1 %v762_v36  ;;  %v1001_v36 = vld [vmem:[#allocation11 + $0x78] sm:$0xff] }
 0x211   : > { %1728 = vmatprep.subr.bf16.mxu1 %v1727_v39  ;;  %1766 = vmatpush1.bf16.msra.mxu0 %v1765_v34  ;;  %v1767_v37 = vpack.c.bf16 %v1001_v36, %v999_v35  ;;  %v1000_v39 = vld [vmem:[#allocation11 + $0x70] sm:$0xff]  ;;  %v1126_v34 = vld [vmem:[#allocation13 + $0xb8] sm:$0xff]  ;;  %v1805_v35 = vpack.c.bf16 %v1121_v32, %v1119_v31 }
 0x212   : > { %v1807_v36 = vpack.c.bf16 %v1126_v34, %v1124_v33 }
 0x213   : > { %1768 = vmatprep.subr.bf16.mxu0 %v1767_v37  ;;  %v1123_v37 = vld [vmem:[#allocation13 + $0xa0] sm:$0xff] }
 0x214   : > { %1730 = vmatpush3.bf16.msra.mxu1 %v1729_v44  ;;  %v1002_v44 = vld [vmem:[#allocation11 + $0x80] sm:$0xff] }
 0x215   : > { %1732 = vmatprep.subr.bf16.mxu1 %v1731_v45  ;;  %v1004_v45 = vld [vmem:[#allocation11 + $0x90] sm:$0xff] }
 0x216   : > { %v1773_v46 = vpack.c.bf16 %v1004_v45, %v1002_v44  ;;  %v1129_v44 = vld [vmem:[#allocation13 + $0xd0] sm:$0xff]  ;;  %v1132_v45 = vld [vmem:[#allocation13 + $0xe8] sm:$0xff] }
 0x218   : > { %1734 = vmatpush3.bf16.msra.mxu1 %v1733_v50  ;;  %v1775_v50 = vpack.c.bf16 %v1009_v48, %v1007_v47 }
 0x219   : > { %1736 = vmatprep.subr.bf16.mxu1 %v1735_v51  ;;  %v1008_v51 = vld [vmem:[#allocation11 + $0xb0] sm:$0xff] }
 0x21a   : > { %v1777_v55 = vpack.c.bf16 %v1008_v51, %v1006_v49  ;;  %v1131_v49 = vld [vmem:[#allocation13 + $0xe0] sm:$0xff]  ;;  %v1136_v51 = vld [vmem:[#allocation13 + $0x108] sm:$0xff] }
 0x21c   : > { %1738 = vmatpush3.bf16.msra.mxu1 %v1737_v56  ;;  %v1779_v56 = vpack.c.bf16 %v1013_v53, %v1011_v52  ;;  %v1138_v52 = vld [vmem:[#allocation13 + $0x118] sm:$0xff] }
 0x21d   : > { %1740 = vmatprep.subr.bf16.mxu1 %v1739_v57  ;;  %v1010_v57 = vld [vmem:[#allocation11 + $0xc0] sm:$0xff]  ;;  %v1819_v54 = vpack.c.bf16 %v1138_v52, %v1136_v51  ;;  %v1165_v52 = vld [vmem:[#allocation13 + $0x1f0] sm:$0xff] }
 0x21e   : > { %v1781_v61 = vpack.c.bf16 %v1012_v58, %v1010_v57  ;;  %v1140_v57 = vld [vmem:[#allocation13 + $0x128] sm:$0xff]  ;;  %v1142_v58 = vld [vmem:[#allocation13 + $0x138] sm:$0xff]  ;;  %v1163_v51 = vld [vmem:[#allocation13 + $0x1e0] sm:$0xff] }
 0x220   : > { %1742 = vmatpush3.bf16.msra.mxu1 %v1741_v62  ;;  %v1783_v62 = vpack.c.bf16 %v1017_v60, %v1015_v59  ;;  %v1823_v60 = vpack.c.bf16 %v1142_v58, %v1140_v57 }
 0x221   : > { %1744 = vmatprep.subr.bf16.mxu1 %v1743_v63  ;;  %v1014_v63 = vld [vmem:[#allocation11 + $0xe0] sm:$0xff] }
 0x222   : > { %v1785_v1 = vpack.c.bf16 %v1016_v0, %v1014_v63  ;;  %v1144_v63 = vld [vmem:[#allocation13 + $0x148] sm:$0xff]  ;;  %v1146_v0 = vld [vmem:[#allocation13 + $0x158] sm:$0xff] }
 0x224   : > { %1746 = vmatpush3.bf16.msra.mxu1 %v1745_v4  ;;  %v1103_v4 = vld [vmem:[#allocation13] sm:$0xff] }
 0x225   : > { %1748 = vmatprep.subr.bf16.mxu1 %v1747_v5  ;;  %v1787_v5 = vpack.c.bf16 %v1106_v3, %v1104_v2  ;;  %v1789_v9 = vpack.c.bf16 %v1105_v6, %v1103_v4  ;;  %v1827_v2 = vpack.c.bf16 %v1146_v0, %v1144_v63  ;;  %v1143_v3 = vld [vmem:[#allocation13 + $0x140] sm:$0xff]  ;;  %v1145_v4 = vld [vmem:[#allocation13 + $0x150] sm:$0xff]  ;;  %v1150_v6 = vld [vmem:[#allocation13 + $0x178] sm:$0xff] }
 0x228   : > { %1750 = vmatpush3.bf16.msra.mxu1 %v1749_v10  ;;  %v1791_v10 = vpack.c.bf16 %v1110_v8, %v1108_v7  ;;  %v1829_v7 = vpack.c.bf16 %v1145_v4, %v1143_v3 }
 0x229   : > { %1752 = vmatprep.subr.bf16.mxu1 %v1751_v11  ;;  %v1107_v11 = vld [vmem:[#allocation13 + $0x20] sm:$0xff] }
 0x22a   : > { %v1793_v15 = vpack.c.bf16 %v1109_v12, %v1107_v11  ;;  %v1152_v11 = vld [vmem:[#allocation13 + $0x188] sm:$0xff]  ;;  %v1154_v12 = vld [vmem:[#allocation13 + $0x198] sm:$0xff] }
 0x22c   : > { %1754 = vmatpush3.bf16.msra.mxu1 %v1753_v14  ;;  %v1114_v14 = vld [vmem:[#allocation13 + $0x58] sm:$0xff] }
 0x22d   : > { %1788 = vmatprep.subr.bf16.mxu1 %v1787_v5  ;;  %v1795_v16 = vpack.c.bf16 %v1114_v14, %v1112_v13  ;;  %v1148_v5 = vld [vmem:[#allocation13 + $0x168] sm:$0xff]  ;;  %v1835_v14 = vpack.c.bf16 %v1154_v12, %v1152_v11 }
 0x22e   : > { %v1831_v8 = vpack.c.bf16 %v1150_v6, %v1148_v5 }
 0x22f   : > { %976 = vmatmul.mubr.f32.vlgmr.msra.gmra.mrb[2].mxu1 %v761_v38  ;;  %v998_v38 = vld [vmem:[#allocation11 + $0x60] sm:$0xff] }
 0x230   : > { %v1769_v40 = vpack.c.bf16 %v1000_v39, %v998_v38  ;;  %1790 = vmatpush1.bf16.msra.mxu1 %v1789_v9  ;;  %v1125_v38 = vld [vmem:[#allocation13 + $0xb0] sm:$0xff]  ;;  %v1128_v39 = vld [vmem:[#allocation13 + $0xc8] sm:$0xff]  ;;  %v1147_v9 = vld [vmem:[#allocation13 + $0x160] sm:$0xff] }
 0x231   : > { %1792 = vmatprep.subr.bf16.mxu1 %v1791_v10  ;;  %v1809_v41 = vpack.c.bf16 %v1125_v38, %v1123_v37  ;;  %v1149_v10 = vld [vmem:[#allocation13 + $0x170] sm:$0xff] }
 0x232   : > { %1770 = vmatpush1.bf16.msra.mxu0 %v1769_v40  ;;  %v1130_v40 = vld [vmem:[#allocation13 + $0xd8] sm:$0xff]  ;;  %v1833_v13 = vpack.c.bf16 %v1149_v10, %v1147_v9 }
 0x233   : > { %1772 = vmatprep.subr.bf16.mxu0 %v1771_v43  ;;  %v1811_v42 = vpack.c.bf16 %v1130_v40, %v1128_v39  ;;  %v1127_v43 = vld [vmem:[#allocation13 + $0xc0] sm:$0xff] }
 0x234   : > { %1794 = vmatpush1.bf16.msra.mxu1 %v1793_v15  ;;  %v1813_v47 = vpack.c.bf16 %v1129_v44, %v1127_v43  ;;  %v1151_v15 = vld [vmem:[#allocation13 + $0x180] sm:$0xff] }
 0x235   : > { %1796 = vmatprep.subr.bf16.mxu1 %v1795_v16  ;;  %v1153_v16 = vld [vmem:[#allocation13 + $0x190] sm:$0xff] }
 0x236   : > { %1774 = vmatpush1.bf16.msra.mxu0 %v1773_v46  ;;  %v1134_v46 = vld [vmem:[#allocation13 + $0xf8] sm:$0xff]  ;;  %v1837_v19 = vpack.c.bf16 %v1153_v16, %v1151_v15 }
 0x237   : > { %1776 = vmatprep.subr.bf16.mxu0 %v1775_v50  ;;  %v1815_v48 = vpack.c.bf16 %v1134_v46, %v1132_v45  ;;  %v1133_v50 = vld [vmem:[#allocation13 + $0xf0] sm:$0xff]  ;;  %v1159_v45 = vld [vmem:[#allocation13 + $0x1c0] sm:$0xff] }
 0x238   : > { %1798 = vmatpush1.bf16.msra.mxu1 %v1797_v21  ;;  %v1817_v53 = vpack.c.bf16 %v1133_v50, %v1131_v49  ;;  %v1155_v21 = vld [vmem:[#allocation13 + $0x1a0] sm:$0xff]  ;;  %v1161_v46 = vld [vmem:[#allocation13 + $0x1d0] sm:$0xff]  ;;  %v1166_v49 = vld [vmem:[#allocation13 + $0x1f8] sm:$0xff] }
 0x239   : > { %1800 = vmatprep.subr.bf16.mxu1 %v1799_v22  ;;  %v1157_v22 = vld [vmem:[#allocation13 + $0x1b0] sm:$0xff] }
 0x23a   : > { %1778 = vmatpush1.bf16.msra.mxu0 %v1777_v55  ;;  %v1135_v55 = vld [vmem:[#allocation13 + $0x100] sm:$0xff]  ;;  %v1841_v27 = vpack.c.bf16 %v1157_v22, %v1155_v21 }
 0x23b   : > { %1780 = vmatprep.subr.bf16.mxu0 %v1779_v56  ;;  %v1137_v56 = vld [vmem:[#allocation13 + $0x110] sm:$0xff] }
 0x23c   : > { %1802 = vmatpush1.bf16.msra.mxu1 %v1801_v29  ;;  %v1821_v59 = vpack.c.bf16 %v1137_v56, %v1135_v55 }
 0x23d   : > { %1804 = vmatprep.subr.bf16.mxu1 %v1803_v30  ;;  %v1542_v30 = vld [vmem:[%s2875_s5] ss:$0 sm:$0xff] }
 0x23e   : > { %1782 = vmatpush1.bf16.msra.mxu0 %v1781_v61  ;;  %v1139_v61 = vld [vmem:[#allocation13 + $0x120] sm:$0xff] }
 0x23f   : > { %1784 = vmatprep.subr.bf16.mxu0 %v1783_v62  ;;  %v1141_v62 = vld [vmem:[#allocation13 + $0x130] sm:$0xff] }
 0x240   : > { %1806 = vmatpush1.bf16.msra.mxu1 %v1805_v35  ;;  %v1543_v35 = vld [vmem:[%s2932_s12] ss:$0 sm:$0xff]  ;;  %s2178_s12 = scalar_lea.vmem %s1305_s23, 128 }
 0x241   : > { %1808 = vmatprep.subr.bf16.mxu1 %v1807_v36  ;;  %p2179_p12 = scmp.ne.s32.totalorder %s1305_s23, %s2178_s12 }
 0x242   : > { %1786 = vmatpush1.bf16.msra.mxu0 %v1785_v1  ;;  %v1825_v1 = vpack.c.bf16 %v1141_v62, %v1139_v61 }
 0x243   : > { %p2180_p6 = pnand %p2179_p12, %p2935_p13 }
 0x244   : > { %1810 = vmatpush1.bf16.msra.mxu1 %v1809_v41  ;;  %v613_v41 = vld [vmem:[%s531_s13] sm:$0xff]  ;;  %s1551_s13 = sshll.u32 %s2433_s19, 7 }
 0x245   : > { %1812 = vmatprep.subr.bf16.mxu1 %v1811_v42  ;;  %s2760_s14 = scalar_lea.hbm %s2934_s28, %s1551_s13  ;;  %p2181_p9 = pneg %p2180_p6 }
 0x248   : > { %1814 = vmatpush1.bf16.msra.mxu1 %v1813_v47  ;;  %v1845_v47 = vpack.c.bf16 %v1161_v46, %v1159_v45 }
 0x249   : > { %1816 = vmatprep.subr.bf16.mxu1 %v1815_v48  ;;  %v1164_v48 = vld [vmem:[#allocation13 + $0x1e8] sm:$0xff] }
 0x24a   : > { %v1847_v50 = vpack.c.bf16 %v1166_v49, %v1164_v48 }
 0x24c   : > { %1818 = vmatpush1.bf16.msra.mxu1 %v1817_v53  ;;  %v1849_v53 = vpack.c.bf16 %v1165_v52, %v1163_v51 }
 0x24d   : > { %1820 = vmatprep.subr.bf16.mxu1 %v1819_v54  ;;  %v1018_v54 = vld [vmem:[%s2933_s20] sm:$0x3]  ;;  %s2184_s20 = scalar_lea.vmem %s2183_s25, 256 }
 0x24e   : > { %v1023_v55 = vrot.slane %v1018_v54, %v2723_v23  ;;  %v1027_v56 = vrot.slane %v1018_v54, %v2728_v25  ;;  %p2186_p5 = scmp.lt.s32.totalorder %s2184_s20, %s2178_s12 }
 0x250   : > { %1822 = vmatpush1.bf16.msra.mxu1 %v1821_v59  ;;  %p2187_p3 = por %p2186_p5, %p2185_p0 }
 0x251   : > { %1824 = vmatprep.subr.bf16.mxu1 %v1823_v60 }
 0x252   : > { %p2188_p2 = pnand %p2187_p3, %p2181_p9 }
 0x254   : > { %1826 = vmatpush1.bf16.msra.mxu1 %v1825_v1 }
 0x255   : > { %1828 = vmatprep.subr.bf16.mxu1 %v1827_v2 }
 0x258   : > { %1830 = vmatpush1.bf16.msra.mxu1 %v1829_v7 }
 0x259   : > { %1832 = vmatprep.subr.bf16.mxu1 %v1831_v8 }
 0x25c   : > { %1834 = vmatpush1.bf16.msra.mxu1 %v1833_v13 }
 0x25d   : > { %1836 = vmatprep.subr.bf16.mxu1 %v1835_v14 }
 0x260   : > { %1838 = vmatpush1.bf16.msra.mxu1 %v1837_v19 }
 0x261   : > { %1840 = vmatprep.subr.bf16.mxu1 %v1839_v20 }
 0x264   : > { %1842 = vmatpush1.bf16.msra.mxu1 %v1841_v27 }
 0x265   : > { %1844 = vmatprep.subr.bf16.mxu1 %v1843_v28 }
 0x268   : > { %1846 = vmatpush1.bf16.msra.mxu1 %v1845_v47 }
 0x269   : > { %1848 = vmatprep.subr.bf16.mxu1 %v1847_v50 }
 0x26c   : > { %1850 = vmatpush1.bf16.msra.mxu1 %v1849_v53 }
 0x2e2   : > { %v1589_v29 = vpop.f32.mrb[0].mxu1 }
 0x2e3   : > { %v1590_v31 = vpop.f32.mrb[1].mxu1 }
 0x2e4   : > { %v1591_v32 = vadd.f32 %v1590_v31, %v1589_v29 }
 0x2e6   : > { %v869_v33 = vadd.f32 %v1591_v32, %v1542_v30 }
 0x2e8   : > { %1264 = vst [vmem:[%s603_s9] sm:$0xff] %v869_v33 }
 0x302   : > { %v1624_v34 = vpop.f32.mrb[2].mxu1 }
 0x303   : > { %v1625_v36 = vpop.f32.mrb[3].mxu1 }
 0x304   : > { %v1626_v37 = vadd.f32 %v1625_v36, %v1624_v34 }
 0x306   : > { %v978_v38 = vadd.f32 %v1626_v37, %v1543_v35 }
 0x308   : > { %v981_v39 = vmul.f32 0.5, %v978_v38  ;;  %1265 = vst [vmem:[%s610_s7] sm:$0xff] %v978_v38 }
 0x30a   : > { %v982_v40 = vmul.f32 1.442695, %v981_v39 }
 0x30c   : > { %1968 = vpow2.f32 %v982_v40 }
 0x316   : > { %v1969_v42 = vpop.eup %1968 }
 0x317   : > { %v984_v43 = vmul.f32 %v1969_v42, %v613_v41 }
 0x319   : > { %v985_v44 = vadd.f32 %v984_v43, %v869_v33 }
 0x31b   : > { %1095 = vmatmul.mubr.f32.vlgmr.msra.gmra.mrb[2].mxu0 %v985_v44 }
 0x3ee   : > { %v1096_v57 = vpop.f32.mrb[2].mxu0 }
 0x3ef   : > { %v1097_v58 = vadd.f32 %v1096_v57, %v1023_v55  ;;  %v1098_v59 = vpop.f32.mrb[3].mxu0 }
 0x3f0   : > { %v1099_v60 = vadd.f32 %v1098_v59, %v1027_v56 }
 0x3f1   : > { %v1101_v62 = vmax.f32 %v1097_v58, 0.0 }
 0x3f2   : > { %v1102_v61 = vmax.f32 %v1099_v60, 0.0 }
 0x3f4   : > { %1243 = vmatprep.mubr.f32.mxu1 %v1102_v61 }
 0x3f5   : > { %1244 = vmatmul.mubr.f32.vlgmr.msra.gmra.mrb[4].mxu1 %v1101_v62 }
 0x3f6   : > { %2191 = shalt.err (!%p2188_p2)
}
 0x3f7   : > { %s2192_s0 = scalar_lea.hbm %s2760_s14, 128  ;;  %s2196_s18 = scalar_lea.hbm %s2934_s28, 256 }
 0x3f8   : > { %p2193_p4 = scmp.ne.s32.totalorder %s2760_s14, %s2192_s0  ;;  %p2197_p10 = scmp.lt.u32.totalorder %s2760_s14, %s2934_s28 }
 0x3f9   : > { %p2198_p1 = scmp.lt.u32.totalorder %s2196_s18, %s2192_s0  ;;  %p2200_p12 = scmp.lt.u32.totalorder %s2192_s0, %s2760_s14 }
 0x3fa   : > { %p2194_p8 = pnand %p2193_p4, %p2935_p13 }
 0x3fb   : > { %p2199_p11 = por %p2198_p1, %p2197_p10 }
 0x3fc   : > { %p2195_p7 = pneg %p2194_p8 }
 0x3fd   : > { %p2201_p6 = por %p2200_p12, %p2199_p11 }
 0x3ff   : > { %p2202_p9 = pnand %p2201_p6, %p2195_p7 }
 0x401   : > { %2205 = shalt.err (!%p2202_p9)
}
 0x402   : > { %1876 = dma.vmem_to_hbm [thread:$0]  (%p2935_p13), %s1305_s23, 128, %s2760_s14, %s2766_s2  }
 0x403   : > { %s2936_s9 = sld [smem:[#allocation34_spill]]  ;;  %s1317_s18 = sshll.u32 %s610_s7, 4  ;;  %s1318_s18 = int_to_ptr.vmem [resolvable:$true] %s1317_s18 }
 0x404   : > { %s2206_s0 = scalar_lea.vmem %s1318_s18, 128  ;;  %s2335_s24 = smov [#allocation17]  }
 0x405   : > { %p2207_p0 = scmp.ne.s32.totalorder %s1318_s18, %s2206_s0  ;;  %s2210_s25 = sshll.u32 %s2335_s24, 4  ;;  %s2211_s25 = int_to_ptr.vmem [resolvable:$false] %s2210_s25 }
 0x406   : > { %s2212_s26 = scalar_lea.vmem %s2211_s25, 256  ;;  %p2213_p2 = scmp.lt.s32.totalorder %s1318_s18, %s2211_s25 }
 0x407   : > { %p2208_p5 = pnand %p2207_p0, %p2935_p13  ;;  %p2214_p4 = scmp.lt.s32.totalorder %s2212_s26, %s2206_s0 }
 0x409   : > { %s2791_s11 = scalar_lea.hbm %s2936_s9, %s1551_s13  ;;  %p2209_p3 = pneg %p2208_p5 }
 0x40a   : > { %p2215_p8 = por %p2214_p4, %p2213_p2 }
 0x40c   : > { %p2216_p7 = pnand %p2215_p8, %p2209_p3 }
 0x40e   : > { %2219 = shalt.err (!%p2216_p7)
}
 0x40f   : > { %s2220_s4 = scalar_lea.hbm %s2791_s11, 128  ;;  %s2224_s14 = scalar_lea.hbm %s2936_s9, 256 }
 0x410   : > { %p2221_p10 = scmp.ne.s32.totalorder %s2791_s11, %s2220_s4  ;;  %p2225_p12 = scmp.lt.u32.totalorder %s2791_s11, %s2936_s9 }
 0x411   : > { %p2226_p6 = scmp.lt.u32.totalorder %s2224_s14, %s2220_s4  ;;  %p2228_p0 = scmp.lt.u32.totalorder %s2220_s4, %s2791_s11 }
 0x412   : > { %p2222_p1 = pnand %p2221_p10, %p2935_p13 }
 0x413   : > { %p2227_p9 = por %p2226_p6, %p2225_p12 }
 0x414   : > { %p2223_p11 = pneg %p2222_p1 }
 0x415   : > { %p2229_p5 = por %p2228_p0, %p2227_p9 }
 0x417   : > { %p2230_p3 = pnand %p2229_p5, %p2223_p11 }
 0x419   : > { %2233 = shalt.err (!%p2230_p3)
}
 0x41a   : > { %1877 = dma.vmem_to_hbm [thread:$0]  (%p2935_p13), %s1318_s18, 128, %s2791_s11, %s2766_s2  }
 0x41b   : > { %s2937_s0 = sld [smem:[#allocation31_spill]]  ;;  %s1556_s2 = sshll.u32 %s2433_s19, 8 }
 0x41c   : > { %s2938_s11 = sshll.u32 %s2686_s6, 4  ;;  %s2939_s7 = sld [smem:[#allocation32_spill]] }
 0x41d   : > { %s596_s18 = scalar_lea.vmem [#allocation14], %s2938_s11  ;;  %s1267_s14 = scalar_lea.sflag [#allocation4], %s2686_s6 }
 0x41e   : > { %s1291_s24 = sshll.u32 %s596_s18, 4  ;;  %s2336_s19 = smov [#allocation14]   ;;  %s2826_s24 = int_to_ptr.vmem [resolvable:$true] %s1291_s24 }
 0x41f   : > { %s2234_s23 = scalar_lea.vmem %s2826_s24, 256  ;;  %s2238_s12 = sshll.u32 %s2336_s19, 4  ;;  %s2239_s12 = int_to_ptr.vmem [resolvable:$false] %s2238_s12 }
 0x420   : > { %p2235_p2 = scmp.ne.s32.totalorder %s2826_s24, %s2234_s23  ;;  %s2240_s26 = scalar_lea.vmem %s2239_s12, 512 }
 0x421   : > { %v1167_v63 = vld [vmem:[%s2937_s0] sm:$0x3]  ;;  %p2241_p7 = scmp.lt.s32.totalorder %s2826_s24, %s2239_s12  ;;  %p2242_p10 = scmp.lt.s32.totalorder %s2240_s26, %s2234_s23 }
 0x422   : > { %v1172_v0 = vrot.slane %v1167_v63, %v2723_v23  ;;  %v1176_v1 = vrot.slane %v1167_v63, %v2728_v25  ;;  %s2824_s13 = scalar_lea.hbm %s2939_s7, %s1556_s2  ;;  %p2236_p4 = pnand %p2235_p2, %p2935_p13 }
 0x423   : > { %p2243_p1 = por %p2242_p10, %p2241_p7 }
 0x424   : > { %p2237_p8 = pneg %p2236_p4 }
 0x426   : > { %p2244_p11 = pnand %p2243_p1, %p2237_p8 }
 0x4c8   : > { %v1245_v2 = vpop.f32.mrb[4].mxu1 }
 0x4c9   : > { %v1246_v3 = vadd.f32 %v1245_v2, %v1172_v0  ;;  %v1247_v4 = vpop.f32.mrb[5].mxu1 }
 0x4ca   : > { %v1248_v5 = vadd.f32 %v1247_v4, %v1176_v1 }
 0x4cb   : > { %v1544_v6 = vmul.f32 -1.442695, %v1246_v3 }
 0x4cc   : > { %v1545_v7 = vmul.f32 -1.442695, %v1248_v5 }
 0x4cd   : > { %1970 = vpow2.f32 %v1544_v6 }
 0x4ce   : > { %1972 = vpow2.f32 %v1545_v7 }
 0x4d7   : > { %v1971_v8 = vpop.eup %1970 }
 0x4d8   : > { %v1973_v9 = vpop.eup %1972  ;;  %v1256_v10 = vadd.f32 1.0, %v1971_v8 }
 0x4d9   : > { %v1257_v11 = vadd.f32 1.0, %v1973_v9 }
 0x4da   : > { %1974 = vrcp.f32 %v1256_v10 }
 0x4db   : > { %1976 = vrcp.f32 %v1257_v11 }
 0x4e4   : > { %v1975_v23 = vpop.eup %1974 }
 0x4e5   : > { %v1977_v25 = vpop.eup %1976  ;;  %1262 = vst [vmem:[%s596_s18] sm:$0xff] %v1975_v23 }
 0x4e6   : > { %1263 = vst [vmem:[%s596_s18 + $0x8] sm:$0xff] %v1977_v25 }
 0x4e7   : > { %2247 = shalt.err (!%p2244_p11)
}
 0x4e8   : > { %s2248_s6 = scalar_lea.hbm %s2824_s13, 256  ;;  %s2252_s2 = scalar_lea.hbm %s2939_s7, 512 }
 0x4e9   : > { %p2249_p12 = scmp.ne.s32.totalorder %s2824_s13, %s2248_s6  ;;  %p2253_p0 = scmp.lt.u32.totalorder %s2824_s13, %s2939_s7 }
 0x4ea   : > { %p2254_p5 = scmp.lt.u32.totalorder %s2252_s2, %s2248_s6  ;;  %p2256_p2 = scmp.lt.u32.totalorder %s2248_s6, %s2824_s13 }
 0x4eb   : > { %p2250_p6 = pnand %p2249_p12, %p2935_p13 }
 0x4ec   : > { %p2255_p3 = por %p2254_p5, %p2253_p0 }
 0x4ed   : > { %p2251_p9 = pneg %p2250_p6 }
 0x4ee   : > { %p2257_p4 = por %p2256_p2, %p2255_p3 }
 0x4f0   : > { %p2258_p8 = pnand %p2257_p4, %p2251_p9 }
 0x4f2   : > { %2261 = shalt.err (!%p2258_p8)
}
 0x4f3   : > { %1875 = dma.vmem_to_hbm [thread:$0]  (%p2935_p13), %s2826_s24, 256, %s2824_s13, %s1267_s14  }
 0x4f4 PF: > { %s1329_s25 = sand.u32 1, %s2308_s29   ;;  %p2940_p7 = scmp.ne.s32.totalorder %s2920_s17, 0 }
 0x4f5   : > { %p2941_p10 = scmp.ge.s32.totalorder %s2320_s16, 2  ;;  %s1330_s4 = scalar_lea.sflag [#allocation4], %s1329_s25 }
 0x4f7   : > { %p1905_p1 = pnand %p2941_p10, %p2940_p7 }
 0x4f9   : > { %2299 = dma.done.wait (!%p1905_p1), %s1330_s4, 256  }
 0x4fa   : > { %2301 = vsyncadd (!%p1905_p1), %s1330_s4, 4294967040  ;;  %s2942_s23 = sadd.s32 4294967294, %s2320_s16  }
 0x4fb   : > { %s1338_s19 = sand.u32 1, %s2942_s23  }
 0x4fc   : > { %s1339_s12 = scalar_lea.sflag [#allocation16], %s1338_s19 }
 0x4fd   : > { %2303 = dma.done.wait (!%p1905_p1), %s1339_s12, 256  }
 0x4fe   : > { %2305 = vsyncadd (!%p1905_p1), %s1339_s12, 4294967040  ;;  %p36_p13 = scmp.ge.s32.totalorder %s2581_s21, 4   ;;  %s2943_s29 = smov %s2312_s30 }
 0x4ff   : > { %s2944_s30 = smov %s2316_s15  ;;  %s2945_s15 = smov %s2593_s27 }
 0x500   : > { %s2946_s16 = smov %s2581_s21  ;;  %38 = sbr.rel (!%p36_p13) target bundleno = 22 (0x16), region = 178 }
 0x507   :  { %1353 = vsyncpa [#allocation3], 1 }
 0x508   :  { %1355 = vsyncpa [#allocation3 + $0x1], 1 }
 0x509   :  { %1356 = vsyncpa [#allocation6], 1 }
 0x50a   :  { %1358 = vsyncpa [#allocation6 + $0x1], 1 }
 0x50b   :  { %1359 = vsyncpa [#allocation9], 1 }
 0x50c   :  { %1360 = vsyncpa [#allocation12], 1 }
 0x50d   :  { %1361 = vsyncpa [#allocation4], 1 }
 0x50e   :  { %1363 = vsyncpa [#allocation4 + $0x1], 1 }
 0x50f   :  { %1364 = vsyncpa [#allocation16], 1 }
 0x510   :  { %1366 = vsyncpa [#allocation16 + $0x1], 1 }

// kernel: tpu_custom_call.1
= control target key start
LH: loop header
LB: loop body
LE: loop exit
PB: predicated region body
PF: predicated region fallthrough
CT: control target
= control target key end

     0   :  { %s2870_s0 = inlined_call_operand.hbm [shape: f32[16,256], index: 0, kind: input, shape index: {}]   ;;  %s2871_s1 = inlined_call_operand.hbm [shape: f32[16,128], index: 1, kind: input, shape index: {}]   ;;  %s2872_s2 = inlined_call_operand.hbm [shape: f32[256,256], index: 2, kind: input, shape index: {}]   ;;  %s2873_s3 = inlined_call_operand.vmem [shape: f32[1,256], index: 3, kind: input, shape index: {}]   ;;  %s2874_s4 = inlined_call_operand.hbm [shape: f32[256,128], index: 4, kind: input, shape index: {}]   ;;  %s2875_s5 = inlined_call_operand.vmem [shape: f32[1,128], index: 5, kind: input, shape index: {}]   ;;  %s2876_s6 = inlined_call_operand.hbm [shape: f32[256,128], index: 6, kind: input, shape index: {}]   ;;  %s2877_s7 = inlined_call_operand.vmem [shape: f32[1,128], index: 7, kind: input, shape index: {}]   ;;  %s2878_s8 = inlined_call_operand.hbm [shape: f32[128,256], index: 8, kind: input, shape index: {}]   ;;  %s2879_s9 = inlined_call_operand.vmem [shape: f32[1,256], index: 9, kind: input, shape index: {}]   ;;  %s2880_s10 = inlined_call_operand.hbm [shape: f32[256,256], index: 10, kind: input, shape index: {}]   ;;  %s2881_s11 = inlined_call_operand.vmem [shape: f32[1,256], index: 11, kind: input, shape index: {}]   ;;  %s2882_s12 = inlined_call_operand.hbm [shape: f32[16,256], index: 12, kind: output, shape index: {0}]   ;;  %s2883_s13 = inlined_call_operand.hbm [shape: f32[16,128], index: 13, kind: output, shape index: {1}]   ;;  %s2884_s14 = inlined_call_operand.hbm [shape: f32[16,128], index: 14, kind: output, shape index: {2}]  }
   0x1   :  { %2898 = sst [smem:[#allocation25_spill]] %s2870_s0 }
   0x2   :  { %2899 = sst [smem:[#allocation26_spill]] %s2872_s2 }
   0x3   :  { %2900 = sst [smem:[#allocation27_spill]] %s2874_s4 }
   0x4   :  { %2901 = sst [smem:[#allocation28_spill]] %s2876_s6 }
   0x5   :  { %2902 = sst [smem:[#allocation29_spill]] %s2877_s7 }
   0x6   :  { %2903 = sst [smem:[#allocation30_spill]] %s2879_s9 }
   0x7   :  { %2904 = sst [smem:[#allocation31_spill]] %s2881_s11 }
   0x8   :  { %2905 = sst [smem:[#allocation32_spill]] %s2882_s12 }
   0x9   :  { %2906 = sst [smem:[#allocation33_spill]] %s2883_s13 }
   0xa   :  { %2907 = sst [smem:[#allocation34_spill]] %s2884_s14 }
   0xb   :  { %20 = vsyncpa [#allocation3], 0 }
   0xc   :  { %22 = vsyncpa [#allocation3 + $0x1], 0 }
   0xd   :  { %23 = vsyncpa [#allocation6], 0 }
   0xe   :  { %25 = vsyncpa [#allocation6 + $0x1], 0 }
   0xf   :  { %26 = vsyncpa [#allocation9], 0 }
  0x10   :  { %27 = vsyncpa [#allocation12], 0 }
  0x11   :  { %28 = vsyncpa [#allocation4], 0 }
  0x12   :  { %30 = vsyncpa [#allocation4 + $0x1], 0 }
  0x13   :  { %31 = vsyncpa [#allocation16], 0 }
  0x14   :  { %33 = vsyncpa [#allocation16 + $0x1], 0  ;;  %s2412_s29 = smov 0   ;;  %s2414_s30 = smov 0  }
  0x15   :  { %s2416_s15 = smov 0   ;;  %s2418_s16 = smov 0  }
  0x16 LB: > { %s2322_s17 = smov [#allocation7]   ;;  %s2433_s19 = sadd.s32 4294967295, %s2320_s16   ;;  %s2320_s16 = sphi %s2418_s16, %s2946_s16   ;;  %s2316_s15 = sphi %s2416_s15, %s2945_s15   ;;  %s2312_s30 = sphi %s2414_s30, %s2944_s30   ;;  %s2308_s29 = sphi %s2412_s29, %s2943_s29  }
  0x17   : > { %s396_s18 = sshll.u32 %s2322_s17, 4  ;;  %p1519_p0 = scmp.ge.s32.totalorder %s2320_s16, 1  ;;  %s2438_s18 = int_to_ptr.vmem [resolvable:$true] %s396_s18 }
  0x18   : > { %p2890_p1 = scmp.eq.s32.totalorder %s2433_s19, 0  ;;  %p384_p2 = scmp.lt.s32.totalorder %s2320_s16, 3 }
  0x19   : > { %s2323_s21 = smov [#allocation8]   ;;  %s2324_s24 = smov [#allocation11]  }
  0x1a   : > { %p2440_p3 = pnand %p1519_p0, %p384_p2  ;;  %s412_s22 = sshll.u32 %s2323_s21, 4  ;;  %s2453_s22 = int_to_ptr.vmem [resolvable:$true] %s412_s22 }
  0x1b   : > { %s2455_s25 = sshll.u32 %s2324_s24, 4  ;;  %s2910_s2 = sld [smem:[#allocation26_spill]]  ;;  %s445_s25 = int_to_ptr.vmem [resolvable:$true] %s2455_s25 }
  0x1c   : > { %s2908_s20 = scalar_select %p2440_p3, 1, 0 }
  0x1d   : > { %p1881_p5 = pneg %p2440_p3 }
  0x1f   : > { %p2449_p6 = pnand %p1881_p5, %p2890_p1 }
  0x21   : > { %s1978_s28 = scalar_lea.hbm %s2910_s2, 8192  ;;  %p2465_p8 = pneg %p2449_p6 }
  0x22   : > { %p1979_p7 = scmp.ne.s32.totalorder %s2910_s2, %s1978_s28  ;;  %p1985_p11 = scmp.lt.u32.totalorder %s1978_s28, %s2910_s2 }
  0x24   : > { %p1981_p9 = pnand %p2465_p8, %p1979_p7 }
  0x26   : > { %p1982_p10 = pneg %p1981_p9 }
  0x28   : > { %p1987_p12 = pnand %p1985_p11, %p1982_p10 }
  0x2a   : > { %1990 = shalt.err (!%p1987_p12)
}
  0x2b   : > { %s1991_s12 = scalar_lea.vmem %s2438_s18, 8192  ;;  %p1999_p5 = scmp.lt.s32.totalorder %s2438_s18, %s2438_s18 }
  0x2c   : > { %p1992_p13 = scmp.ne.s32.totalorder %s2438_s18, %s1991_s12  ;;  %p2000_p4 = scmp.lt.s32.totalorder %s1991_s12, %s1991_s12 }
  0x2e   : > { %p1994_p0 = pnand %p1992_p13, %p2465_p8  ;;  %p2001_p7 = por %p2000_p4, %p1999_p5 }
  0x30   : > { %p1995_p2 = pneg %p1994_p0 }
  0x32   : > { %p2002_p9 = pnand %p2001_p7, %p1995_p2 }
  0x34   : > { %2005 = shalt.err (!%p2002_p9)
}
  0x35   : > { %s2888_s26 = smov 256   ;;  %s2326_s11 = smov 16  }
  0x36   : > { %1884 = dma.hbm_to_vmem [thread:$0]  (!%p2449_p6), %s2910_s2, 8192, %s2438_s18, [#allocation6], %s2888_s26, %s2888_s26, %s2326_s11  }
  0x37   : > { %s2912_s4 = sld [smem:[#allocation27_spill]] }
  0x3d   : > { %s2006_s12 = scalar_lea.hbm %s2912_s4, 4096 }
  0x3e   : > { %p2007_p4 = scmp.ne.s32.totalorder %s2912_s4, %s2006_s12  ;;  %p2013_p12 = scmp.lt.u32.totalorder %s2006_s12, %s2912_s4 }
  0x40   : > { %p2009_p10 = pnand %p2007_p4, %p2465_p8 }
  0x42   : > { %p2010_p11 = pneg %p2009_p10 }
  0x44   : > { %p2015_p13 = pnand %p2013_p12, %p2010_p11 }
  0x46   : > { %2018 = shalt.err (!%p2015_p13)
}
  0x47   : > { %s2019_s18 = scalar_lea.vmem %s2453_s22, 4096  ;;  %p2027_p7 = scmp.lt.s32.totalorder %s2453_s22, %s2453_s22 }
  0x48   : > { %p2020_p0 = scmp.ne.s32.totalorder %s2453_s22, %s2019_s18  ;;  %p2028_p9 = scmp.lt.s32.totalorder %s2019_s18, %s2019_s18 }
  0x4a   : > { %p2022_p2 = pnand %p2020_p0, %p2465_p8  ;;  %p2029_p4 = por %p2028_p9, %p2027_p7 }
  0x4c   : > { %p2023_p5 = pneg %p2022_p2 }
  0x4e   : > { %p2030_p10 = pnand %p2029_p4, %p2023_p5 }
  0x50   : > { %2033 = shalt.err (!%p2030_p10)
}
  0x51   : > { %s2892_s13 = smov 128   ;;  %s2893_s7 = smov 8  }
  0x52   : > { %1887 = dma.hbm_to_vmem [thread:$0]  (!%p2449_p6), %s2912_s4, 4096, %s2453_s22, [#allocation9], %s2892_s13, %s2892_s13, %s2893_s7  }
  0x53   : > { %s2034_s17 = scalar_lea.hbm %s2878_s8, 4096 }
  0x54   : > { %p2035_p11 = scmp.ne.s32.totalorder %s2878_s8, %s2034_s17  ;;  %p2041_p0 = scmp.lt.u32.totalorder %s2034_s17, %s2878_s8 }
  0x56   : > { %p2037_p12 = pnand %p2035_p11, %p2465_p8 }
  0x58   : > { %p2038_p13 = pneg %p2037_p12 }
  0x5a   : > { %p2043_p2 = pnand %p2041_p0, %p2038_p13 }
  0x5c   : > { %2046 = shalt.err (!%p2043_p2)
}
  0x5d   : > { %s2047_s9 = scalar_lea.vmem %s445_s25, 4096  ;;  %p2055_p4 = scmp.lt.s32.totalorder %s445_s25, %s445_s25 }
  0x5e   : > { %p2048_p5 = scmp.ne.s32.totalorder %s445_s25, %s2047_s9  ;;  %p2056_p10 = scmp.lt.s32.totalorder %s2047_s9, %s2047_s9 }
  0x60   : > { %p2050_p7 = pnand %p2048_p5, %p2465_p8  ;;  %p2057_p1 = por %p2056_p10, %p2055_p4 }
  0x62   : > { %p2051_p9 = pneg %p2050_p7 }
  0x64   : > { %p2058_p3 = pnand %p2057_p1, %p2051_p9 }
  0x66   : > { %2061 = shalt.err (!%p2058_p3)
}
  0x67   : > { %s2913_s22 = smov 256   ;;  %s2329_s27 = smov [#allocation10]  }
  0x68   : > { %1893 = dma.hbm_to_vmem [thread:$0]  (!%p2449_p6), %s2878_s8, 4096, %s445_s25, [#allocation12], %s2913_s22, %s2913_s22, %s2326_s11  }
  0x69   : > { %s428_s28 = sshll.u32 %s2329_s27, 4  ;;  %s2330_s17 = smov [#allocation13]   ;;  %s429_s28 = int_to_ptr.vmem [resolvable:$true] %s428_s28 }
  0x6a   : > { %s460_s24 = sshll.u32 %s2330_s17, 4  ;;  %s2914_s6 = sld [smem:[#allocation28_spill]]  ;;  %s461_s24 = int_to_ptr.vmem [resolvable:$true] %s460_s24 }
  0x70   : > { %s2062_s9 = scalar_lea.hbm %s2914_s6, 4096 }
  0x71   : > { %p2063_p1 = scmp.ne.s32.totalorder %s2914_s6, %s2062_s9  ;;  %p2069_p12 = scmp.lt.u32.totalorder %s2062_s9, %s2914_s6 }
  0x73   : > { %p2065_p3 = pnand %p2063_p1, %p2465_p8 }
  0x75   : > { %p2066_p11 = pneg %p2065_p3 }
  0x77   : > { %p2071_p13 = pnand %p2069_p12, %p2066_p11 }
  0x79   : > { %2074 = shalt.err (!%p2071_p13)
}
  0x7a   : > { %s2075_s25 = scalar_lea.vmem %s429_s28, 4096  ;;  %p2083_p7 = scmp.lt.s32.totalorder %s429_s28, %s429_s28 }
  0x7b   : > { %p2076_p0 = scmp.ne.s32.totalorder %s429_s28, %s2075_s25  ;;  %p2084_p9 = scmp.lt.s32.totalorder %s2075_s25, %s2075_s25 }
  0x7d   : > { %p2078_p2 = pnand %p2076_p0, %p2465_p8  ;;  %p2085_p4 = por %p2084_p9, %p2083_p7 }
  0x7f   : > { %p2079_p5 = pneg %p2078_p2 }
  0x81   : > { %p2086_p10 = pnand %p2085_p4, %p2079_p5 }
  0x83   : > { %2089 = shalt.err (!%p2086_p10)
}
  0x84   : > { %s2915_s13 = smov 8   ;;  %s2916_s7 = smov 128  }
  0x85   : > { %1890 = dma.hbm_to_vmem [thread:$0]  (!%p2449_p6), %s2914_s6, 4096, %s429_s28, [#allocation9], %s2916_s7, %s2916_s7, %s2915_s13  }
  0x86   : > { %s2090_s12 = scalar_lea.hbm %s2880_s10, 8192 }
  0x87   : > { %p2091_p1 = scmp.ne.s32.totalorder %s2880_s10, %s2090_s12  ;;  %p2097_p12 = scmp.lt.u32.totalorder %s2090_s12, %s2880_s10 }
  0x89   : > { %p2093_p3 = pnand %p2091_p1, %p2465_p8 }
  0x8b   : > { %p2094_p11 = pneg %p2093_p3 }
  0x8d   : > { %p2099_p13 = pnand %p2097_p12, %p2094_p11 }
  0x8f   : > { %2102 = shalt.err (!%p2099_p13)
}
  0x90   : > { %s2103_s2 = scalar_lea.vmem %s461_s24, 8192  ;;  %p2111_p7 = scmp.lt.s32.totalorder %s461_s24, %s461_s24 }
  0x91   : > { %p2104_p0 = scmp.ne.s32.totalorder %s461_s24, %s2103_s2  ;;  %p2112_p9 = scmp.lt.s32.totalorder %s2103_s2, %s2103_s2 }
  0x93   : > { %p2106_p2 = pnand %p2104_p0, %p2465_p8  ;;  %p2113_p4 = por %p2112_p9, %p2111_p7 }
  0x95   : > { %p2107_p5 = pneg %p2106_p2 }
  0x97   : > { %p2114_p10 = pnand %p2113_p4, %p2107_p5 }
  0x99   : > { %2117 = shalt.err (!%p2114_p10)
}
  0x9a   : > { %1896 = dma.hbm_to_vmem [thread:$0]  (!%p2449_p6), %s2880_s10, 8192, %s461_s24, [#allocation12], %s2913_s22, %s2913_s22, %s2326_s11  }
  0x9b   : > { %s2894_s23 = sadd.s32 4294967294, %s2320_s16   ;;  %s2581_s21 = sadd.s32 1, %s2320_s16  }
  0x9c   : > { %s46_s7 = sadd.s32 1, %s2316_s15  ;;  %s43_s14 = ssub.s32 %s2320_s16, %s2581_s21 }
  0x9d   : > { %p53_p8 = scmp.ne.s32.totalorder %s2316_s15, %s2312_s30  ;;  %p44_p1 = scmp.eq.s32.totalorder %s43_s14, 0 }
  0x9e   : > { %p54_p3 = scmp.eq.s32.totalorder %s2320_s16, 0  ;;  %p59_p11 = scmp.ne.s32.totalorder %s2312_s30, %s2308_s29 }
  0x9f   : > { %p319_p12 = scmp.eq.s32.totalorder %s2433_s19, 1  ;;  %p2917_p0 = scmp.eq.s32.totalorder %s2433_s19, 0 }
  0xa0   : > { %s2593_s27 = scalar_select %p44_p1, %s2316_s15, %s46_s7  }
  0xa1   : > { %p55_p13 = por %p54_p3, %p53_p8  ;;  %p2597_p2 = por %p2917_p0, %p59_p11 }
  0xa2   : > { %p2601_p6 = por %p319_p12, %p53_p8  ;;  %p325_p5 = scmp.eq.s32.totalorder %s2894_s23, 1 }
  0xa3   : > { %s2918_s11 = scalar_select %p2597_p2, 1, 0 }
  0xa4   : > { %s2919_s22 = scalar_select %p2601_p6, 1, 0 }
  0xa5   : > { %p1919_p7 = scmp.lt.s32.totalorder %s2320_s16, 2  ;;  %s2609_s24 = sand.u32 1, %s2316_s15  }
  0xa6   : > { %p2611_p9 = por %p325_p5, %p59_p11  ;;  %s1526_s12 = sshll.u32 %s2609_s24, 4 }
  0xa7   : > { %s1555_s18 = sshll.u32 %s2320_s16, 8  ;;  %s2921_s0 = sld [smem:[#allocation25_spill]] }
  0xa8   : > { %s2920_s17 = scalar_select %p2611_p9, 1, 0 }
  0xa9   : > { %s481_s2 = scalar_lea.vmem [#allocation2], %s1526_s12  ;;  %p2622_p4 = pnand %p1919_p7, %p55_p13 }
  0xaa   : > { %s489_s28 = sshll.u32 %s481_s2, 4  ;;  %s478_s14 = scalar_lea.sflag [#allocation3], %s2609_s24  ;;  %s2626_s28 = int_to_ptr.vmem [resolvable:$true] %s489_s28 }
  0xab   : > { %p2120_p8 = pneg %p2622_p4 }
  0xad   : > { %s2620_s25 = scalar_lea.hbm %s2921_s0, %s1555_s18  ;;  %s2123_s9 = scalar_lea.hbm %s2921_s0, 512 }
  0xae   : > { %s2118_s23 = scalar_lea.hbm %s2620_s25, 256  ;;  %p2124_p11 = scmp.lt.u32.totalorder %s2620_s25, %s2921_s0 }
  0xaf   : > { %p2119_p10 = scmp.ne.s32.totalorder %s2620_s25, %s2118_s23  ;;  %p2125_p12 = scmp.lt.u32.totalorder %s2123_s9, %s2118_s23 }
  0xb0   : > { %p2127_p0 = scmp.lt.u32.totalorder %s2118_s23, %s2620_s25 }
  0xb1   : > { %p2121_p1 = pnand %p2120_p8, %p2119_p10  ;;  %p2126_p13 = por %p2125_p12, %p2124_p11 }
  0xb3   : > { %p2122_p3 = pneg %p2121_p1  ;;  %p2128_p5 = por %p2127_p0, %p2126_p13 }
  0xb5   : > { %p2129_p7 = pnand %p2128_p5, %p2122_p3 }
  0xb7   : > { %2132 = shalt.err (!%p2129_p7)
}
  0xb8   : > { %s2133_s7 = scalar_lea.vmem %s2626_s28, 256  ;;  %s2331_s12 = smov [#allocation2]  }
  0xb9   : > { %p2134_p10 = scmp.ne.s32.totalorder %s2626_s28, %s2133_s7  ;;  %s2138_s18 = sshll.u32 %s2331_s12, 4  ;;  %s2139_s18 = int_to_ptr.vmem [resolvable:$false] %s2138_s18 }
  0xba   : > { %s2140_s26 = scalar_lea.vmem %s2139_s18, 512  ;;  %p2141_p6 = scmp.lt.s32.totalorder %s2626_s28, %s2139_s18 }
  0xbb   : > { %p2136_p1 = pnand %p2134_p10, %p2120_p8  ;;  %p2142_p11 = scmp.lt.s32.totalorder %s2140_s26, %s2133_s7 }
  0xbd   : > { %p2137_p9 = pneg %p2136_p1  ;;  %p2143_p12 = por %p2142_p11, %p2141_p6 }
  0xbf   : > { %p2144_p13 = pnand %p2143_p12, %p2137_p9 }
  0xc1   : > { %2147 = shalt.err (!%p2144_p13)
}
  0xc2   : > { %1900 = dma.hbm_to_vmem [thread:$0]  (!%p2622_p4), %s2620_s25, 256, %s2626_s28, %s478_s14  }
  0xc3   : > { %s1529_s23 = sshll.u32 %s2609_s24, 3  ;;  %s1530_s9 = sshll.u32 %s2320_s16, 7 }
  0xc4   : > { %s2660_s0 = scalar_lea.hbm %s2871_s1, %s1530_s9  ;;  %s500_s7 = scalar_lea.vmem [#allocation5], %s1529_s23 }
  0xc5   : > { %s507_s18 = sshll.u32 %s500_s7, 4  ;;  %s2923_s26 = sand.u32 1, %s2320_s16   ;;  %s508_s18 = int_to_ptr.vmem [resolvable:$true] %s507_s18 }
  0xc6   : > { %s497_s4 = scalar_lea.sflag [#allocation6], %s2923_s26  ;;  %s2148_s6 = scalar_lea.hbm %s2660_s0, 128 }
  0xc7   : > { %p2149_p6 = scmp.ne.s32.totalorder %s2660_s0, %s2148_s6  ;;  %s2153_s28 = scalar_lea.hbm %s2871_s1, 256 }
  0xc8   : > { %p2154_p0 = scmp.lt.u32.totalorder %s2660_s0, %s2871_s1  ;;  %p2155_p5 = scmp.lt.u32.totalorder %s2153_s28, %s2148_s6 }
  0xc9   : > { %p2151_p9 = pnand %p2149_p6, %p2120_p8  ;;  %p2157_p10 = scmp.lt.u32.totalorder %s2148_s6, %s2660_s0 }
  0xca   : > { %p2156_p7 = por %p2155_p5, %p2154_p0 }
  0xcb   : > { %p2152_p3 = pneg %p2151_p9 }
  0xcc   : > { %p2158_p1 = por %p2157_p10, %p2156_p7 }
  0xce   : > { %p2159_p11 = pnand %p2158_p1, %p2152_p3 }
  0xd0   : > { %2162 = shalt.err (!%p2159_p11)
}
  0xd1   : > { %s2163_s23 = scalar_lea.vmem %s508_s18, 128  ;;  %s2332_s2 = smov [#allocation5]  }
  0xd2   : > { %p2164_p12 = scmp.ne.s32.totalorder %s508_s18, %s2163_s23  ;;  %s2168_s12 = sshll.u32 %s2332_s2, 4  ;;  %s2169_s12 = int_to_ptr.vmem [resolvable:$false] %s2168_s12 }
  0xd3   : > { %s2170_s7 = scalar_lea.vmem %s2169_s12, 256  ;;  %p2171_p9 = scmp.lt.s32.totalorder %s508_s18, %s2169_s12 }
  0xd4   : > { %p2166_p13 = pnand %p2164_p12, %p2120_p8  ;;  %p2172_p2 = scmp.lt.s32.totalorder %s2170_s7, %s2163_s23 }
  0xd6   : > { %p2167_p6 = pneg %p2166_p13  ;;  %p2173_p0 = por %p2172_p2, %p2171_p9 }
  0xd8   : > { %p2174_p5 = pnand %p2173_p0, %p2167_p6 }
  0xda   : > { %2177 = shalt.err (!%p2174_p5)
}
  0xdb   : > { %1903 = dma.hbm_to_vmem [thread:$0]  (!%p2622_p4), %s2660_s0, 128, %s508_s18, %s497_s4  }
  0xdc   : > { %p2924_p3 = scmp.ne.s32.totalorder %s2908_s20, 0 }
  0xdd   : > { %s2686_s6 = sand.u32 (!%p2924_p3), 1, %s2312_s30   ;;  %p2925_p2 = scmp.ne.s32.totalorder (!%p2924_p3), %s2918_s11, 0 }
  0xde   : > { %516 = sbr.rel (%p2924_p3) target bundleno = 1268 (0x4f4), region = 68  ;;  %s2897_s26 = sshll.u32 (!%p2924_p3), %s2686_s6, 4 }
  0xdf   : > { %s519_s24 = scalar_lea.sflag (!%p2924_p3), [#allocation3], %s2686_s6  ;;  %s2692_s25 = scalar_lea.vmem (!%p2924_p3), [#allocation2], %s2897_s26 }
  0xe5   : > { %2279 = dma.done.wait (%p2925_p2), %s519_s24, 256  }
  0xe6   : > { %2281 = vsyncadd (%p2925_p2), %s519_s24, 4294967040  ;;  %s527_s0 = sand.u32 1, %s2433_s19   ;;  %s2700_s4 = sshll.u32 %s2686_s6, 3 }
  0xe7   : > { %s528_s20 = scalar_lea.sflag [#allocation6], %s527_s0  ;;  %s531_s13 = scalar_lea.vmem [#allocation5], %s2700_s4 }
  0xe8   : > { %2283 = dma.done.wait (%p2925_p2), %s528_s20, 128  }
  0xe9   : > { %2285 = vsyncadd (%p2925_p2), %s528_s20, 4294967168  ;;  %p2926_p4 = scmp.eq.s32.totalorder %s2433_s19, 0 }
  0xeb   : > { %2287 = dma.done.wait (%p2926_p4), [#allocation6], 8192   ;;  %p2927_p8 = pmov %p2926_p4 }
  0xec   : > { %p2928_p7 = pmov %p2926_p4 }
  0xed   : > { %2289 = vsyncadd (%p2927_p8), [#allocation6], 4294959104 }
  0xee   : > { %2291 = dma.done.wait (%p2928_p7), [#allocation9], 8192   ;;  %p2929_p10 = pmov %p2926_p4 }
  0xef   : > { %p2930_p1 = pmov %p2926_p4 }
  0xf0   : > { %2293 = vsyncadd (%p2929_p10), [#allocation9], 4294959104 }
  0xf1   : > { %2295 = dma.done.wait (%p2930_p1), [#allocation12], 12288   ;;  %p2931_p11 = pmov %p2930_p1 }
  0xf2   : > { %v615_v0 = vld [vmem:[#allocation7 + $0x8] sm:$0xff]  ;;  %v617_v1 = vld [vmem:[#allocation7 + $0x18] sm:$0xff]  ;;  %v614_v2 = vld [vmem:[#allocation7] sm:$0xff]  ;;  %s603_s9 = scalar_lea.vmem [#allocation15], %s2700_s4  ;;  %s2932_s12 = sld [smem:[#allocation29_spill]] }
  0xf3   : > { %2297 = vsyncadd (%p2931_p11), [#allocation12], 4294955008  ;;  %v1627_v3 = vpack.c.bf16 %v617_v1, %v615_v0  ;;  %v616_v4 = vld [vmem:[#allocation7 + $0x10] sm:$0xff]  ;;  %v619_v5 = vld [vmem:[#allocation7 + $0x28] sm:$0xff]  ;;  %s610_s7 = scalar_lea.vmem [#allocation17], %s2700_s4  ;;  %s2933_s20 = sld [smem:[#allocation30_spill]] }
  0xf4   : > { %v621_v6 = vld [vmem:[#allocation7 + $0x38] sm:$0xff]  ;;  %v1629_v7 = vpack.c.bf16 %v616_v4, %v614_v2  ;;  %v618_v9 = vld [vmem:[#allocation7 + $0x20] sm:$0xff]  ;;  %v620_v10 = vld [vmem:[#allocation7 + $0x30] sm:$0xff]  ;;  %s2934_s28 = sld [smem:[#allocation33_spill]]  ;;  %s1304_s23 = sshll.u32 %s603_s9, 4  ;;  %s1305_s23 = int_to_ptr.vmem [resolvable:$true] %s1304_s23 }
  0xf5   : > { %v1631_v8 = vpack.c.bf16 %v621_v6, %v619_v5  ;;  %v623_v11 = vld [vmem:[#allocation7 + $0x48] sm:$0xff]  ;;  %1628 = vmatprep.subr.bf16.mxu0 %v1627_v3  ;;  %v625_v12 = vld [vmem:[#allocation7 + $0x58] sm:$0xff]  ;;  %v1633_v13 = vpack.c.bf16 %v620_v10, %v618_v9  ;;  %v622_v15 = vld [vmem:[#allocation7 + $0x40] sm:$0xff]  ;;  %s2766_s2 = scalar_lea.sflag [#allocation16], %s527_s0  ;;  %p2935_p13 = scmp.ne.s32.totalorder %s2919_s22, 0 }
  0xf6   : > { %1630 = vmatpush1.bf16.msra.mxu0 %v1629_v7  ;;  %v1635_v14 = vpack.c.bf16 %v625_v12, %v623_v11  ;;  %v624_v16 = vld [vmem:[#allocation7 + $0x50] sm:$0xff]  ;;  %v627_v17 = vld [vmem:[#allocation7 + $0x68] sm:$0xff]  ;;  %v629_v18 = vld [vmem:[#allocation7 + $0x78] sm:$0xff]  ;;  %s2334_s24 = smov [#allocation15]  }
  0xf7   : > { %1632 = vmatprep.subr.bf16.mxu0 %v1631_v8  ;;  %v1637_v19 = vpack.c.bf16 %v624_v16, %v622_v15  ;;  %v1639_v20 = vpack.c.bf16 %v629_v18, %v627_v17  ;;  %v626_v21 = vld [vmem:[#allocation7 + $0x60] sm:$0xff]  ;;  %v628_v22 = vld [vmem:[#allocation7 + $0x70] sm:$0xff]  ;;  %v631_v23 = vld [vmem:[#allocation7 + $0x88] sm:$0xff] }
  0xf8   : > { %v633_v24 = vld [vmem:[#allocation7 + $0x98] sm:$0xff]  ;;  %v1641_v25 = vpack.c.bf16 %v628_v22, %v626_v21  ;;  %v630_v27 = vld [vmem:[#allocation7 + $0x80] sm:$0xff]  ;;  %v632_v28 = vld [vmem:[#allocation7 + $0x90] sm:$0xff] }
  0xf9   : > { %v1643_v26 = vpack.c.bf16 %v633_v24, %v631_v23  ;;  %v635_v29 = vld [vmem:[#allocation7 + $0xa8] sm:$0xff]  ;;  %v637_v30 = vld [vmem:[#allocation7 + $0xb8] sm:$0xff]  ;;  %v1645_v31 = vpack.c.bf16 %v632_v28, %v630_v27  ;;  %v634_v33 = vld [vmem:[#allocation7 + $0xa0] sm:$0xff] }
  0xfa   : > { %1634 = vmatpush1.bf16.msra.mxu0 %v1633_v13  ;;  %v1647_v32 = vpack.c.bf16 %v637_v30, %v635_v29  ;;  %v636_v34 = vld [vmem:[#allocation7 + $0xb0] sm:$0xff]  ;;  %v639_v35 = vld [vmem:[#allocation7 + $0xc8] sm:$0xff]  ;;  %v641_v36 = vld [vmem:[#allocation7 + $0xd8] sm:$0xff] }
  0xfb   : > { %1636 = vmatprep.subr.bf16.mxu0 %v1635_v14  ;;  %v1649_v37 = vpack.c.bf16 %v636_v34, %v634_v33  ;;  %v638_v38 = vld [vmem:[#allocation7 + $0xc0] sm:$0xff]  ;;  %v640_v39 = vld [vmem:[#allocation7 + $0xd0] sm:$0xff]  ;;  %v1651_v40 = vpack.c.bf16 %v641_v36, %v639_v35  ;;  %v643_v41 = vld [vmem:[#allocation7 + $0xe8] sm:$0xff] }
  0xfc   : > { %v645_v42 = vld [vmem:[#allocation7 + $0xf8] sm:$0xff]  ;;  %v779_v44 = vld [vmem:[#allocation8 + $0x80] sm:$0xff]  ;;  %v780_v45 = vld [vmem:[#allocation8 + $0x88] sm:$0xff]  ;;  %v1653_v51 = vpack.c.bf16 %v640_v39, %v638_v38 }
  0xfd   : > { %v612_v43 = vld [vmem:[%s2692_s25 + $0x8] sm:$0xff]  ;;  %v763_v46 = vld [vmem:[#allocation8] sm:$0xff]  ;;  %v1691_v47 = vpack.c.bf16 %v780_v45, %v779_v44  ;;  %v781_v49 = vld [vmem:[#allocation8 + $0x90] sm:$0xff]  ;;  %v1655_v57 = vpack.c.bf16 %v645_v42, %v643_v41 }
  0xfe   : > { %1638 = vmatpush1.bf16.msra.mxu0 %v1637_v19  ;;  %754 = vmatprep.mubr.f32.mxu0 %v612_v43  ;;  %v764_v48 = vld [vmem:[#allocation8 + $0x8] sm:$0xff]  ;;  %v782_v50 = vld [vmem:[#allocation8 + $0x98] sm:$0xff]  ;;  %v765_v54 = vld [vmem:[#allocation8 + $0x10] sm:$0xff] }
  0xff   : > { %1640 = vmatprep.subr.bf16.mxu0 %v1639_v20  ;;  %v1693_v52 = vpack.c.bf16 %v764_v48, %v763_v46  ;;  %v1695_v53 = vpack.c.bf16 %v782_v50, %v781_v49  ;;  %v766_v55 = vld [vmem:[#allocation8 + $0x18] sm:$0xff]  ;;  %v783_v56 = vld [vmem:[#allocation8 + $0xa0] sm:$0xff]  ;;  %v644_v59 = vld [vmem:[#allocation7 + $0xf0] sm:$0xff]  ;;  %1692 = vmatprep.subr.bf16.mxu1 %v1691_v47 }
 0x100   : > { %v642_v58 = vld [vmem:[#allocation7 + $0xe0] sm:$0xff]  ;;  %v784_v60 = vld [vmem:[#allocation8 + $0xa8] sm:$0xff]  ;;  %v649_v62 = vld [vmem:[#allocation7 + $0x118] sm:$0xff]  ;;  %v1697_v63 = vpack.c.bf16 %v766_v55, %v765_v54 }
 0x101   : > { %v647_v61 = vld [vmem:[#allocation7 + $0x108] sm:$0xff]  ;;  %1694 = vmatpush3.bf16.msra.mxu1 %v1693_v52  ;;  %v1699_v0 = vpack.c.bf16 %v784_v60, %v783_v56  ;;  %v767_v1 = vld [vmem:[#allocation8 + $0x20] sm:$0xff]  ;;  %v1657_v3 = vpack.c.bf16 %v644_v59, %v642_v58  ;;  %v785_v4 = vld [vmem:[#allocation8 + $0xb0] sm:$0xff] }
 0x102   : > { %1642 = vmatpush1.bf16.msra.mxu0 %v1641_v25  ;;  %1696 = vmatprep.subr.bf16.mxu1 %v1695_v53  ;;  %v768_v2 = vld [vmem:[#allocation8 + $0x28] sm:$0xff]  ;;  %v786_v5 = vld [vmem:[#allocation8 + $0xb8] sm:$0xff]  ;;  %v1659_v6 = vpack.c.bf16 %v649_v62, %v647_v61  ;;  %v646_v7 = vld [vmem:[#allocation7 + $0x100] sm:$0xff] }
 0x103   : > { %1644 = vmatprep.subr.bf16.mxu0 %v1643_v26  ;;  %v648_v8 = vld [vmem:[#allocation7 + $0x110] sm:$0xff]  ;;  %v651_v9 = vld [vmem:[#allocation7 + $0x128] sm:$0xff]  ;;  %v653_v10 = vld [vmem:[#allocation7 + $0x138] sm:$0xff]  ;;  %v1701_v11 = vpack.c.bf16 %v768_v2, %v767_v1  ;;  %v1703_v12 = vpack.c.bf16 %v786_v5, %v785_v4 }
 0x104   : > { %v769_v13 = vld [vmem:[#allocation8 + $0x30] sm:$0xff]  ;;  %v770_v14 = vld [vmem:[#allocation8 + $0x38] sm:$0xff]  ;;  %v1661_v15 = vpack.c.bf16 %v648_v8, %v646_v7  ;;  %v787_v16 = vld [vmem:[#allocation8 + $0xc0] sm:$0xff]  ;;  %v1663_v18 = vpack.c.bf16 %v653_v10, %v651_v9 }
 0x105   : > { %1698 = vmatpush3.bf16.msra.mxu1 %v1697_v63  ;;  %v788_v17 = vld [vmem:[#allocation8 + $0xc8] sm:$0xff]  ;;  %v650_v19 = vld [vmem:[#allocation7 + $0x120] sm:$0xff]  ;;  %v652_v20 = vld [vmem:[#allocation7 + $0x130] sm:$0xff]  ;;  %v1705_v23 = vpack.c.bf16 %v770_v14, %v769_v13 }
 0x106   : > { %1646 = vmatpush1.bf16.msra.mxu0 %v1645_v31  ;;  %1700 = vmatprep.subr.bf16.mxu1 %v1699_v0  ;;  %v655_v21 = vld [vmem:[#allocation7 + $0x148] sm:$0xff]  ;;  %v657_v22 = vld [vmem:[#allocation7 + $0x158] sm:$0xff]  ;;  %v1707_v24 = vpack.c.bf16 %v788_v17, %v787_v16  ;;  %v771_v25 = vld [vmem:[#allocation8 + $0x40] sm:$0xff]  ;;  %v1665_v27 = vpack.c.bf16 %v652_v20, %v650_v19 }
 0x107   : > { %1648 = vmatprep.subr.bf16.mxu0 %v1647_v32  ;;  %v772_v26 = vld [vmem:[#allocation8 + $0x48] sm:$0xff]  ;;  %v789_v28 = vld [vmem:[#allocation8 + $0xd0] sm:$0xff]  ;;  %v790_v29 = vld [vmem:[#allocation8 + $0xd8] sm:$0xff]  ;;  %v1667_v30 = vpack.c.bf16 %v657_v22, %v655_v21  ;;  %v680_v21 = vlaneseq }
 0x108   : > { %v654_v31 = vld [vmem:[#allocation7 + $0x140] sm:$0xff]  ;;  %v656_v32 = vld [vmem:[#allocation7 + $0x150] sm:$0xff]  ;;  %v659_v33 = vld [vmem:[#allocation7 + $0x168] sm:$0xff]  ;;  %v1709_v35 = vpack.c.bf16 %v772_v26, %v771_v25  ;;  %v1711_v36 = vpack.c.bf16 %v790_v29, %v789_v28 }
 0x109   : > { %1702 = vmatpush3.bf16.msra.mxu1 %v1701_v11  ;;  %v661_v34 = vld [vmem:[#allocation7 + $0x178] sm:$0xff]  ;;  %v1669_v39 = vpack.c.bf16 %v656_v32, %v654_v31  ;;  %v792_v41 = vld [vmem:[#allocation8 + $0xe8] sm:$0xff]  ;;  %v658_v43 = vld [vmem:[#allocation7 + $0x160] sm:$0xff]  ;;  %v681_v22 = vshrl.u32 %v680_v21, 7 }
 0x10a   : > { %1650 = vmatpush1.bf16.msra.mxu0 %v1649_v37  ;;  %1704 = vmatprep.subr.bf16.mxu1 %v1703_v12  ;;  %v773_v37 = vld [vmem:[#allocation8 + $0x50] sm:$0xff]  ;;  %v774_v38 = vld [vmem:[#allocation8 + $0x58] sm:$0xff]  ;;  %v1671_v42 = vpack.c.bf16 %v661_v34, %v659_v33  ;;  %v663_v45 = vld [vmem:[#allocation7 + $0x188] sm:$0xff] }
 0x10b   : > { %1652 = vmatprep.subr.bf16.mxu0 %v1651_v40  ;;  %v791_v40 = vld [vmem:[#allocation8 + $0xe0] sm:$0xff]  ;;  %v660_v44 = vld [vmem:[#allocation7 + $0x170] sm:$0xff]  ;;  %v665_v46 = vld [vmem:[#allocation7 + $0x198] sm:$0xff]  ;;  %v1713_v47 = vpack.c.bf16 %v774_v38, %v773_v37  ;;  %v2728_v25 = vsub.s32 1, %v681_v22 }
 0x10c   : > { %v1715_v48 = vpack.c.bf16 %v792_v41, %v791_v40  ;;  %v775_v49 = vld [vmem:[#allocation8 + $0x60] sm:$0xff]  ;;  %v776_v50 = vld [vmem:[#allocation8 + $0x68] sm:$0xff]  ;;  %v1675_v52 = vpack.c.bf16 %v665_v46, %v663_v45  ;;  %v664_v54 = vld [vmem:[#allocation7 + $0x190] sm:$0xff] }
 0x10d   : > { %1706 = vmatpush3.bf16.msra.mxu1 %v1705_v23  ;;  %v662_v53 = vld [vmem:[#allocation7 + $0x180] sm:$0xff]  ;;  %v667_v55 = vld [vmem:[#allocation7 + $0x1a8] sm:$0xff]  ;;  %v669_v56 = vld [vmem:[#allocation7 + $0x1b8] sm:$0xff]  ;;  %v2723_v23 = vsub.s32 0, %v681_v22 }
 0x10e   : > { %1654 = vmatpush1.bf16.msra.mxu0 %v1653_v51  ;;  %1708 = vmatprep.subr.bf16.mxu1 %v1707_v24  ;;  %v1673_v51 = vpack.c.bf16 %v660_v44, %v658_v43  ;;  %v1677_v58 = vpack.c.bf16 %v664_v54, %v662_v53  ;;  %v1679_v59 = vpack.c.bf16 %v669_v56, %v667_v55  ;;  %v666_v60 = vld [vmem:[#allocation7 + $0x1a0] sm:$0xff]  ;;  %v668_v61 = vld [vmem:[#allocation7 + $0x1b0] sm:$0xff]  ;;  %v671_v62 = vld [vmem:[#allocation7 + $0x1c8] sm:$0xff] }
 0x10f   : > { %1656 = vmatprep.subr.bf16.mxu0 %v1655_v57  ;;  %v1717_v57 = vpack.c.bf16 %v776_v50, %v775_v49  ;;  %v673_v63 = vld [vmem:[#allocation7 + $0x1d8] sm:$0xff]  ;;  %v1681_v0 = vpack.c.bf16 %v668_v61, %v666_v60  ;;  %v670_v2 = vld [vmem:[#allocation7 + $0x1c0] sm:$0xff]  ;;  %v675_v4 = vld [vmem:[#allocation7 + $0x1e8] sm:$0xff] }
 0x110   : > { %v1683_v1 = vpack.c.bf16 %v673_v63, %v671_v62  ;;  %v677_v5 = vld [vmem:[#allocation7 + $0x1f8] sm:$0xff]  ;;  %v674_v8 = vld [vmem:[#allocation7 + $0x1e0] sm:$0xff]  ;;  %v676_v9 = vld [vmem:[#allocation7 + $0x1f0] sm:$0xff] }
 0x111   : > { %1710 = vmatpush3.bf16.msra.mxu1 %v1709_v35  ;;  %v1687_v7 = vpack.c.bf16 %v677_v5, %v675_v4  ;;  %v1689_v10 = vpack.c.bf16 %v676_v9, %v674_v8  ;;  %v611_v11 = vld [vmem:[%s2692_s25] sm:$0xff]  ;;  %v794_v13 = vld [vmem:[#allocation8 + $0xf8] sm:$0xff]  ;;  %v889_v19 = vld [vmem:[#allocation10 + $0x88] sm:$0xff]  ;;  %s2182_s25 = sshll.u32 %s2334_s24, 4  ;;  %s2183_s25 = int_to_ptr.vmem [resolvable:$false] %s2182_s25 }
 0x112   : > { %1658 = vmatpush1.bf16.msra.mxu0 %v1657_v3  ;;  %1712 = vmatprep.subr.bf16.mxu1 %v1711_v36  ;;  %v672_v3 = vld [vmem:[#allocation7 + $0x1d0] sm:$0xff]  ;;  %v778_v16 = vld [vmem:[#allocation8 + $0x78] sm:$0xff]  ;;  %v872_v31 = vld [vmem:[#allocation10] sm:$0xff]  ;;  %p2185_p0 = scmp.lt.s32.totalorder %s1305_s23, %s2183_s25 }
 0x113   : > { %1660 = vmatprep.subr.bf16.mxu0 %v1659_v6  ;;  %v1685_v6 = vpack.c.bf16 %v672_v3, %v670_v2  ;;  %v793_v12 = vld [vmem:[#allocation8 + $0xf0] sm:$0xff]  ;;  %v873_v32 = vld [vmem:[#allocation10 + $0x8] sm:$0xff]  ;;  %v891_v35 = vld [vmem:[#allocation10 + $0x98] sm:$0xff] }
 0x114   : > { %v1719_v14 = vpack.c.bf16 %v794_v13, %v793_v12  ;;  %v678_v24 = vld [vmem:[%s2873_s3] sm:$0x3]  ;;  %v1725_v37 = vpack.c.bf16 %v873_v32, %v872_v31  ;;  %v875_v41 = vld [vmem:[#allocation10 + $0x18] sm:$0xff]  ;;  %v893_v43 = vld [vmem:[#allocation10 + $0xa8] sm:$0xff] }
 0x115   : > { %1714 = vmatpush3.bf16.msra.mxu1 %v1713_v47  ;;  %v683_v26 = vrot.slane %v678_v24, %v2723_v23  ;;  %v890_v34 = vld [vmem:[#allocation10 + $0x90] sm:$0xff]  ;;  %v876_v46 = vld [vmem:[#allocation10 + $0x20] sm:$0xff]  ;;  %v877_v47 = vld [vmem:[#allocation10 + $0x28] sm:$0xff] }
 0x116   : > { %1662 = vmatpush1.bf16.msra.mxu0 %v1661_v15  ;;  %1716 = vmatprep.subr.bf16.mxu1 %v1715_v48  ;;  %v777_v15 = vld [vmem:[#allocation8 + $0x70] sm:$0xff]  ;;  %v895_v49 = vld [vmem:[#allocation10 + $0xb8] sm:$0xff]  ;;  %v1733_v50 = vpack.c.bf16 %v877_v47, %v876_v46  ;;  %v896_v54 = vld [vmem:[#allocation10 + $0xc0] sm:$0xff] }
 0x117   : > { %1664 = vmatprep.subr.bf16.mxu0 %v1663_v18  ;;  %v1721_v17 = vpack.c.bf16 %v778_v16, %v777_v15  ;;  %v888_v18 = vld [vmem:[#allocation10 + $0x80] sm:$0xff]  ;;  %v874_v40 = vld [vmem:[#allocation10 + $0x10] sm:$0xff]  ;;  %v879_v53 = vld [vmem:[#allocation10 + $0x38] sm:$0xff] }
 0x118   : > { %v1723_v20 = vpack.c.bf16 %v889_v19, %v888_v18  ;;  %v1729_v44 = vpack.c.bf16 %v875_v41, %v874_v40  ;;  %v894_v48 = vld [vmem:[#allocation10 + $0xb0] sm:$0xff]  ;;  %v897_v55 = vld [vmem:[#allocation10 + $0xc8] sm:$0xff]  ;;  %v899_v61 = vld [vmem:[#allocation10 + $0xd8] sm:$0xff] }
 0x119   : > { %1718 = vmatpush3.bf16.msra.mxu1 %v1717_v57  ;;  %v1739_v57 = vpack.c.bf16 %v897_v55, %v896_v54  ;;  %v898_v60 = vld [vmem:[#allocation10 + $0xd0] sm:$0xff]  ;;  %v900_v2 = vld [vmem:[#allocation10 + $0xe0] sm:$0xff]  ;;  %v901_v3 = vld [vmem:[#allocation10 + $0xe8] sm:$0xff]  ;;  %v2333_v54 = vmov 0.0  }
 0x11a   : > { %1666 = vmatpush1.bf16.msra.mxu0 %v1665_v27  ;;  %1720 = vmatprep.subr.bf16.mxu1 %v1719_v14  ;;  %v687_v27 = vrot.slane %v678_v24, %v2728_v25  ;;  %v1743_v63 = vpack.c.bf16 %v899_v61, %v898_v60  ;;  %v1747_v5 = vpack.c.bf16 %v901_v3, %v900_v2  ;;  %v902_v8 = vld [vmem:[#allocation10 + $0xf0] sm:$0xff]  ;;  %v903_v9 = vld [vmem:[#allocation10 + $0xf8] sm:$0xff]  ;;  %v987_v15 = vld [vmem:[#allocation11 + $0x8] sm:$0xff] }
 0x11b   : > { %1668 = vmatprep.subr.bf16.mxu0 %v1667_v30  ;;  %v886_v12 = vld [vmem:[#allocation10 + $0x70] sm:$0xff]  ;;  %v887_v13 = vld [vmem:[#allocation10 + $0x78] sm:$0xff]  ;;  %v994_v32 = vld [vmem:[#allocation11 + $0x40] sm:$0xff] }
 0x11c   : > { %v1753_v14 = vpack.c.bf16 %v887_v13, %v886_v12  ;;  %v989_v16 = vld [vmem:[#allocation11 + $0x18] sm:$0xff]  ;;  %v988_v19 = vld [vmem:[#allocation11 + $0x10] sm:$0xff]  ;;  %v1003_v41 = vld [vmem:[#allocation11 + $0x88] sm:$0xff] }
 0x11d   : > { %1722 = vmatpush3.bf16.msra.mxu1 %v1721_v17  ;;  %v986_v17 = vld [vmem:[#allocation11] sm:$0xff]  ;;  %v1755_v18 = vpack.c.bf16 %v989_v16, %v987_v15  ;;  %v993_v21 = vld [vmem:[#allocation11 + $0x38] sm:$0xff]  ;;  %v1007_v47 = vld [vmem:[#allocation11 + $0xa8] sm:$0xff] }
 0x11e   : > { %1670 = vmatpush1.bf16.msra.mxu0 %v1669_v39  ;;  %1724 = vmatprep.subr.bf16.mxu1 %v1723_v20  ;;  %v1727_v39 = vpack.c.bf16 %v891_v35, %v890_v34  ;;  %v991_v20 = vld [vmem:[#allocation11 + $0x28] sm:$0xff]  ;;  %v1757_v22 = vpack.c.bf16 %v988_v19, %v986_v17  ;;  %v1017_v60 = vld [vmem:[#allocation11 + $0xf8] sm:$0xff]  ;;  %v1109_v12 = vld [vmem:[#allocation13 + $0x30] sm:$0xff] }
 0x11f   : > { %1672 = vmatprep.subr.bf16.mxu0 %v1671_v42  ;;  %v892_v42 = vld [vmem:[#allocation10 + $0xa0] sm:$0xff]  ;;  %v1759_v24 = vpack.c.bf16 %v993_v21, %v991_v20  ;;  %v999_v35 = vld [vmem:[#allocation11 + $0x68] sm:$0xff]  ;;  %v1106_v3 = vld [vmem:[#allocation13 + $0x18] sm:$0xff] }
 0x120   : > { %v1731_v45 = vpack.c.bf16 %v893_v43, %v892_v42  ;;  %v1005_v42 = vld [vmem:[#allocation11 + $0x98] sm:$0xff]  ;;  %v1104_v2 = vld [vmem:[#allocation13 + $0x8] sm:$0xff]  ;;  %v1111_v17 = vld [vmem:[#allocation13 + $0x40] sm:$0xff] }
 0x121   : > { %v1771_v43 = vpack.c.bf16 %v1005_v42, %v1003_v41  ;;  %v1112_v13 = vld [vmem:[#allocation13 + $0x48] sm:$0xff]  ;;  %v1118_v20 = vld [vmem:[#allocation13 + $0x78] sm:$0xff] }
 0x122   : > { %1674 = vmatpush1.bf16.msra.mxu0 %v1673_v51  ;;  %v1735_v51 = vpack.c.bf16 %v895_v49, %v894_v48  ;;  %v1009_v48 = vld [vmem:[#allocation11 + $0xb8] sm:$0xff]  ;;  %v1006_v49 = vld [vmem:[#allocation11 + $0xa0] sm:$0xff]  ;;  %v1116_v19 = vld [vmem:[#allocation13 + $0x68] sm:$0xff] }
 0x123   : > { %1676 = vmatprep.subr.bf16.mxu0 %v1675_v52  ;;  %v878_v52 = vld [vmem:[#allocation10 + $0x30] sm:$0xff] }
 0x124   : > { %v1737_v56 = vpack.c.bf16 %v879_v53, %v878_v52  ;;  %v1011_v52 = vld [vmem:[#allocation11 + $0xc8] sm:$0xff]  ;;  %v1013_v53 = vld [vmem:[#allocation11 + $0xd8] sm:$0xff] }
 0x126   : > { %1678 = vmatpush1.bf16.msra.mxu0 %v1677_v58  ;;  %v880_v58 = vld [vmem:[#allocation10 + $0x40] sm:$0xff] }
 0x127   : > { %1680 = vmatprep.subr.bf16.mxu0 %v1679_v59  ;;  %v881_v59 = vld [vmem:[#allocation10 + $0x48] sm:$0xff] }
 0x128   : > { %v1741_v62 = vpack.c.bf16 %v881_v59, %v880_v58  ;;  %v1012_v58 = vld [vmem:[#allocation11 + $0xd0] sm:$0xff]  ;;  %v1015_v59 = vld [vmem:[#allocation11 + $0xe8] sm:$0xff] }
 0x12a   : > { %1682 = vmatpush1.bf16.msra.mxu0 %v1681_v0  ;;  %v882_v0 = vld [vmem:[#allocation10 + $0x50] sm:$0xff] }
 0x12b   : > { %1684 = vmatprep.subr.bf16.mxu0 %v1683_v1  ;;  %v883_v1 = vld [vmem:[#allocation10 + $0x58] sm:$0xff] }
 0x12c   : > { %v1745_v4 = vpack.c.bf16 %v883_v1, %v882_v0  ;;  %v1016_v0 = vld [vmem:[#allocation11 + $0xf0] sm:$0xff] }
 0x12e   : > { %1686 = vmatpush1.bf16.msra.mxu0 %v1685_v6  ;;  %v884_v6 = vld [vmem:[#allocation10 + $0x60] sm:$0xff] }
 0x12f   : > { %1688 = vmatprep.subr.bf16.mxu0 %v1687_v7  ;;  %v885_v7 = vld [vmem:[#allocation10 + $0x68] sm:$0xff] }
 0x132   : > { %1690 = vmatpush1.bf16.msra.mxu0 %v1689_v10  ;;  %v1749_v10 = vpack.c.bf16 %v885_v7, %v884_v6  ;;  %v1105_v6 = vld [vmem:[#allocation13 + $0x10] sm:$0xff]  ;;  %v1108_v7 = vld [vmem:[#allocation13 + $0x28] sm:$0xff] }
 0x133   : > { %1756 = vmatprep.subr.bf16.mxu0 %v1755_v18  ;;  %v1113_v18 = vld [vmem:[#allocation13 + $0x50] sm:$0xff] }
 0x134   : > { %v1797_v21 = vpack.c.bf16 %v1113_v18, %v1111_v17  ;;  %v1156_v17 = vld [vmem:[#allocation13 + $0x1a8] sm:$0xff]  ;;  %v1158_v18 = vld [vmem:[#allocation13 + $0x1b8] sm:$0xff] }
 0x135   : > { %755 = vmatmul.mubr.f32.vlgmr.msra.gmra.mrb[0].mxu0 %v611_v11  ;;  %v1751_v11 = vpack.c.bf16 %v903_v9, %v902_v8  ;;  %v1110_v8 = vld [vmem:[#allocation13 + $0x38] sm:$0xff] }
 0x136   : > { %1758 = vmatpush1.bf16.msra.mxu0 %v1757_v22  ;;  %1094 = vmatprep.mubr.f32.mxu0 %v2333_v54  ;;  %v1799_v22 = vpack.c.bf16 %v1118_v20, %v1116_v19  ;;  %v1839_v20 = vpack.c.bf16 %v1158_v18, %v1156_v17 }
 0x137   : > { %1760 = vmatprep.subr.bf16.mxu0 %v1759_v24  ;;  %v1115_v24 = vld [vmem:[#allocation13 + $0x60] sm:$0xff] }
 0x208   : > { %v756_v28 = vpop.f32.mrb[0].mxu0 }
 0x209   : > { %v2732_v29 = vadd.f32 %v756_v28, %v683_v26  ;;  %v758_v30 = vpop.f32.mrb[1].mxu0  ;;  %v990_v26 = vld [vmem:[#allocation11 + $0x20] sm:$0xff] }
 0x20a   : > { %v759_v33 = vadd.f32 %v758_v30, %v687_v27  ;;  %v992_v27 = vld [vmem:[#allocation11 + $0x30] sm:$0xff]  ;;  %v997_v30 = vld [vmem:[#allocation11 + $0x58] sm:$0xff] }
 0x20b   : > { %v761_v38 = vmax.f32 %v2732_v29, 0.0  ;;  %v1761_v28 = vpack.c.bf16 %v992_v27, %v990_v26  ;;  %v995_v29 = vld [vmem:[#allocation11 + $0x48] sm:$0xff]  ;;  %v1117_v26 = vld [vmem:[#allocation13 + $0x70] sm:$0xff] }
 0x20c   : > { %v762_v36 = vmax.f32 %v759_v33, 0.0  ;;  %v1763_v31 = vpack.c.bf16 %v997_v30, %v995_v29  ;;  %v996_v33 = vld [vmem:[#allocation11 + $0x50] sm:$0xff]  ;;  %v1120_v27 = vld [vmem:[#allocation13 + $0x88] sm:$0xff]  ;;  %v1801_v29 = vpack.c.bf16 %v1117_v26, %v1115_v24  ;;  %v1162_v26 = vld [vmem:[#allocation13 + $0x1d8] sm:$0xff] }
 0x20d   : > { %1762 = vmatpush1.bf16.msra.mxu0 %v1761_v28  ;;  %v1765_v34 = vpack.c.bf16 %v996_v33, %v994_v32  ;;  %v1122_v28 = vld [vmem:[#allocation13 + $0x98] sm:$0xff]  ;;  %v1121_v32 = vld [vmem:[#allocation13 + $0x90] sm:$0xff]  ;;  %v1124_v33 = vld [vmem:[#allocation13 + $0xa8] sm:$0xff] }
 0x20e   : > { %866 = vmatprep.mubr.f32.mxu1 %v762_v36  ;;  %1764 = vmatprep.subr.bf16.mxu0 %v1763_v31  ;;  %v1803_v30 = vpack.c.bf16 %v1122_v28, %v1120_v27  ;;  %v1119_v31 = vld [vmem:[#allocation13 + $0x80] sm:$0xff]  ;;  %v1160_v24 = vld [vmem:[#allocation13 + $0x1c8] sm:$0xff] }
 0x20f   : > { %867 = vmatmul.mubr.f32.vlgmr.msra.gmra.mrb[0].mxu1 %v761_v38  ;;  %v1843_v28 = vpack.c.bf16 %v1162_v26, %v1160_v24 }
 0x210   : > { %1726 = vmatpush3.bf16.msra.mxu1 %v1725_v37  ;;  %975 = vmatprep.mubr.f32.mxu1 %v762_v36  ;;  %v1001_v36 = vld [vmem:[#allocation11 + $0x78] sm:$0xff] }
 0x211   : > { %1728 = vmatprep.subr.bf16.mxu1 %v1727_v39  ;;  %1766 = vmatpush1.bf16.msra.mxu0 %v1765_v34  ;;  %v1767_v37 = vpack.c.bf16 %v1001_v36, %v999_v35  ;;  %v1000_v39 = vld [vmem:[#allocation11 + $0x70] sm:$0xff]  ;;  %v1126_v34 = vld [vmem:[#allocation13 + $0xb8] sm:$0xff]  ;;  %v1805_v35 = vpack.c.bf16 %v1121_v32, %v1119_v31 }
 0x212   : > { %v1807_v36 = vpack.c.bf16 %v1126_v34, %v1124_v33 }
 0x213   : > { %1768 = vmatprep.subr.bf16.mxu0 %v1767_v37  ;;  %v1123_v37 = vld [vmem:[#allocation13 + $0xa0] sm:$0xff] }
 0x214   : > { %1730 = vmatpush3.bf16.msra.mxu1 %v1729_v44  ;;  %v1002_v44 = vld [vmem:[#allocation11 + $0x80] sm:$0xff] }
 0x215   : > { %1732 = vmatprep.subr.bf16.mxu1 %v1731_v45  ;;  %v1004_v45 = vld [vmem:[#allocation11 + $0x90] sm:$0xff] }
 0x216   : > { %v1773_v46 = vpack.c.bf16 %v1004_v45, %v1002_v44  ;;  %v1129_v44 = vld [vmem:[#allocation13 + $0xd0] sm:$0xff]  ;;  %v1132_v45 = vld [vmem:[#allocation13 + $0xe8] sm:$0xff] }
 0x218   : > { %1734 = vmatpush3.bf16.msra.mxu1 %v1733_v50  ;;  %v1775_v50 = vpack.c.bf16 %v1009_v48, %v1007_v47 }
 0x219   : > { %1736 = vmatprep.subr.bf16.mxu1 %v1735_v51  ;;  %v1008_v51 = vld [vmem:[#allocation11 + $0xb0] sm:$0xff] }
 0x21a   : > { %v1777_v55 = vpack.c.bf16 %v1008_v51, %v1006_v49  ;;  %v1131_v49 = vld [vmem:[#allocation13 + $0xe0] sm:$0xff]  ;;  %v1136_v51 = vld [vmem:[#allocation13 + $0x108] sm:$0xff] }
 0x21c   : > { %1738 = vmatpush3.bf16.msra.mxu1 %v1737_v56  ;;  %v1779_v56 = vpack.c.bf16 %v1013_v53, %v1011_v52  ;;  %v1138_v52 = vld [vmem:[#allocation13 + $0x118] sm:$0xff] }
 0x21d   : > { %1740 = vmatprep.subr.bf16.mxu1 %v1739_v57  ;;  %v1010_v57 = vld [vmem:[#allocation11 + $0xc0] sm:$0xff]  ;;  %v1819_v54 = vpack.c.bf16 %v1138_v52, %v1136_v51  ;;  %v1165_v52 = vld [vmem:[#allocation13 + $0x1f0] sm:$0xff] }
 0x21e   : > { %v1781_v61 = vpack.c.bf16 %v1012_v58, %v1010_v57  ;;  %v1140_v57 = vld [vmem:[#allocation13 + $0x128] sm:$0xff]  ;;  %v1142_v58 = vld [vmem:[#allocation13 + $0x138] sm:$0xff]  ;;  %v1163_v51 = vld [vmem:[#allocation13 + $0x1e0] sm:$0xff] }
 0x220   : > { %1742 = vmatpush3.bf16.msra.mxu1 %v1741_v62  ;;  %v1783_v62 = vpack.c.bf16 %v1017_v60, %v1015_v59  ;;  %v1823_v60 = vpack.c.bf16 %v1142_v58, %v1140_v57 }
 0x221   : > { %1744 = vmatprep.subr.bf16.mxu1 %v1743_v63  ;;  %v1014_v63 = vld [vmem:[#allocation11 + $0xe0] sm:$0xff] }
 0x222   : > { %v1785_v1 = vpack.c.bf16 %v1016_v0, %v1014_v63  ;;  %v1144_v63 = vld [vmem:[#allocation13 + $0x148] sm:$0xff]  ;;  %v1146_v0 = vld [vmem:[#allocation13 + $0x158] sm:$0xff] }
 0x224   : > { %1746 = vmatpush3.bf16.msra.mxu1 %v1745_v4  ;;  %v1103_v4 = vld [vmem:[#allocation13] sm:$0xff] }
 0x225   : > { %1748 = vmatprep.subr.bf16.mxu1 %v1747_v5  ;;  %v1787_v5 = vpack.c.bf16 %v1106_v3, %v1104_v2  ;;  %v1789_v9 = vpack.c.bf16 %v1105_v6, %v1103_v4  ;;  %v1827_v2 = vpack.c.bf16 %v1146_v0, %v1144_v63  ;;  %v1143_v3 = vld [vmem:[#allocation13 + $0x140] sm:$0xff]  ;;  %v1145_v4 = vld [vmem:[#allocation13 + $0x150] sm:$0xff]  ;;  %v1150_v6 = vld [vmem:[#allocation13 + $0x178] sm:$0xff] }
 0x228   : > { %1750 = vmatpush3.bf16.msra.mxu1 %v1749_v10  ;;  %v1791_v10 = vpack.c.bf16 %v1110_v8, %v1108_v7  ;;  %v1829_v7 = vpack.c.bf16 %v1145_v4, %v1143_v3 }
 0x229   : > { %1752 = vmatprep.subr.bf16.mxu1 %v1751_v11  ;;  %v1107_v11 = vld [vmem:[#allocation13 + $0x20] sm:$0xff] }
 0x22a   : > { %v1793_v15 = vpack.c.bf16 %v1109_v12, %v1107_v11  ;;  %v1152_v11 = vld [vmem:[#allocation13 + $0x188] sm:$0xff]  ;;  %v1154_v12 = vld [vmem:[#allocation13 + $0x198] sm:$0xff] }
 0x22c   : > { %1754 = vmatpush3.bf16.msra.mxu1 %v1753_v14  ;;  %v1114_v14 = vld [vmem:[#allocation13 + $0x58] sm:$0xff] }
 0x22d   : > { %1788 = vmatprep.subr.bf16.mxu1 %v1787_v5  ;;  %v1795_v16 = vpack.c.bf16 %v1114_v14, %v1112_v13  ;;  %v1148_v5 = vld [vmem:[#allocation13 + $0x168] sm:$0xff]  ;;  %v1835_v14 = vpack.c.bf16 %v1154_v12, %v1152_v11 }
 0x22e   : > { %v1831_v8 = vpack.c.bf16 %v1150_v6, %v1148_v5 }
 0x22f   : > { %976 = vmatmul.mubr.f32.vlgmr.msra.gmra.mrb[2].mxu1 %v761_v38  ;;  %v998_v38 = vld [vmem:[#allocation11 + $0x60] sm:$0xff] }
 0x230   : > { %v1769_v40 = vpack.c.bf16 %v1000_v39, %v998_v38  ;;  %1790 = vmatpush1.bf16.msra.mxu1 %v1789_v9  ;;  %v1125_v38 = vld [vmem:[#allocation13 + $0xb0] sm:$0xff]  ;;  %v1128_v39 = vld [vmem:[#allocation13 + $0xc8] sm:$0xff]  ;;  %v1147_v9 = vld [vmem:[#allocation13 + $0x160] sm:$0xff] }
 0x231   : > { %1792 = vmatprep.subr.bf16.mxu1 %v1791_v10  ;;  %v1809_v41 = vpack.c.bf16 %v1125_v38, %v1123_v37  ;;  %v1149_v10 = vld [vmem:[#allocation13 + $0x170] sm:$0xff] }
 0x232   : > { %1770 = vmatpush1.bf16.msra.mxu0 %v1769_v40  ;;  %v1130_v40 = vld [vmem:[#allocation13 + $0xd8] sm:$0xff]  ;;  %v1833_v13 = vpack.c.bf16 %v1149_v10, %v1147_v9 }
 0x233   : > { %1772 = vmatprep.subr.bf16.mxu0 %v1771_v43  ;;  %v1811_v42 = vpack.c.bf16 %v1130_v40, %v1128_v39  ;;  %v1127_v43 = vld [vmem:[#allocation13 + $0xc0] sm:$0xff] }
 0x234   : > { %1794 = vmatpush1.bf16.msra.mxu1 %v1793_v15  ;;  %v1813_v47 = vpack.c.bf16 %v1129_v44, %v1127_v43  ;;  %v1151_v15 = vld [vmem:[#allocation13 + $0x180] sm:$0xff] }
 0x235   : > { %1796 = vmatprep.subr.bf16.mxu1 %v1795_v16  ;;  %v1153_v16 = vld [vmem:[#allocation13 + $0x190] sm:$0xff] }
 0x236   : > { %1774 = vmatpush1.bf16.msra.mxu0 %v1773_v46  ;;  %v1134_v46 = vld [vmem:[#allocation13 + $0xf8] sm:$0xff]  ;;  %v1837_v19 = vpack.c.bf16 %v1153_v16, %v1151_v15 }
 0x237   : > { %1776 = vmatprep.subr.bf16.mxu0 %v1775_v50  ;;  %v1815_v48 = vpack.c.bf16 %v1134_v46, %v1132_v45  ;;  %v1133_v50 = vld [vmem:[#allocation13 + $0xf0] sm:$0xff]  ;;  %v1159_v45 = vld [vmem:[#allocation13 + $0x1c0] sm:$0xff] }
 0x238   : > { %1798 = vmatpush1.bf16.msra.mxu1 %v1797_v21  ;;  %v1817_v53 = vpack.c.bf16 %v1133_v50, %v1131_v49  ;;  %v1155_v21 = vld [vmem:[#allocation13 + $0x1a0] sm:$0xff]  ;;  %v1161_v46 = vld [vmem:[#allocation13 + $0x1d0] sm:$0xff]  ;;  %v1166_v49 = vld [vmem:[#allocation13 + $0x1f8] sm:$0xff] }
 0x239   : > { %1800 = vmatprep.subr.bf16.mxu1 %v1799_v22  ;;  %v1157_v22 = vld [vmem:[#allocation13 + $0x1b0] sm:$0xff] }
 0x23a   : > { %1778 = vmatpush1.bf16.msra.mxu0 %v1777_v55  ;;  %v1135_v55 = vld [vmem:[#allocation13 + $0x100] sm:$0xff]  ;;  %v1841_v27 = vpack.c.bf16 %v1157_v22, %v1155_v21 }
 0x23b   : > { %1780 = vmatprep.subr.bf16.mxu0 %v1779_v56  ;;  %v1137_v56 = vld [vmem:[#allocation13 + $0x110] sm:$0xff] }
 0x23c   : > { %1802 = vmatpush1.bf16.msra.mxu1 %v1801_v29  ;;  %v1821_v59 = vpack.c.bf16 %v1137_v56, %v1135_v55 }
 0x23d   : > { %1804 = vmatprep.subr.bf16.mxu1 %v1803_v30  ;;  %v1542_v30 = vld [vmem:[%s2875_s5] ss:$0 sm:$0xff] }
 0x23e   : > { %1782 = vmatpush1.bf16.msra.mxu0 %v1781_v61  ;;  %v1139_v61 = vld [vmem:[#allocation13 + $0x120] sm:$0xff] }
 0x23f   : > { %1784 = vmatprep.subr.bf16.mxu0 %v1783_v62  ;;  %v1141_v62 = vld [vmem:[#allocation13 + $0x130] sm:$0xff] }
 0x240   : > { %1806 = vmatpush1.bf16.msra.mxu1 %v1805_v35  ;;  %v1543_v35 = vld [vmem:[%s2932_s12] ss:$0 sm:$0xff]  ;;  %s2178_s12 = scalar_lea.vmem %s1305_s23, 128 }
 0x241   : > { %1808 = vmatprep.subr.bf16.mxu1 %v1807_v36  ;;  %p2179_p12 = scmp.ne.s32.totalorder %s1305_s23, %s2178_s12 }
 0x242   : > { %1786 = vmatpush1.bf16.msra.mxu0 %v1785_v1  ;;  %v1825_v1 = vpack.c.bf16 %v1141_v62, %v1139_v61 }
 0x243   : > { %p2180_p6 = pnand %p2179_p12, %p2935_p13 }
 0x244   : > { %1810 = vmatpush1.bf16.msra.mxu1 %v1809_v41  ;;  %v613_v41 = vld [vmem:[%s531_s13] sm:$0xff]  ;;  %s1551_s13 = sshll.u32 %s2433_s19, 7 }
 0x245   : > { %1812 = vmatprep.subr.bf16.mxu1 %v1811_v42  ;;  %s2760_s14 = scalar_lea.hbm %s2934_s28, %s1551_s13  ;;  %p2181_p9 = pneg %p2180_p6 }
 0x248   : > { %1814 = vmatpush1.bf16.msra.mxu1 %v1813_v47  ;;  %v1845_v47 = vpack.c.bf16 %v1161_v46, %v1159_v45 }
 0x249   : > { %1816 = vmatprep.subr.bf16.mxu1 %v1815_v48  ;;  %v1164_v48 = vld [vmem:[#allocation13 + $0x1e8] sm:$0xff] }
 0x24a   : > { %v1847_v50 = vpack.c.bf16 %v1166_v49, %v1164_v48 }
 0x24c   : > { %1818 = vmatpush1.bf16.msra.mxu1 %v1817_v53  ;;  %v1849_v53 = vpack.c.bf16 %v1165_v52, %v1163_v51 }
 0x24d   : > { %1820 = vmatprep.subr.bf16.mxu1 %v1819_v54  ;;  %v1018_v54 = vld [vmem:[%s2933_s20] sm:$0x3]  ;;  %s2184_s20 = scalar_lea.vmem %s2183_s25, 256 }
 0x24e   : > { %v1023_v55 = vrot.slane %v1018_v54, %v2723_v23  ;;  %v1027_v56 = vrot.slane %v1018_v54, %v2728_v25  ;;  %p2186_p5 = scmp.lt.s32.totalorder %s2184_s20, %s2178_s12 }
 0x250   : > { %1822 = vmatpush1.bf16.msra.mxu1 %v1821_v59  ;;  %p2187_p3 = por %p2186_p5, %p2185_p0 }
 0x251   : > { %1824 = vmatprep.subr.bf16.mxu1 %v1823_v60 }
 0x252   : > { %p2188_p2 = pnand %p2187_p3, %p2181_p9 }
 0x254   : > { %1826 = vmatpush1.bf16.msra.mxu1 %v1825_v1 }
 0x255   : > { %1828 = vmatprep.subr.bf16.mxu1 %v1827_v2 }
 0x258   : > { %1830 = vmatpush1.bf16.msra.mxu1 %v1829_v7 }
 0x259   : > { %1832 = vmatprep.subr.bf16.mxu1 %v1831_v8 }
 0x25c   : > { %1834 = vmatpush1.bf16.msra.mxu1 %v1833_v13 }
 0x25d   : > { %1836 = vmatprep.subr.bf16.mxu1 %v1835_v14 }
 0x260   : > { %1838 = vmatpush1.bf16.msra.mxu1 %v1837_v19 }
 0x261   : > { %1840 = vmatprep.subr.bf16.mxu1 %v1839_v20 }
 0x264   : > { %1842 = vmatpush1.bf16.msra.mxu1 %v1841_v27 }
 0x265   : > { %1844 = vmatprep.subr.bf16.mxu1 %v1843_v28 }
 0x268   : > { %1846 = vmatpush1.bf16.msra.mxu1 %v1845_v47 }
 0x269   : > { %1848 = vmatprep.subr.bf16.mxu1 %v1847_v50 }
 0x26c   : > { %1850 = vmatpush1.bf16.msra.mxu1 %v1849_v53 }
 0x2e2   : > { %v1589_v29 = vpop.f32.mrb[0].mxu1 }
 0x2e3   : > { %v1590_v31 = vpop.f32.mrb[1].mxu1 }
 0x2e4   : > { %v1591_v32 = vadd.f32 %v1590_v31, %v1589_v29 }
 0x2e6   : > { %v869_v33 = vadd.f32 %v1591_v32, %v1542_v30 }
 0x2e8   : > { %1264 = vst [vmem:[%s603_s9] sm:$0xff] %v869_v33 }
 0x302   : > { %v1624_v34 = vpop.f32.mrb[2].mxu1 }
 0x303   : > { %v1625_v36 = vpop.f32.mrb[3].mxu1 }
 0x304   : > { %v1626_v37 = vadd.f32 %v1625_v36, %v1624_v34 }
 0x306   : > { %v978_v38 = vadd.f32 %v1626_v37, %v1543_v35 }
 0x308   : > { %v981_v39 = vmul.f32 0.5, %v978_v38  ;;  %1265 = vst [vmem:[%s610_s7] sm:$0xff] %v978_v38 }
 0x30a   : > { %v982_v40 = vmul.f32 1.442695, %v981_v39 }
 0x30c   : > { %1968 = vpow2.f32 %v982_v40 }
 0x316   : > { %v1969_v42 = vpop.eup %1968 }
 0x317   : > { %v984_v43 = vmul.f32 %v1969_v42, %v613_v41 }
 0x319   : > { %v985_v44 = vadd.f32 %v984_v43, %v869_v33 }
 0x31b   : > { %1095 = vmatmul.mubr.f32.vlgmr.msra.gmra.mrb[2].mxu0 %v985_v44 }
 0x3ee   : > { %v1096_v57 = vpop.f32.mrb[2].mxu0 }
 0x3ef   : > { %v1097_v58 = vadd.f32 %v1096_v57, %v1023_v55  ;;  %v1098_v59 = vpop.f32.mrb[3].mxu0 }
 0x3f0   : > { %v1099_v60 = vadd.f32 %v1098_v59, %v1027_v56 }
 0x3f1   : > { %v1101_v62 = vmax.f32 %v1097_v58, 0.0 }
 0x3f2   : > { %v1102_v61 = vmax.f32 %v1099_v60, 0.0 }
 0x3f4   : > { %1243 = vmatprep.mubr.f32.mxu1 %v1102_v61 }
 0x3f5   : > { %1244 = vmatmul.mubr.f32.vlgmr.msra.gmra.mrb[4].mxu1 %v1101_v62 }
 0x3f6   : > { %2191 = shalt.err (!%p2188_p2)
}
 0x3f7   : > { %s2192_s0 = scalar_lea.hbm %s2760_s14, 128  ;;  %s2196_s18 = scalar_lea.hbm %s2934_s28, 256 }
 0x3f8   : > { %p2193_p4 = scmp.ne.s32.totalorder %s2760_s14, %s2192_s0  ;;  %p2197_p10 = scmp.lt.u32.totalorder %s2760_s14, %s2934_s28 }
 0x3f9   : > { %p2198_p1 = scmp.lt.u32.totalorder %s2196_s18, %s2192_s0  ;;  %p2200_p12 = scmp.lt.u32.totalorder %s2192_s0, %s2760_s14 }
 0x3fa   : > { %p2194_p8 = pnand %p2193_p4, %p2935_p13 }
 0x3fb   : > { %p2199_p11 = por %p2198_p1, %p2197_p10 }
 0x3fc   : > { %p2195_p7 = pneg %p2194_p8 }
 0x3fd   : > { %p2201_p6 = por %p2200_p12, %p2199_p11 }
 0x3ff   : > { %p2202_p9 = pnand %p2201_p6, %p2195_p7 }
 0x401   : > { %2205 = shalt.err (!%p2202_p9)
}
 0x402   : > { %1876 = dma.vmem_to_hbm [thread:$0]  (%p2935_p13), %s1305_s23, 128, %s2760_s14, %s2766_s2  }
 0x403   : > { %s2936_s9 = sld [smem:[#allocation34_spill]]  ;;  %s1317_s18 = sshll.u32 %s610_s7, 4  ;;  %s1318_s18 = int_to_ptr.vmem [resolvable:$true] %s1317_s18 }
 0x404   : > { %s2206_s0 = scalar_lea.vmem %s1318_s18, 128  ;;  %s2335_s24 = smov [#allocation17]  }
 0x405   : > { %p2207_p0 = scmp.ne.s32.totalorder %s1318_s18, %s2206_s0  ;;  %s2210_s25 = sshll.u32 %s2335_s24, 4  ;;  %s2211_s25 = int_to_ptr.vmem [resolvable:$false] %s2210_s25 }
 0x406   : > { %s2212_s26 = scalar_lea.vmem %s2211_s25, 256  ;;  %p2213_p2 = scmp.lt.s32.totalorder %s1318_s18, %s2211_s25 }
 0x407   : > { %p2208_p5 = pnand %p2207_p0, %p2935_p13  ;;  %p2214_p4 = scmp.lt.s32.totalorder %s2212_s26, %s2206_s0 }
 0x409   : > { %s2791_s11 = scalar_lea.hbm %s2936_s9, %s1551_s13  ;;  %p2209_p3 = pneg %p2208_p5 }
 0x40a   : > { %p2215_p8 = por %p2214_p4, %p2213_p2 }
 0x40c   : > { %p2216_p7 = pnand %p2215_p8, %p2209_p3 }
 0x40e   : > { %2219 = shalt.err (!%p2216_p7)
}
 0x40f   : > { %s2220_s4 = scalar_lea.hbm %s2791_s11, 128  ;;  %s2224_s14 = scalar_lea.hbm %s2936_s9, 256 }
 0x410   : > { %p2221_p10 = scmp.ne.s32.totalorder %s2791_s11, %s2220_s4  ;;  %p2225_p12 = scmp.lt.u32.totalorder %s2791_s11, %s2936_s9 }
 0x411   : > { %p2226_p6 = scmp.lt.u32.totalorder %s2224_s14, %s2220_s4  ;;  %p2228_p0 = scmp.lt.u32.totalorder %s2220_s4, %s2791_s11 }
 0x412   : > { %p2222_p1 = pnand %p2221_p10, %p2935_p13 }
 0x413   : > { %p2227_p9 = por %p2226_p6, %p2225_p12 }
 0x414   : > { %p2223_p11 = pneg %p2222_p1 }
 0x415   : > { %p2229_p5 = por %p2228_p0, %p2227_p9 }
 0x417   : > { %p2230_p3 = pnand %p2229_p5, %p2223_p11 }
 0x419   : > { %2233 = shalt.err (!%p2230_p3)
}
 0x41a   : > { %1877 = dma.vmem_to_hbm [thread:$0]  (%p2935_p13), %s1318_s18, 128, %s2791_s11, %s2766_s2  }
 0x41b   : > { %s2937_s0 = sld [smem:[#allocation31_spill]]  ;;  %s1556_s2 = sshll.u32 %s2433_s19, 8 }
 0x41c   : > { %s2938_s11 = sshll.u32 %s2686_s6, 4  ;;  %s2939_s7 = sld [smem:[#allocation32_spill]] }
 0x41d   : > { %s596_s18 = scalar_lea.vmem [#allocation14], %s2938_s11  ;;  %s1267_s14 = scalar_lea.sflag [#allocation4], %s2686_s6 }
 0x41e   : > { %s1291_s24 = sshll.u32 %s596_s18, 4  ;;  %s2336_s19 = smov [#allocation14]   ;;  %s2826_s24 = int_to_ptr.vmem [resolvable:$true] %s1291_s24 }
 0x41f   : > { %s2234_s23 = scalar_lea.vmem %s2826_s24, 256  ;;  %s2238_s12 = sshll.u32 %s2336_s19, 4  ;;  %s2239_s12 = int_to_ptr.vmem [resolvable:$false] %s2238_s12 }
 0x420   : > { %p2235_p2 = scmp.ne.s32.totalorder %s2826_s24, %s2234_s23  ;;  %s2240_s26 = scalar_lea.vmem %s2239_s12, 512 }
 0x421   : > { %v1167_v63 = vld [vmem:[%s2937_s0] sm:$0x3]  ;;  %p2241_p7 = scmp.lt.s32.totalorder %s2826_s24, %s2239_s12  ;;  %p2242_p10 = scmp.lt.s32.totalorder %s2240_s26, %s2234_s23 }
 0x422   : > { %v1172_v0 = vrot.slane %v1167_v63, %v2723_v23  ;;  %v1176_v1 = vrot.slane %v1167_v63, %v2728_v25  ;;  %s2824_s13 = scalar_lea.hbm %s2939_s7, %s1556_s2  ;;  %p2236_p4 = pnand %p2235_p2, %p2935_p13 }
 0x423   : > { %p2243_p1 = por %p2242_p10, %p2241_p7 }
 0x424   : > { %p2237_p8 = pneg %p2236_p4 }
 0x426   : > { %p2244_p11 = pnand %p2243_p1, %p2237_p8 }
 0x4c8   : > { %v1245_v2 = vpop.f32.mrb[4].mxu1 }
 0x4c9   : > { %v1246_v3 = vadd.f32 %v1245_v2, %v1172_v0  ;;  %v1247_v4 = vpop.f32.mrb[5].mxu1 }
 0x4ca   : > { %v1248_v5 = vadd.f32 %v1247_v4, %v1176_v1 }
 0x4cb   : > { %v1544_v6 = vmul.f32 -1.442695, %v1246_v3 }
 0x4cc   : > { %v1545_v7 = vmul.f32 -1.442695, %v1248_v5 }
 0x4cd   : > { %1970 = vpow2.f32 %v1544_v6 }
 0x4ce   : > { %1972 = vpow2.f32 %v1545_v7 }
 0x4d7   : > { %v1971_v8 = vpop.eup %1970 }
 0x4d8   : > { %v1973_v9 = vpop.eup %1972  ;;  %v1256_v10 = vadd.f32 1.0, %v1971_v8 }
 0x4d9   : > { %v1257_v11 = vadd.f32 1.0, %v1973_v9 }
 0x4da   : > { %1974 = vrcp.f32 %v1256_v10 }
 0x4db   : > { %1976 = vrcp.f32 %v1257_v11 }
 0x4e4   : > { %v1975_v23 = vpop.eup %1974 }
 0x4e5   : > { %v1977_v25 = vpop.eup %1976  ;;  %1262 = vst [vmem:[%s596_s18] sm:$0xff] %v1975_v23 }
 0x4e6   : > { %1263 = vst [vmem:[%s596_s18 + $0x8] sm:$0xff] %v1977_v25 }
 0x4e7   : > { %2247 = shalt.err (!%p2244_p11)
}
 0x4e8   : > { %s2248_s6 = scalar_lea.hbm %s2824_s13, 256  ;;  %s2252_s2 = scalar_lea.hbm %s2939_s7, 512 }
 0x4e9   : > { %p2249_p12 = scmp.ne.s32.totalorder %s2824_s13, %s2248_s6  ;;  %p2253_p0 = scmp.lt.u32.totalorder %s2824_s13, %s2939_s7 }
 0x4ea   : > { %p2254_p5 = scmp.lt.u32.totalorder %s2252_s2, %s2248_s6  ;;  %p2256_p2 = scmp.lt.u32.totalorder %s2248_s6, %s2824_s13 }
 0x4eb   : > { %p2250_p6 = pnand %p2249_p12, %p2935_p13 }
 0x4ec   : > { %p2255_p3 = por %p2254_p5, %p2253_p0 }
 0x4ed   : > { %p2251_p9 = pneg %p2250_p6 }
 0x4ee   : > { %p2257_p4 = por %p2256_p2, %p2255_p3 }
 0x4f0   : > { %p2258_p8 = pnand %p2257_p4, %p2251_p9 }
 0x4f2   : > { %2261 = shalt.err (!%p2258_p8)
}
 0x4f3   : > { %1875 = dma.vmem_to_hbm [thread:$0]  (%p2935_p13), %s2826_s24, 256, %s2824_s13, %s1267_s14  }
 0x4f4 PF: > { %s1329_s25 = sand.u32 1, %s2308_s29   ;;  %p2940_p7 = scmp.ne.s32.totalorder %s2920_s17, 0 }
 0x4f5   : > { %p2941_p10 = scmp.ge.s32.totalorder %s2320_s16, 2  ;;  %s1330_s4 = scalar_lea.sflag [#allocation4], %s1329_s25 }
 0x4f7   : > { %p1905_p1 = pnand %p2941_p10, %p2940_p7 }
 0x4f9   : > { %2299 = dma.done.wait (!%p1905_p1), %s1330_s4, 256  }
 0x4fa   : > { %2301 = vsyncadd (!%p1905_p1), %s1330_s4, 4294967040  ;;  %s2942_s23 = sadd.s32 4294967294, %s2320_s16  }
 0x4fb   : > { %s1338_s19 = sand.u32 1, %s2942_s23  }
 0x4fc   : > { %s1339_s12 = scalar_lea.sflag [#allocation16], %s1338_s19 }
 0x4fd   : > { %2303 = dma.done.wait (!%p1905_p1), %s1339_s12, 256  }
 0x4fe   : > { %2305 = vsyncadd (!%p1905_p1), %s1339_s12, 4294967040  ;;  %p36_p13 = scmp.ge.s32.totalorder %s2581_s21, 4   ;;  %s2943_s29 = smov %s2312_s30 }
 0x4ff   : > { %s2944_s30 = smov %s2316_s15  ;;  %s2945_s15 = smov %s2593_s27 }
 0x500   : > { %s2946_s16 = smov %s2581_s21  ;;  %38 = sbr.rel (!%p36_p13) target bundleno = 22 (0x16), region = 178 }
 0x507   :  { %1353 = vsyncpa [#allocation3], 1 }
 0x508   :  { %1355 = vsyncpa [#allocation3 + $0x1], 1 }
 0x509   :  { %1356 = vsyncpa [#allocation6], 1 }
 0x50a   :  { %1358 = vsyncpa [#allocation6 + $0x1], 1 }
 0x50b   :  { %1359 = vsyncpa [#allocation9], 1 }
 0x50c   :  { %1360 = vsyncpa [#allocation12], 1 }
 0x50d   :  { %1361 = vsyncpa [#allocation4], 1 }
 0x50e   :  { %1363 = vsyncpa [#allocation4 + $0x1], 1 }
 0x50f   :  { %1364 = vsyncpa [#allocation16], 1 }
 0x510   :  { %1366 = vsyncpa [#allocation16 + $0x1], 1 }

</bundles_post_ra>
